<compile_context>
chip_gen: v7x
topology: tpu7x:2x2x1
jax: 0.10.0
libtpu: 0.0.40
codegen_flags: <defaults>
</compile_context>

<pallas_src>
import functools

import jax
import jax.numpy as jnp
from jax.experimental import pallas as pl
from jax.experimental.pallas import tpu as pltpu


def _round_up(x, m):
    return (x + m - 1) // m * m


def _mosaic_params(block_bytes, semantics):
    # Honest per-kernel VMEM request: double-buffered blocks + headroom, never the
    # whole physical VMEM (v7x has only 64 MiB per TensorCore).
    limit = int(min(100 * 2 ** 20, max(8 * 2 ** 20, 4 * int(block_bytes) + 2 * 2 ** 20)))
    return pltpu.CompilerParams(dimension_semantics=semantics,
                                vmem_limit_bytes=limit)


# ----------------------------------------------------------------------------
# Fused conv kernel: (Cout, K) @ (K, HW) per image + bias/IN/ReLU/Tanh epilogue
# ----------------------------------------------------------------------------
def _make_conv_kernel(epilogue, has_bias, eps):
    def kernel(*refs):
        if has_bias:
            w_ref, p_ref, b_ref, o_ref = refs
        else:
            w_ref, p_ref, o_ref = refs
        # MXU: bf16 x bf16 -> f32 accumulate, spatial extent on the lane dim.
        acc = jnp.dot(w_ref[...], p_ref[0], preferred_element_type=jnp.float32)
        if has_bias:
            acc = acc + b_ref[...]                          # (Cout, 1) broadcast
        if epilogue in ("in", "in_relu"):
            # InstanceNorm(affine=False) fused in the epilogue: the full (n, c)
            # spatial row lives in this tile (HW is never padded), one-pass stats.
            inv_hw = 1.0 / acc.shape[1]
            mean = jnp.sum(acc, axis=1, keepdims=True) * inv_hw
            var = jnp.maximum(
                jnp.sum(acc * acc, axis=1, keepdims=True) * inv_hw - mean * mean, 0.0)
            acc = (acc - mean) * jax.lax.rsqrt(var + eps)
            if epilogue == "in_relu":
                acc = jnp.maximum(acc, 0.0)
        elif epilogue == "relu":
            acc = jnp.maximum(acc, 0.0)
        elif epilogue == "tanh":
            acc = jnp.tanh(acc)
        o_ref[0] = acc.astype(o_ref.dtype)
    return kernel


def _fused_conv(patches, wmat, bias_col, *, epilogue, out_dtype, eps):
    """patches: (N, K, HW) bf16; wmat: (Cout_p, K) bf16; bias_col: (Cout_p, 1) f32 | None."""
    N, K, HW = patches.shape
    Cout_p = wmat.shape[0]
    in_specs = [
        pl.BlockSpec((Cout_p, K), lambda n: (0, 0)),
        pl.BlockSpec((1, K, HW), lambda n: (n, 0, 0)),
    ]
    args = [wmat, patches]
    if bias_col is not None:
        in_specs.append(pl.BlockSpec((Cout_p, 1), lambda n: (0, 0)))
        args.append(bias_col)
    block_bytes = (Cout_p * K * 2 + K * HW * 2 + Cout_p * 4
                   + Cout_p * HW * jnp.dtype(out_dtype).itemsize)
    return pl.pallas_call(
        _make_conv_kernel(epilogue, bias_col is not None, eps),
        out_shape=jax.ShapeDtypeStruct((N, Cout_p, HW), out_dtype),
        grid=(N,),
        in_specs=in_specs,
        out_specs=pl.BlockSpec((1, Cout_p, HW), lambda n: (n, 0, 0)),
        compiler_params=_mosaic_params(block_bytes, ("parallel",)),
    )(*args)


def _extract_patches(x, kh, kw, stride):
    """(N, C, Hp, Wp) -> (N, C*kh*kw, Ho*Wo) in bf16, already in (K, HW) orientation."""
    N, C, H, W = x.shape
    Ho = (H - kh) // stride + 1
    Wo = (W - kw) // stride + 1
    cols = []
    for i in range(kh):
        for j in range(kw):
            cols.append(x[:, :, i:i + stride * Ho:stride, j:j + stride * Wo:stride])
    p = jnp.stack(cols, axis=2)                   # (N, C, kh*kw, Ho, Wo)
    return p.reshape(N, C * kh * kw, Ho * Wo), Ho, Wo


def conv2d(x, w, *, stride=1, padding=0, pad_mode="constant", bias=None,
           epilogue="none", out_dtype=jnp.bfloat16, eps=1e-5):
    """PyTorch-style Conv2d (NCHW, weight (Cout,Cin,kh,kw)); matmul + bias + following
    InstanceNorm / ReLU / Tanh fused into one Pallas kernel per image."""
    Cout, Cin, kh, kw = w.shape
    N = x.shape[0]
    if padding > 0:
        x = jnp.pad(x, ((0, 0), (0, 0), (padding, padding), (padding, padding)),
                    mode=pad_mode)
    x = x.astype(jnp.bfloat16)
    # TODO(synk): fuse the kh*kw tap extraction into the kernel itself; kept as cheap
    # XLA stack+reshape glue (bf16, transposed orientation) for lowering robustness.
    patches, Ho, Wo = _extract_patches(x, kh, kw, stride)
    Cout_p = _round_up(Cout, 8)
    wmat = w.reshape(Cout, Cin * kh * kw).astype(jnp.bfloat16)
    if Cout_p != Cout:
        wmat = jnp.pad(wmat, ((0, Cout_p - Cout), (0, 0)))
    bias_col = None
    if bias is not None:
        bias_col = jnp.pad(bias.astype(jnp.float32),
                           (0, Cout_p - Cout)).reshape(Cout_p, 1)
    out = _fused_conv(patches, wmat, bias_col, epilogue=epilogue,
                      out_dtype=out_dtype, eps=eps)
    return out[:, :Cout].reshape(N, Cout, Ho, Wo)


# ----------------------------------------------------------------------------
# Standalone InstanceNorm (+ReLU) — only needed after the sub-pixel upsampling,
# where the full (2H, 2W) map must be assembled before normalisation.
# ----------------------------------------------------------------------------
def _make_inorm_kernel(eps, relu):
    def kernel(x_ref, o_ref):
        x = x_ref[...].astype(jnp.float32)
        inv = 1.0 / x.shape[1]
        mean = jnp.sum(x, axis=1, keepdims=True) * inv
        var = jnp.maximum(jnp.sum(x * x, axis=1, keepdims=True) * inv - mean * mean, 0.0)
        y = (x - mean) * jax.lax.rsqrt(var + eps)
        if relu:
            y = jnp.maximum(y, 0.0)
        o_ref[...] = y.astype(o_ref.dtype)
    return kernel


def instance_norm(x, *, relu=False, eps=1e-5, out_dtype=jnp.bfloat16):
    """InstanceNorm2d(affine=False) [+ ReLU], row-tiled over the N*C instances.
    TODO(synk): HW-chunked two-pass stats for resolutions where a full row block
    would not fit in VMEM."""
    N, C, H, W = x.shape
    R, HW = N * C, H * W
    TR = 8 if R % 8 == 0 else R
    xr = x.reshape(R, HW)
    block_bytes = TR * HW * (x.dtype.itemsize + jnp.dtype(out_dtype).itemsize)
    y = pl.pallas_call(
        _make_inorm_kernel(eps, relu),
        out_shape=jax.ShapeDtypeStruct((R, HW), out_dtype),
        grid=(R // TR,),
        in_specs=[pl.BlockSpec((TR, HW), lambda i: (i, 0))],
        out_specs=pl.BlockSpec((TR, HW), lambda i: (i, 0)),
        compiler_params=_mosaic_params(block_bytes, ("parallel",)),
    )(xr)
    return y.reshape(N, C, H, W)


# ----------------------------------------------------------------------------
# CBAM: fused channel attention, and fused spatial gate + residual add
# ----------------------------------------------------------------------------
def _cbam_channel_kernel(h_ref, w1t_ref, w2_ref, y_ref, sa_ref):
    x = h_ref[0].astype(jnp.float32)                         # (C, HW), one image
    inv_hw = 1.0 / x.shape[1]
    pooled = jnp.sum(x, axis=1, keepdims=True) * inv_hw      # (C, 1) global avg-pool
    # NOTE: in the reference ChannelAttention BOTH pooling branches are
    # AdaptiveAvgPool2d, hence avg_out + max_out == 2 * shared_mlp(avg_pool(x)).
    hid = jnp.maximum(jnp.sum(w1t_ref[...] * pooled, axis=0, keepdims=True), 0.0)  # (1, Ch)
    logits = 2.0 * jnp.sum(w2_ref[...] * hid, axis=1, keepdims=True)               # (C, 1)
    y = x * jax.nn.sigmoid(logits)                           # channel gate (lane bcast)
    y_ref[0] = y.astype(y_ref.dtype)
    # spatial-attention input = [mean_c(y); max_c(y)], computed in the same pass.
    sa_ref[0] = jnp.concatenate(
        [jnp.mean(y, axis=0, keepdims=True), jnp.max(y, axis=0, keepdims=True)],
        axis=0).astype(sa_ref.dtype)


def cbam_channel_attention(h, ca_w1, ca_w2):
    """Fused per image: avg-pool -> shared MLP (x2 branches) -> sigmoid channel gate
    -> channel-wise mean/max of the gated tensor."""
    N, C, H, W = h.shape
    HW = H * W
    Ch = ca_w1.shape[0]
    w1t = ca_w1.reshape(Ch, C).T.astype(jnp.float32)         # (C, Ch)
    w2 = ca_w2.reshape(C, Ch).astype(jnp.float32)            # (C, Ch)
    y, sa_in = pl.pallas_call(
        _cbam_channel_kernel,
        out_shape=(jax.ShapeDtypeStruct((N, C, HW), jnp.bfloat16),
                   jax.ShapeDtypeStruct((N, 2, HW), jnp.bfloat16)),
        grid=(N,),
        in_specs=[pl.BlockSpec((1, C, HW), lambda n: (n, 0, 0)),
                  pl.BlockSpec((C, Ch), lambda n: (0, 0)),
                  pl.BlockSpec((C, Ch), lambda n: (0, 0))],
        out_specs=(pl.BlockSpec((1, C, HW), lambda n: (n, 0, 0)),
                   pl.BlockSpec((1, 2, HW), lambda n: (n, 0, 0))),
        compiler_params=_mosaic_params(4 * C * HW * 4, ("parallel",)),
    )(h.reshape(N, C, HW), w1t, w2)
    return y.reshape(N, C, H, W), sa_in.reshape(N, 2, H, W)


def _spatial_gate_kernel(y_ref, s_ref, res_ref, o_ref):
    y = y_ref[...].astype(jnp.float32)
    gate = jax.nn.sigmoid(s_ref[...].astype(jnp.float32))    # (1, 1, HW), bcast over C
    o_ref[...] = (res_ref[...].astype(jnp.float32) + y * gate).astype(o_ref.dtype)


def spatial_gate_residual(y, s_logits, res):
    """out = residual + y * sigmoid(spatial-attention logits)."""
    N, C, H, W = y.shape
    HW = H * W
    out = pl.pallas_call(
        _spatial_gate_kernel,
        out_shape=jax.ShapeDtypeStruct((N, C, HW), jnp.bfloat16),
        grid=(N,),
        in_specs=[pl.BlockSpec((1, C, HW), lambda n: (n, 0, 0)),
                  pl.BlockSpec((1, 1, HW), lambda n: (n, 0, 0)),
                  pl.BlockSpec((1, C, HW), lambda n: (n, 0, 0))],
        out_specs=pl.BlockSpec((1, C, HW), lambda n: (n, 0, 0)),
        compiler_params=_mosaic_params(3 * C * HW * 4, ("parallel",)),
    )(y.reshape(N, C, HW), s_logits.reshape(N, 1, HW), res.reshape(N, C, HW))
    return out.reshape(N, C, H, W)


# ----------------------------------------------------------------------------
# ConvTranspose2d(k=3, s=2, p=1, op=1) + IN + ReLU via sub-pixel decomposition
# ----------------------------------------------------------------------------
def conv_transpose2d_in_relu(x, w, *, stride=2, padding=1, output_padding=1, eps=1e-5):
    """Equivalent to ConvTranspose2d -> InstanceNorm -> ReLU.  Four small stride-1
    convs on the non-dilated input, interleaved into (2H, 2W) via stack+reshape.
    The ConvTranspose bias is exactly cancelled by InstanceNorm and not applied."""
    Cin, Cout, kh, kw = w.shape
    N, _, H, W = x.shape
    assert (stride, padding, output_padding, kh, kw) == (2, 1, 1, 3, 3), \
        "specialized to the generator's upsampling configuration"
    # equivalent forward-conv weight: w_eq[co, ci, th, tw] = w[ci, co, 2-th, 2-tw]
    w_eq = jnp.flip(w, axis=(2, 3)).transpose(1, 0, 2, 3)     # (Cout, Cin, 3, 3)
    # output parity 0 uses tap t=1 on x[a]; parity 1 uses t=0 on x[a] and t=2 on x[a+1]
    taps = {0: (1,), 1: (0, 2)}
    parts = []
    for pr in (0, 1):
        row = []
        for pc in (0, 1):
            tr, tc = taps[pr], taps[pc]
            ker = w_eq[:, :, jnp.array(tr), :][:, :, :, jnp.array(tc)]
            xp = x if (pr, pc) == (0, 0) else jnp.pad(
                x, ((0, 0), (0, 0), (0, pr), (0, pc)))
            row.append(conv2d(xp, ker, stride=1, padding=0, epilogue="none"))
        parts.append(jnp.stack(row, axis=-1))                 # (N, Cout, H, W, 2)
    out = jnp.stack(parts, axis=3)                            # (N, Cout, H, 2, W, 2)
    out = out.reshape(N, Cout, 2 * H, 2 * W)                  # lane-dense interleave
    return instance_norm(out, relu=True, eps=eps)


# ----------------------------------------------------------------------------
# CBAMResNetGenerator forward
# ----------------------------------------------------------------------------
def resnet_cbam_block(bp, x, eps=1e-5):
    # conv block: ReflPad(1)->Conv3x3->IN->ReLU->ReflPad(1)->Conv3x3->IN
    # (conv biases are cancelled by InstanceNorm(affine=False) and not applied)
    h = conv2d(x, bp["conv1_w"], padding=1, pad_mode="reflect",
               epilogue="in_relu", eps=eps)
    h = conv2d(h, bp["conv2_w"], padding=1, pad_mode="reflect",
               epilogue="in", eps=eps)
    # CBAM: fused channel gate (+ channel mean/max), 7x7 spatial conv, gate + residual
    y, sa_in = cbam_channel_attention(h, bp["ca_w1"], bp["ca_w2"])
    sa_logits = conv2d(sa_in, bp["sa_w"], padding=3,
                       epilogue="none", out_dtype=jnp.float32)     # (N, 1, H, W)
    return spatial_gate_residual(y, sa_logits, x)                  # x + y*sigmoid(sa)


def generator_forward(params, x, n_down, n_blocks):
    # stem: ReflectionPad(3) -> Conv7x7 -> IN -> ReLU (IN/ReLU fused; bias cancelled)
    h = conv2d(x, params["stem_w"], padding=3, pad_mode="reflect", epilogue="in_relu")
    for i in range(n_down):
        h = conv2d(h, params[f"down{i}_w"], stride=2, padding=1, epilogue="in_relu")
    for b in range(n_blocks):
        h = resnet_cbam_block(params[f"block{b}"], h)
    for i in range(n_down):
        h = conv_transpose2d_in_relu(h, params[f"up{i}_w"])
    # head: ReflectionPad(3) -> Conv7x7(bias) -> Tanh (bias + tanh fused, f32 output)
    return conv2d(h, params["out_w"], bias=params["out_b"], padding=3,
                  pad_mode="reflect", epilogue="tanh", out_dtype=jnp.float32)


def init_params(key, input_nc=1, output_nc=3, ngf=8, n_down=2, n_blocks=2, ratio=16):
    keys = iter(jax.random.split(key, 256))

    def w(shape, scale=0.05):
        return jax.random.normal(next(keys), shape, jnp.float32) * scale

    # NOTE: biases for convs followed by InstanceNorm(affine=False) exist in the
    # PyTorch module but are mathematically cancelled, so they are created here (to
    # mirror the torch parameter set) and intentionally never applied in the forward.
    p = {}
    p["stem_w"] = w((ngf, input_nc, 7, 7))
    p["stem_b"] = w((ngf,))
    for i in range(n_down):
        cin, cout = ngf * 2 ** i, ngf * 2 ** (i + 1)
        p[f"down{i}_w"] = w((cout, cin, 3, 3))
        p[f"down{i}_b"] = w((cout,))
    dim = ngf * 2 ** n_down
    hid = max(dim // ratio, 1)
    for b in range(n_blocks):
        p[f"block{b}"] = {
            "conv1_w": w((dim, dim, 3, 3)), "conv1_b": w((dim,)),
            "conv2_w": w((dim, dim, 3, 3)), "conv2_b": w((dim,)),
            "ca_w1": w((hid, dim, 1, 1)),   # Conv2d(dim, dim//ratio, 1, bias=False)
            "ca_w2": w((dim, hid, 1, 1)),   # Conv2d(dim//ratio, dim, 1, bias=False)
            "sa_w": w((1, 2, 7, 7)),        # Conv2d(2, 1, 7, padding=3, bias=False)
        }
    for i in range(n_down):
        cin = ngf * 2 ** (n_down - i)
        cout = cin // 2
        p[f"up{i}_w"] = w((cin, cout, 3, 3))   # ConvTranspose2d weight (Cin, Cout, k, k)
        p[f"up{i}_b"] = w((cout,))
    p["out_w"] = w((output_nc, ngf, 7, 7))
    p["out_b"] = w((output_nc,))
    return p


if __name__ == "__main__":
    # Small, self-consistent CBAMResNetGenerator config:
    #   input_nc=1, output_nc=3, ngf=8, n_downsampling=2, n_blocks=2
    # (bottleneck dim = 8 * 2**2 = 32; CBAM ratio=16 -> 2-unit hidden MLP)
    input_nc, output_nc, ngf, n_down, n_blocks = 1, 3, 8, 2, 2
    key = jax.random.PRNGKey(0)
    pkey, xkey = jax.random.split(key)
    params = init_params(pkey, input_nc, output_nc, ngf, n_down, n_blocks)
    x = jax.random.normal(xkey, (2, input_nc, 32, 32), jnp.float32)

    fwd = jax.jit(functools.partial(generator_forward, n_down=n_down, n_blocks=n_blocks))
    y = fwd(params, x)
    jax.block_until_ready(y)
    assert y.shape == (2, output_nc, 32, 32), y.shape
    assert bool(jnp.all(jnp.isfinite(y)))
    print("KERNEL_OK")
</pallas_src>

<mosaic_0001>
module attributes {stable_mosaic.version = 11 : i64} {
  func.func @kernel(%arg0: i32, %arg1: memref<8x49xbf16, #tpu.memory_space<vmem>>, %arg2: memref<1x49x1024xbf16, #tpu.memory_space<vmem>>, %arg3: memref<1x8x1024xbf16, #tpu.memory_space<vmem>>) attributes {dimension_semantics = [#tpu.dimension_semantics<parallel>], iteration_bounds = array<i64: 2>, scalar_prefetch = 0 : i64, scratch_operands = 0 : i64, tpu.core_type = #tpu.core_type<tc>, window_params = [{pipeline_mode = #tpu.pipeline_mode<synchronous>, transform_indices = @transform_0, window_bounds = array<i64: 8, 49>}, {transform_indices = @transform_1, window_bounds = array<i64: 1, 49, 1024>}, {transform_indices = @transform_2, window_bounds = array<i64: 1, 8, 1024>}]} {
    %c0 = arith.constant 0 : index
    %c0_0 = arith.constant 0 : index
    %0 = vector.load %arg1[%c0, %c0_0] : memref<8x49xbf16, #tpu.memory_space<vmem>>, vector<8x49xbf16>
    %c0_1 = arith.constant 0 : index
    %c0_2 = arith.constant 0 : index
    %c0_3 = arith.constant 0 : index
    %1 = vector.load %arg2[%c0_1, %c0_2, %c0_3] : memref<1x49x1024xbf16, #tpu.memory_space<vmem>>, vector<1x49x1024xbf16>
    %2 = vector.shape_cast %1 : vector<1x49x1024xbf16> to vector<49x1024xbf16>
    %cst = arith.constant dense<0.000000e+00> : vector<8x1024xf32>
    %3 = tpu.matmul %0, %2, %cst {dimension_numbers = #tpu.dot_dimension_numbers<[1], [0], [0], [1], [0, 0, 1, 1], [], []>} : vector<8x49xbf16>, vector<49x1024xbf16>, vector<8x1024xf32> -> vector<8x1024xf32>
    %cst_4 = arith.constant dense<0.000000e+00> : vector<8xf32>
    %4 = vector.multi_reduction <add>, %3, %cst_4 [1] : vector<8x1024xf32> to vector<8xf32>
    %5 = vector.shape_cast %4 : vector<8xf32> to vector<8x1xf32>
    %cst_5 = arith.constant 9.765625E-4 : f32
    %6 = vector.broadcast %cst_5 : f32 to vector<8x1xf32>
    %7 = arith.mulf %5, %6 : vector<8x1xf32>
    %8 = arith.mulf %3, %3 : vector<8x1024xf32>
    %cst_6 = arith.constant dense<0.000000e+00> : vector<8xf32>
    %9 = vector.multi_reduction <add>, %8, %cst_6 [1] : vector<8x1024xf32> to vector<8xf32>
    %10 = vector.shape_cast %9 : vector<8xf32> to vector<8x1xf32>
    %cst_7 = arith.constant 9.765625E-4 : f32
    %11 = vector.broadcast %cst_7 : f32 to vector<8x1xf32>
    %12 = arith.mulf %10, %11 : vector<8x1xf32>
    %13 = arith.mulf %7, %7 : vector<8x1xf32>
    %14 = arith.subf %12, %13 : vector<8x1xf32>
    %cst_8 = arith.constant 0.000000e+00 : f32
    %15 = vector.broadcast %cst_8 : f32 to vector<8x1xf32>
    %16 = arith.maximumf %14, %15 : vector<8x1xf32>
    %17 = vector.broadcast %7 : vector<8x1xf32> to vector<8x1024xf32>
    %18 = arith.subf %3, %17 : vector<8x1024xf32>
    %cst_9 = arith.constant 9.99999974E-6 : f32
    %19 = vector.broadcast %cst_9 : f32 to vector<8x1xf32>
    %20 = arith.addf %16, %19 : vector<8x1xf32>
    %21 = math.rsqrt %20 : vector<8x1xf32>
    %22 = vector.broadcast %21 : vector<8x1xf32> to vector<8x1024xf32>
    %23 = arith.mulf %18, %22 : vector<8x1024xf32>
    %cst_10 = arith.constant 0.000000e+00 : f32
    %24 = vector.broadcast %cst_10 : f32 to vector<8x1024xf32>
    %25 = arith.maximumf %23, %24 : vector<8x1024xf32>
    %26 = arith.truncf %25 : vector<8x1024xf32> to vector<8x1024xbf16>
    %c0_11 = arith.constant 0 : index
    %c0_12 = arith.constant 0 : index
    %c0_13 = arith.constant 0 : index
    %27 = vector.load %arg3[%c0_11, %c0_12, %c0_13] : memref<1x8x1024xbf16, #tpu.memory_space<vmem>>, vector<1x8x1024xbf16>
    %28 = vector.shape_cast %27 : vector<1x8x1024xbf16> to vector<8x1024xbf16>
    %29 = vector.shape_cast %26 : vector<8x1024xbf16> to vector<1x8x1024xbf16>
    tpu.vector_store %arg3[%c0_11, %c0_12, %c0_13], %29 {strides = array<i32>} : memref<1x8x1024xbf16, #tpu.memory_space<vmem>>, vector<1x8x1024xbf16>,
    return
  }
  func.func @transform_0(%arg0: i32) -> (i32, i32) {
    %c0_i32 = arith.constant 0 : i32
    %c0_i32_0 = arith.constant 0 : i32
    %c0_i32_1 = arith.constant 0 : i32
    return %c0_i32, %c0_i32_0 : i32, i32
  }
  func.func @transform_1(%arg0: i32) -> (i32, i32, i32) {
    %c0_i32 = arith.constant 0 : i32
    %c0_i32_0 = arith.constant 0 : i32
    %c0_i32_1 = arith.constant 0 : i32
    return %arg0, %c0_i32, %c0_i32_0 : i32, i32, i32
  }
  func.func @transform_2(%arg0: i32) -> (i32, i32, i32) {
    %c0_i32 = arith.constant 0 : i32
    %c0_i32_0 = arith.constant 0 : i32
    %c0_i32_1 = arith.constant 0 : i32
    return %arg0, %c0_i32, %c0_i32_0 : i32, i32, i32
  }
}

module attributes {stable_mosaic.version = 11 : i64} {
  func.func @kernel(%arg0: i32, %arg1: memref<16x72xbf16, #tpu.memory_space<vmem>>, %arg2: memref<1x72x256xbf16, #tpu.memory_space<vmem>>, %arg3: memref<1x16x256xbf16, #tpu.memory_space<vmem>>) attributes {dimension_semantics = [#tpu.dimension_semantics<parallel>], iteration_bounds = array<i64: 2>, scalar_prefetch = 0 : i64, scratch_operands = 0 : i64, tpu.core_type = #tpu.core_type<tc>, window_params = [{pipeline_mode = #tpu.pipeline_mode<synchronous>, transform_indices = @transform_0, window_bounds = array<i64: 16, 72>}, {transform_indices = @transform_1, window_bounds = array<i64: 1, 72, 256>}, {transform_indices = @transform_2, window_bounds = array<i64: 1, 16, 256>}]} {
    %c0 = arith.constant 0 : index
    %c0_0 = arith.constant 0 : index
    %0 = vector.load %arg1[%c0, %c0_0] : memref<16x72xbf16, #tpu.memory_space<vmem>>, vector<16x72xbf16>
    %c0_1 = arith.constant 0 : index
    %c0_2 = arith.constant 0 : index
    %c0_3 = arith.constant 0 : index
    %1 = vector.load %arg2[%c0_1, %c0_2, %c0_3] : memref<1x72x256xbf16, #tpu.memory_space<vmem>>, vector<1x72x256xbf16>
    %2 = vector.shape_cast %1 : vector<1x72x256xbf16> to vector<72x256xbf16>
    %cst = arith.constant dense<0.000000e+00> : vector<16x256xf32>
    %3 = tpu.matmul %0, %2, %cst {dimension_numbers = #tpu.dot_dimension_numbers<[1], [0], [0], [1], [0, 0, 1, 1], [], []>} : vector<16x72xbf16>, vector<72x256xbf16>, vector<16x256xf32> -> vector<16x256xf32>
    %cst_4 = arith.constant dense<0.000000e+00> : vector<16xf32>
    %4 = vector.multi_reduction <add>, %3, %cst_4 [1] : vector<16x256xf32> to vector<16xf32>
    %5 = vector.shape_cast %4 : vector<16xf32> to vector<16x1xf32>
    %cst_5 = arith.constant 3.906250e-03 : f32
    %6 = vector.broadcast %cst_5 : f32 to vector<16x1xf32>
    %7 = arith.mulf %5, %6 : vector<16x1xf32>
    %8 = arith.mulf %3, %3 : vector<16x256xf32>
    %cst_6 = arith.constant dense<0.000000e+00> : vector<16xf32>
    %9 = vector.multi_reduction <add>, %8, %cst_6 [1] : vector<16x256xf32> to vector<16xf32>
    %10 = vector.shape_cast %9 : vector<16xf32> to vector<16x1xf32>
    %cst_7 = arith.constant 3.906250e-03 : f32
    %11 = vector.broadcast %cst_7 : f32 to vector<16x1xf32>
    %12 = arith.mulf %10, %11 : vector<16x1xf32>
    %13 = arith.mulf %7, %7 : vector<16x1xf32>
    %14 = arith.subf %12, %13 : vector<16x1xf32>
    %cst_8 = arith.constant 0.000000e+00 : f32
    %15 = vector.broadcast %cst_8 : f32 to vector<16x1xf32>
    %16 = arith.maximumf %14, %15 : vector<16x1xf32>
    %17 = vector.broadcast %7 : vector<16x1xf32> to vector<16x256xf32>
    %18 = arith.subf %3, %17 : vector<16x256xf32>
    %cst_9 = arith.constant 9.99999974E-6 : f32
    %19 = vector.broadcast %cst_9 : f32 to vector<16x1xf32>
    %20 = arith.addf %16, %19 : vector<16x1xf32>
    %21 = math.rsqrt %20 : vector<16x1xf32>
    %22 = vector.broadcast %21 : vector<16x1xf32> to vector<16x256xf32>
    %23 = arith.mulf %18, %22 : vector<16x256xf32>
    %cst_10 = arith.constant 0.000000e+00 : f32
    %24 = vector.broadcast %cst_10 : f32 to vector<16x256xf32>
    %25 = arith.maximumf %23, %24 : vector<16x256xf32>
    %26 = arith.truncf %25 : vector<16x256xf32> to vector<16x256xbf16>
    %c0_11 = arith.constant 0 : index
    %c0_12 = arith.constant 0 : index
    %c0_13 = arith.constant 0 : index
    %27 = vector.load %arg3[%c0_11, %c0_12, %c0_13] : memref<1x16x256xbf16, #tpu.memory_space<vmem>>, vector<1x16x256xbf16>
    %28 = vector.shape_cast %27 : vector<1x16x256xbf16> to vector<16x256xbf16>
    %29 = vector.shape_cast %26 : vector<16x256xbf16> to vector<1x16x256xbf16>
    tpu.vector_store %arg3[%c0_11, %c0_12, %c0_13], %29 {strides = array<i32>} : memref<1x16x256xbf16, #tpu.memory_space<vmem>>, vector<1x16x256xbf16>,
    return
  }
  func.func @transform_0(%arg0: i32) -> (i32, i32) {
    %c0_i32 = arith.constant 0 : i32
    %c0_i32_0 = arith.constant 0 : i32
    %c0_i32_1 = arith.constant 0 : i32
    return %c0_i32, %c0_i32_0 : i32, i32
  }
  func.func @transform_1(%arg0: i32) -> (i32, i32, i32) {
    %c0_i32 = arith.constant 0 : i32
    %c0_i32_0 = arith.constant 0 : i32
    %c0_i32_1 = arith.constant 0 : i32
    return %arg0, %c0_i32, %c0_i32_0 : i32, i32, i32
  }
  func.func @transform_2(%arg0: i32) -> (i32, i32, i32) {
    %c0_i32 = arith.constant 0 : i32
    %c0_i32_0 = arith.constant 0 : i32
    %c0_i32_1 = arith.constant 0 : i32
    return %arg0, %c0_i32, %c0_i32_0 : i32, i32, i32
  }
}

module attributes {stable_mosaic.version = 11 : i64} {
  func.func @kernel(%arg0: i32, %arg1: memref<32x144xbf16, #tpu.memory_space<vmem>>, %arg2: memref<1x144x64xbf16, #tpu.memory_space<vmem>>, %arg3: memref<1x32x64xbf16, #tpu.memory_space<vmem>>) attributes {dimension_semantics = [#tpu.dimension_semantics<parallel>], iteration_bounds = array<i64: 2>, scalar_prefetch = 0 : i64, scratch_operands = 0 : i64, tpu.core_type = #tpu.core_type<tc>, window_params = [{pipeline_mode = #tpu.pipeline_mode<synchronous>, transform_indices = @transform_0, window_bounds = array<i64: 32, 144>}, {transform_indices = @transform_1, window_bounds = array<i64: 1, 144, 64>}, {transform_indices = @transform_2, window_bounds = array<i64: 1, 32, 64>}]} {
    %c0 = arith.constant 0 : index
    %c0_0 = arith.constant 0 : index
    %0 = vector.load %arg1[%c0, %c0_0] : memref<32x144xbf16, #tpu.memory_space<vmem>>, vector<32x144xbf16>
    %c0_1 = arith.constant 0 : index
    %c0_2 = arith.constant 0 : index
    %c0_3 = arith.constant 0 : index
    %1 = vector.load %arg2[%c0_1, %c0_2, %c0_3] : memref<1x144x64xbf16, #tpu.memory_space<vmem>>, vector<1x144x64xbf16>
    %2 = vector.shape_cast %1 : vector<1x144x64xbf16> to vector<144x64xbf16>
    %cst = arith.constant dense<0.000000e+00> : vector<32x64xf32>
    %3 = tpu.matmul %0, %2, %cst {dimension_numbers = #tpu.dot_dimension_numbers<[1], [0], [0], [1], [0, 0, 1, 1], [], []>} : vector<32x144xbf16>, vector<144x64xbf16>, vector<32x64xf32> -> vector<32x64xf32>
    %cst_4 = arith.constant dense<0.000000e+00> : vector<32xf32>
    %4 = vector.multi_reduction <add>, %3, %cst_4 [1] : vector<32x64xf32> to vector<32xf32>
    %5 = vector.shape_cast %4 : vector<32xf32> to vector<32x1xf32>
    %cst_5 = arith.constant 1.562500e-02 : f32
    %6 = vector.broadcast %cst_5 : f32 to vector<32x1xf32>
    %7 = arith.mulf %5, %6 : vector<32x1xf32>
    %8 = arith.mulf %3, %3 : vector<32x64xf32>
    %cst_6 = arith.constant dense<0.000000e+00> : vector<32xf32>
    %9 = vector.multi_reduction <add>, %8, %cst_6 [1] : vector<32x64xf32> to vector<32xf32>
    %10 = vector.shape_cast %9 : vector<32xf32> to vector<32x1xf32>
    %cst_7 = arith.constant 1.562500e-02 : f32
    %11 = vector.broadcast %cst_7 : f32 to vector<32x1xf32>
    %12 = arith.mulf %10, %11 : vector<32x1xf32>
    %13 = arith.mulf %7, %7 : vector<32x1xf32>
    %14 = arith.subf %12, %13 : vector<32x1xf32>
    %cst_8 = arith.constant 0.000000e+00 : f32
    %15 = vector.broadcast %cst_8 : f32 to vector<32x1xf32>
    %16 = arith.maximumf %14, %15 : vector<32x1xf32>
    %17 = vector.broadcast %7 : vector<32x1xf32> to vector<32x64xf32>
    %18 = arith.subf %3, %17 : vector<32x64xf32>
    %cst_9 = arith.constant 9.99999974E-6 : f32
    %19 = vector.broadcast %cst_9 : f32 to vector<32x1xf32>
    %20 = arith.addf %16, %19 : vector<32x1xf32>
    %21 = math.rsqrt %20 : vector<32x1xf32>
    %22 = vector.broadcast %21 : vector<32x1xf32> to vector<32x64xf32>
    %23 = arith.mulf %18, %22 : vector<32x64xf32>
    %cst_10 = arith.constant 0.000000e+00 : f32
    %24 = vector.broadcast %cst_10 : f32 to vector<32x64xf32>
    %25 = arith.maximumf %23, %24 : vector<32x64xf32>
    %26 = arith.truncf %25 : vector<32x64xf32> to vector<32x64xbf16>
    %c0_11 = arith.constant 0 : index
    %c0_12 = arith.constant 0 : index
    %c0_13 = arith.constant 0 : index
    %27 = vector.load %arg3[%c0_11, %c0_12, %c0_13] : memref<1x32x64xbf16, #tpu.memory_space<vmem>>, vector<1x32x64xbf16>
    %28 = vector.shape_cast %27 : vector<1x32x64xbf16> to vector<32x64xbf16>
    %29 = vector.shape_cast %26 : vector<32x64xbf16> to vector<1x32x64xbf16>
    tpu.vector_store %arg3[%c0_11, %c0_12, %c0_13], %29 {strides = array<i32>} : memref<1x32x64xbf16, #tpu.memory_space<vmem>>, vector<1x32x64xbf16>,
    return
  }
  func.func @transform_0(%arg0: i32) -> (i32, i32) {
    %c0_i32 = arith.constant 0 : i32
    %c0_i32_0 = arith.constant 0 : i32
    %c0_i32_1 = arith.constant 0 : i32
    return %c0_i32, %c0_i32_0 : i32, i32
  }
  func.func @transform_1(%arg0: i32) -> (i32, i32, i32) {
    %c0_i32 = arith.constant 0 : i32
    %c0_i32_0 = arith.constant 0 : i32
    %c0_i32_1 = arith.constant 0 : i32
    return %arg0, %c0_i32, %c0_i32_0 : i32, i32, i32
  }
  func.func @transform_2(%arg0: i32) -> (i32, i32, i32) {
    %c0_i32 = arith.constant 0 : i32
    %c0_i32_0 = arith.constant 0 : i32
    %c0_i32_1 = arith.constant 0 : i32
    return %arg0, %c0_i32, %c0_i32_0 : i32, i32, i32
  }
}

module attributes {stable_mosaic.version = 11 : i64} {
  func.func @kernel(%arg0: i32, %arg1: memref<32x288xbf16, #tpu.memory_space<vmem>>, %arg2: memref<1x288x64xbf16, #tpu.memory_space<vmem>>, %arg3: memref<1x32x64xbf16, #tpu.memory_space<vmem>>) attributes {dimension_semantics = [#tpu.dimension_semantics<parallel>], iteration_bounds = array<i64: 2>, scalar_prefetch = 0 : i64, scratch_operands = 0 : i64, tpu.core_type = #tpu.core_type<tc>, window_params = [{pipeline_mode = #tpu.pipeline_mode<synchronous>, transform_indices = @transform_0, window_bounds = array<i64: 32, 288>}, {transform_indices = @transform_1, window_bounds = array<i64: 1, 288, 64>}, {transform_indices = @transform_2, window_bounds = array<i64: 1, 32, 64>}]} {
    %c0 = arith.constant 0 : index
    %c0_0 = arith.constant 0 : index
    %0 = vector.load %arg1[%c0, %c0_0] : memref<32x288xbf16, #tpu.memory_space<vmem>>, vector<32x288xbf16>
    %c0_1 = arith.constant 0 : index
    %c0_2 = arith.constant 0 : index
    %c0_3 = arith.constant 0 : index
    %1 = vector.load %arg2[%c0_1, %c0_2, %c0_3] : memref<1x288x64xbf16, #tpu.memory_space<vmem>>, vector<1x288x64xbf16>
    %2 = vector.shape_cast %1 : vector<1x288x64xbf16> to vector<288x64xbf16>
    %cst = arith.constant dense<0.000000e+00> : vector<32x64xf32>
    %3 = tpu.matmul %0, %2, %cst {dimension_numbers = #tpu.dot_dimension_numbers<[1], [0], [0], [1], [0, 0, 1, 1], [], []>} : vector<32x288xbf16>, vector<288x64xbf16>, vector<32x64xf32> -> vector<32x64xf32>
    %cst_4 = arith.constant dense<0.000000e+00> : vector<32xf32>
    %4 = vector.multi_reduction <add>, %3, %cst_4 [1] : vector<32x64xf32> to vector<32xf32>
    %5 = vector.shape_cast %4 : vector<32xf32> to vector<32x1xf32>
    %cst_5 = arith.constant 1.562500e-02 : f32
    %6 = vector.broadcast %cst_5 : f32 to vector<32x1xf32>
    %7 = arith.mulf %5, %6 : vector<32x1xf32>
    %8 = arith.mulf %3, %3 : vector<32x64xf32>
    %cst_6 = arith.constant dense<0.000000e+00> : vector<32xf32>
    %9 = vector.multi_reduction <add>, %8, %cst_6 [1] : vector<32x64xf32> to vector<32xf32>
    %10 = vector.shape_cast %9 : vector<32xf32> to vector<32x1xf32>
    %cst_7 = arith.constant 1.562500e-02 : f32
    %11 = vector.broadcast %cst_7 : f32 to vector<32x1xf32>
    %12 = arith.mulf %10, %11 : vector<32x1xf32>
    %13 = arith.mulf %7, %7 : vector<32x1xf32>
    %14 = arith.subf %12, %13 : vector<32x1xf32>
    %cst_8 = arith.constant 0.000000e+00 : f32
    %15 = vector.broadcast %cst_8 : f32 to vector<32x1xf32>
    %16 = arith.maximumf %14, %15 : vector<32x1xf32>
    %17 = vector.broadcast %7 : vector<32x1xf32> to vector<32x64xf32>
    %18 = arith.subf %3, %17 : vector<32x64xf32>
    %cst_9 = arith.constant 9.99999974E-6 : f32
    %19 = vector.broadcast %cst_9 : f32 to vector<32x1xf32>
    %20 = arith.addf %16, %19 : vector<32x1xf32>
    %21 = math.rsqrt %20 : vector<32x1xf32>
    %22 = vector.broadcast %21 : vector<32x1xf32> to vector<32x64xf32>
    %23 = arith.mulf %18, %22 : vector<32x64xf32>
    %cst_10 = arith.constant 0.000000e+00 : f32
    %24 = vector.broadcast %cst_10 : f32 to vector<32x64xf32>
    %25 = arith.maximumf %23, %24 : vector<32x64xf32>
    %26 = arith.truncf %25 : vector<32x64xf32> to vector<32x64xbf16>
    %c0_11 = arith.constant 0 : index
    %c0_12 = arith.constant 0 : index
    %c0_13 = arith.constant 0 : index
    %27 = vector.load %arg3[%c0_11, %c0_12, %c0_13] : memref<1x32x64xbf16, #tpu.memory_space<vmem>>, vector<1x32x64xbf16>
    %28 = vector.shape_cast %27 : vector<1x32x64xbf16> to vector<32x64xbf16>
    %29 = vector.shape_cast %26 : vector<32x64xbf16> to vector<1x32x64xbf16>
    tpu.vector_store %arg3[%c0_11, %c0_12, %c0_13], %29 {strides = array<i32>} : memref<1x32x64xbf16, #tpu.memory_space<vmem>>, vector<1x32x64xbf16>,
    return
  }
  func.func @transform_0(%arg0: i32) -> (i32, i32) {
    %c0_i32 = arith.constant 0 : i32
    %c0_i32_0 = arith.constant 0 : i32
    %c0_i32_1 = arith.constant 0 : i32
    return %c0_i32, %c0_i32_0 : i32, i32
  }
  func.func @transform_1(%arg0: i32) -> (i32, i32, i32) {
    %c0_i32 = arith.constant 0 : i32
    %c0_i32_0 = arith.constant 0 : i32
    %c0_i32_1 = arith.constant 0 : i32
    return %arg0, %c0_i32, %c0_i32_0 : i32, i32, i32
  }
  func.func @transform_2(%arg0: i32) -> (i32, i32, i32) {
    %c0_i32 = arith.constant 0 : i32
    %c0_i32_0 = arith.constant 0 : i32
    %c0_i32_1 = arith.constant 0 : i32
    return %arg0, %c0_i32, %c0_i32_0 : i32, i32, i32
  }
}

module attributes {stable_mosaic.version = 11 : i64} {
  func.func @kernel(%arg0: i32, %arg1: memref<32x288xbf16, #tpu.memory_space<vmem>>, %arg2: memref<1x288x64xbf16, #tpu.memory_space<vmem>>, %arg3: memref<1x32x64xbf16, #tpu.memory_space<vmem>>) attributes {dimension_semantics = [#tpu.dimension_semantics<parallel>], iteration_bounds = array<i64: 2>, scalar_prefetch = 0 : i64, scratch_operands = 0 : i64, tpu.core_type = #tpu.core_type<tc>, window_params = [{pipeline_mode = #tpu.pipeline_mode<synchronous>, transform_indices = @transform_0, window_bounds = array<i64: 32, 288>}, {transform_indices = @transform_1, window_bounds = array<i64: 1, 288, 64>}, {transform_indices = @transform_2, window_bounds = array<i64: 1, 32, 64>}]} {
    %c0 = arith.constant 0 : index
    %c0_0 = arith.constant 0 : index
    %0 = vector.load %arg1[%c0, %c0_0] : memref<32x288xbf16, #tpu.memory_space<vmem>>, vector<32x288xbf16>
    %c0_1 = arith.constant 0 : index
    %c0_2 = arith.constant 0 : index
    %c0_3 = arith.constant 0 : index
    %1 = vector.load %arg2[%c0_1, %c0_2, %c0_3] : memref<1x288x64xbf16, #tpu.memory_space<vmem>>, vector<1x288x64xbf16>
    %2 = vector.shape_cast %1 : vector<1x288x64xbf16> to vector<288x64xbf16>
    %cst = arith.constant dense<0.000000e+00> : vector<32x64xf32>
    %3 = tpu.matmul %0, %2, %cst {dimension_numbers = #tpu.dot_dimension_numbers<[1], [0], [0], [1], [0, 0, 1, 1], [], []>} : vector<32x288xbf16>, vector<288x64xbf16>, vector<32x64xf32> -> vector<32x64xf32>
    %cst_4 = arith.constant dense<0.000000e+00> : vector<32xf32>
    %4 = vector.multi_reduction <add>, %3, %cst_4 [1] : vector<32x64xf32> to vector<32xf32>
    %5 = vector.shape_cast %4 : vector<32xf32> to vector<32x1xf32>
    %cst_5 = arith.constant 1.562500e-02 : f32
    %6 = vector.broadcast %cst_5 : f32 to vector<32x1xf32>
    %7 = arith.mulf %5, %6 : vector<32x1xf32>
    %8 = arith.mulf %3, %3 : vector<32x64xf32>
    %cst_6 = arith.constant dense<0.000000e+00> : vector<32xf32>
    %9 = vector.multi_reduction <add>, %8, %cst_6 [1] : vector<32x64xf32> to vector<32xf32>
    %10 = vector.shape_cast %9 : vector<32xf32> to vector<32x1xf32>
    %cst_7 = arith.constant 1.562500e-02 : f32
    %11 = vector.broadcast %cst_7 : f32 to vector<32x1xf32>
    %12 = arith.mulf %10, %11 : vector<32x1xf32>
    %13 = arith.mulf %7, %7 : vector<32x1xf32>
    %14 = arith.subf %12, %13 : vector<32x1xf32>
    %cst_8 = arith.constant 0.000000e+00 : f32
    %15 = vector.broadcast %cst_8 : f32 to vector<32x1xf32>
    %16 = arith.maximumf %14, %15 : vector<32x1xf32>
    %17 = vector.broadcast %7 : vector<32x1xf32> to vector<32x64xf32>
    %18 = arith.subf %3, %17 : vector<32x64xf32>
    %cst_9 = arith.constant 9.99999974E-6 : f32
    %19 = vector.broadcast %cst_9 : f32 to vector<32x1xf32>
    %20 = arith.addf %16, %19 : vector<32x1xf32>
    %21 = math.rsqrt %20 : vector<32x1xf32>
    %22 = vector.broadcast %21 : vector<32x1xf32> to vector<32x64xf32>
    %23 = arith.mulf %18, %22 : vector<32x64xf32>
    %24 = arith.truncf %23 : vector<32x64xf32> to vector<32x64xbf16>
    %c0_10 = arith.constant 0 : index
    %c0_11 = arith.constant 0 : index
    %c0_12 = arith.constant 0 : index
    %25 = vector.load %arg3[%c0_10, %c0_11, %c0_12] : memref<1x32x64xbf16, #tpu.memory_space<vmem>>, vector<1x32x64xbf16>
    %26 = vector.shape_cast %25 : vector<1x32x64xbf16> to vector<32x64xbf16>
    %27 = vector.shape_cast %24 : vector<32x64xbf16> to vector<1x32x64xbf16>
    tpu.vector_store %arg3[%c0_10, %c0_11, %c0_12], %27 {strides = array<i32>} : memref<1x32x64xbf16, #tpu.memory_space<vmem>>, vector<1x32x64xbf16>,
    return
  }
  func.func @transform_0(%arg0: i32) -> (i32, i32) {
    %c0_i32 = arith.constant 0 : i32
    %c0_i32_0 = arith.constant 0 : i32
    %c0_i32_1 = arith.constant 0 : i32
    return %c0_i32, %c0_i32_0 : i32, i32
  }
  func.func @transform_1(%arg0: i32) -> (i32, i32, i32) {
    %c0_i32 = arith.constant 0 : i32
    %c0_i32_0 = arith.constant 0 : i32
    %c0_i32_1 = arith.constant 0 : i32
    return %arg0, %c0_i32, %c0_i32_0 : i32, i32, i32
  }
  func.func @transform_2(%arg0: i32) -> (i32, i32, i32) {
    %c0_i32 = arith.constant 0 : i32
    %c0_i32_0 = arith.constant 0 : i32
    %c0_i32_1 = arith.constant 0 : i32
    return %arg0, %c0_i32, %c0_i32_0 : i32, i32, i32
  }
}

module attributes {stable_mosaic.version = 11 : i64} {
  func.func @_cbam_channel_kernel(%arg0: i32, %arg1: memref<1x32x64xbf16, #tpu.memory_space<vmem>>, %arg2: memref<32x2xf32, #tpu.memory_space<vmem>>, %arg3: memref<32x2xf32, #tpu.memory_space<vmem>>, %arg4: memref<1x32x64xbf16, #tpu.memory_space<vmem>>, %arg5: memref<1x2x64xbf16, #tpu.memory_space<vmem>>) attributes {dimension_semantics = [#tpu.dimension_semantics<parallel>], iteration_bounds = array<i64: 2>, scalar_prefetch = 0 : i64, scratch_operands = 0 : i64, tpu.core_type = #tpu.core_type<tc>, window_params = [{transform_indices = @transform_0, window_bounds = array<i64: 1, 32, 64>}, {pipeline_mode = #tpu.pipeline_mode<synchronous>, transform_indices = @transform_1, window_bounds = array<i64: 32, 2>}, {pipeline_mode = #tpu.pipeline_mode<synchronous>, transform_indices = @transform_2, window_bounds = array<i64: 32, 2>}, {transform_indices = @transform_3, window_bounds = array<i64: 1, 32, 64>}, {transform_indices = @transform_4, window_bounds = array<i64: 1, 2, 64>}]} {
    %c0 = arith.constant 0 : index
    %c0_0 = arith.constant 0 : index
    %c0_1 = arith.constant 0 : index
    %0 = vector.load %arg1[%c0, %c0_0, %c0_1] : memref<1x32x64xbf16, #tpu.memory_space<vmem>>, vector<1x32x64xbf16>
    %1 = vector.shape_cast %0 : vector<1x32x64xbf16> to vector<32x64xbf16>
    %2 = arith.extf %1 : vector<32x64xbf16> to vector<32x64xf32>
    %cst = arith.constant dense<0.000000e+00> : vector<32xf32>
    %3 = vector.multi_reduction <add>, %2, %cst [1] : vector<32x64xf32> to vector<32xf32>
    %4 = vector.shape_cast %3 : vector<32xf32> to vector<32x1xf32>
    %cst_2 = arith.constant 1.562500e-02 : f32
    %5 = vector.broadcast %cst_2 : f32 to vector<32x1xf32>
    %6 = arith.mulf %4, %5 : vector<32x1xf32>
    %c0_3 = arith.constant 0 : index
    %c0_4 = arith.constant 0 : index
    %7 = vector.load %arg2[%c0_3, %c0_4] : memref<32x2xf32, #tpu.memory_space<vmem>>, vector<32x2xf32>
    %8 = vector.broadcast %6 : vector<32x1xf32> to vector<32x2xf32>
    %9 = arith.mulf %7, %8 : vector<32x2xf32>
    %cst_5 = arith.constant dense<0.000000e+00> : vector<2xf32>
    %10 = vector.multi_reduction <add>, %9, %cst_5 [0] : vector<32x2xf32> to vector<2xf32>
    %11 = vector.shape_cast %10 : vector<2xf32> to vector<1x2xf32>
    %cst_6 = arith.constant 0.000000e+00 : f32
    %12 = vector.broadcast %cst_6 : f32 to vector<1x2xf32>
    %13 = arith.maximumf %11, %12 : vector<1x2xf32>
    %c0_7 = arith.constant 0 : index
    %c0_8 = arith.constant 0 : index
    %14 = vector.load %arg3[%c0_7, %c0_8] : memref<32x2xf32, #tpu.memory_space<vmem>>, vector<32x2xf32>
    %15 = vector.broadcast %13 : vector<1x2xf32> to vector<32x2xf32>
    %16 = arith.mulf %14, %15 : vector<32x2xf32>
    %cst_9 = arith.constant dense<0.000000e+00> : vector<32xf32>
    %17 = vector.multi_reduction <add>, %16, %cst_9 [1] : vector<32x2xf32> to vector<32xf32>
    %18 = vector.shape_cast %17 : vector<32xf32> to vector<32x1xf32>
    %cst_10 = arith.constant 2.000000e+00 : f32
    %19 = vector.broadcast %cst_10 : f32 to vector<32x1xf32>
    %20 = arith.mulf %19, %18 : vector<32x1xf32>
    %21 = arith.negf %20 : vector<32x1xf32>
    %22 = math.exp %21 : vector<32x1xf32>
    %cst_11 = arith.constant 1.000000e+00 : f32
    %23 = vector.broadcast %cst_11 : f32 to vector<32x1xf32>
    %24 = arith.addf %23, %22 : vector<32x1xf32>
    %25 = arith.divf %23, %24 : vector<32x1xf32>
    %26 = vector.broadcast %25 : vector<32x1xf32> to vector<32x64xf32>
    %27 = arith.mulf %2, %26 : vector<32x64xf32>
    %28 = arith.truncf %27 : vector<32x64xf32> to vector<32x64xbf16>
    %c0_12 = arith.constant 0 : index
    %c0_13 = arith.constant 0 : index
    %c0_14 = arith.constant 0 : index
    %29 = vector.load %arg4[%c0_12, %c0_13, %c0_14] : memref<1x32x64xbf16, #tpu.memory_space<vmem>>, vector<1x32x64xbf16>
    %30 = vector.shape_cast %29 : vector<1x32x64xbf16> to vector<32x64xbf16>
    %31 = vector.shape_cast %28 : vector<32x64xbf16> to vector<1x32x64xbf16>
    tpu.vector_store %arg4[%c0_12, %c0_13, %c0_14], %31 {strides = array<i32>} : memref<1x32x64xbf16, #tpu.memory_space<vmem>>, vector<1x32x64xbf16>,
    %cst_15 = arith.constant dense<0.000000e+00> : vector<64xf32>
    %32 = vector.multi_reduction <add>, %27, %cst_15 [0] : vector<32x64xf32> to vector<64xf32>
    %33 = vector.shape_cast %32 : vector<64xf32> to vector<1x64xf32>
    %cst_16 = arith.constant 3.200000e+01 : f32
    %34 = vector.broadcast %cst_16 : f32 to vector<1x64xf32>
    %35 = arith.divf %33, %34 : vector<1x64xf32>
    %cst_17 = arith.constant dense<0xFF800000> : vector<64xf32>
    %36 = vector.multi_reduction <maximumf>, %27, %cst_17 [0] : vector<32x64xf32> to vector<64xf32>
    %37 = vector.shape_cast %36 : vector<64xf32> to vector<1x64xf32>
    %38 = tpu.concatenate %35, %37 in 0 : vector<1x64xf32>, vector<1x64xf32> -> vector<2x64xf32>
    %39 = arith.truncf %38 : vector<2x64xf32> to vector<2x64xbf16>
    %c0_18 = arith.constant 0 : index
    %c0_19 = arith.constant 0 : index
    %c0_20 = arith.constant 0 : index
    %40 = vector.load %arg5[%c0_18, %c0_19, %c0_20] : memref<1x2x64xbf16, #tpu.memory_space<vmem>>, vector<1x2x64xbf16>
    %41 = vector.shape_cast %40 : vector<1x2x64xbf16> to vector<2x64xbf16>
    %42 = vector.shape_cast %39 : vector<2x64xbf16> to vector<1x2x64xbf16>
    tpu.vector_store %arg5[%c0_18, %c0_19, %c0_20], %42 {strides = array<i32>} : memref<1x2x64xbf16, #tpu.memory_space<vmem>>, vector<1x2x64xbf16>,
    return
  }
  func.func @transform_0(%arg0: i32) -> (i32, i32, i32) {
    %c0_i32 = arith.constant 0 : i32
    %c0_i32_0 = arith.constant 0 : i32
    %c0_i32_1 = arith.constant 0 : i32
    return %arg0, %c0_i32, %c0_i32_0 : i32, i32, i32
  }
  func.func @transform_1(%arg0: i32) -> (i32, i32) {
    %c0_i32 = arith.constant 0 : i32
    %c0_i32_0 = arith.constant 0 : i32
    %c0_i32_1 = arith.constant 0 : i32
    return %c0_i32, %c0_i32_0 : i32, i32
  }
  func.func @transform_2(%arg0: i32) -> (i32, i32) {
    %c0_i32 = arith.constant 0 : i32
    %c0_i32_0 = arith.constant 0 : i32
    %c0_i32_1 = arith.constant 0 : i32
    return %c0_i32, %c0_i32_0 : i32, i32
  }
  func.func @transform_3(%arg0: i32) -> (i32, i32, i32) {
    %c0_i32 = arith.constant 0 : i32
    %c0_i32_0 = arith.constant 0 : i32
    %c0_i32_1 = arith.constant 0 : i32
    return %arg0, %c0_i32, %c0_i32_0 : i32, i32, i32
  }
  func.func @transform_4(%arg0: i32) -> (i32, i32, i32) {
    %c0_i32 = arith.constant 0 : i32
    %c0_i32_0 = arith.constant 0 : i32
    %c0_i32_1 = arith.constant 0 : i32
    return %arg0, %c0_i32, %c0_i32_0 : i32, i32, i32
  }
}

module attributes {stable_mosaic.version = 11 : i64} {
  func.func @kernel(%arg0: i32, %arg1: memref<8x98xbf16, #tpu.memory_space<vmem>>, %arg2: memref<1x98x64xbf16, #tpu.memory_space<vmem>>, %arg3: memref<1x8x64xf32, #tpu.memory_space<vmem>>) attributes {dimension_semantics = [#tpu.dimension_semantics<parallel>], iteration_bounds = array<i64: 2>, scalar_prefetch = 0 : i64, scratch_operands = 0 : i64, tpu.core_type = #tpu.core_type<tc>, window_params = [{pipeline_mode = #tpu.pipeline_mode<synchronous>, transform_indices = @transform_0, window_bounds = array<i64: 8, 98>}, {transform_indices = @transform_1, window_bounds = array<i64: 1, 98, 64>}, {transform_indices = @transform_2, window_bounds = array<i64: 1, 8, 64>}]} {
    %c0 = arith.constant 0 : index
    %c0_0 = arith.constant 0 : index
    %0 = vector.load %arg1[%c0, %c0_0] : memref<8x98xbf16, #tpu.memory_space<vmem>>, vector<8x98xbf16>
    %c0_1 = arith.constant 0 : index
    %c0_2 = arith.constant 0 : index
    %c0_3 = arith.constant 0 : index
    %1 = vector.load %arg2[%c0_1, %c0_2, %c0_3] : memref<1x98x64xbf16, #tpu.memory_space<vmem>>, vector<1x98x64xbf16>
    %2 = vector.shape_cast %1 : vector<1x98x64xbf16> to vector<98x64xbf16>
    %cst = arith.constant dense<0.000000e+00> : vector<8x64xf32>
    %3 = tpu.matmul %0, %2, %cst {dimension_numbers = #tpu.dot_dimension_numbers<[1], [0], [0], [1], [0, 0, 1, 1], [], []>} : vector<8x98xbf16>, vector<98x64xbf16>, vector<8x64xf32> -> vector<8x64xf32>
    %c0_4 = arith.constant 0 : index
    %c0_5 = arith.constant 0 : index
    %c0_6 = arith.constant 0 : index
    %4 = vector.load %arg3[%c0_4, %c0_5, %c0_6] : memref<1x8x64xf32, #tpu.memory_space<vmem>>, vector<1x8x64xf32>
    %5 = vector.shape_cast %4 : vector<1x8x64xf32> to vector<8x64xf32>
    %6 = vector.shape_cast %3 : vector<8x64xf32> to vector<1x8x64xf32>
    tpu.vector_store %arg3[%c0_4, %c0_5, %c0_6], %6 {strides = array<i32>} : memref<1x8x64xf32, #tpu.memory_space<vmem>>, vector<1x8x64xf32>,
    return
  }
  func.func @transform_0(%arg0: i32) -> (i32, i32) {
    %c0_i32 = arith.constant 0 : i32
    %c0_i32_0 = arith.constant 0 : i32
    %c0_i32_1 = arith.constant 0 : i32
    return %c0_i32, %c0_i32_0 : i32, i32
  }
  func.func @transform_1(%arg0: i32) -> (i32, i32, i32) {
    %c0_i32 = arith.constant 0 : i32
    %c0_i32_0 = arith.constant 0 : i32
    %c0_i32_1 = arith.constant 0 : i32
    return %arg0, %c0_i32, %c0_i32_0 : i32, i32, i32
  }
  func.func @transform_2(%arg0: i32) -> (i32, i32, i32) {
    %c0_i32 = arith.constant 0 : i32
    %c0_i32_0 = arith.constant 0 : i32
    %c0_i32_1 = arith.constant 0 : i32
    return %arg0, %c0_i32, %c0_i32_0 : i32, i32, i32
  }
}

module attributes {stable_mosaic.version = 11 : i64} {
  func.func @_spatial_gate_kernel(%arg0: i32, %arg1: memref<1x32x64xbf16, #tpu.memory_space<vmem>>, %arg2: memref<1x1x64xf32, #tpu.memory_space<vmem>>, %arg3: memref<1x32x64xbf16, #tpu.memory_space<vmem>>, %arg4: memref<1x32x64xbf16, #tpu.memory_space<vmem>>) attributes {dimension_semantics = [#tpu.dimension_semantics<parallel>], iteration_bounds = array<i64: 2>, scalar_prefetch = 0 : i64, scratch_operands = 0 : i64, tpu.core_type = #tpu.core_type<tc>, window_params = [{transform_indices = @transform_0, window_bounds = array<i64: 1, 32, 64>}, {transform_indices = @transform_1, window_bounds = array<i64: 1, 1, 64>}, {transform_indices = @transform_2, window_bounds = array<i64: 1, 32, 64>}, {transform_indices = @transform_3, window_bounds = array<i64: 1, 32, 64>}]} {
    %c0 = arith.constant 0 : index
    %c0_0 = arith.constant 0 : index
    %c0_1 = arith.constant 0 : index
    %0 = vector.load %arg1[%c0, %c0_0, %c0_1] : memref<1x32x64xbf16, #tpu.memory_space<vmem>>, vector<1x32x64xbf16>
    %1 = arith.extf %0 : vector<1x32x64xbf16> to vector<1x32x64xf32>
    %c0_2 = arith.constant 0 : index
    %c0_3 = arith.constant 0 : index
    %c0_4 = arith.constant 0 : index
    %2 = vector.load %arg2[%c0_2, %c0_3, %c0_4] : memref<1x1x64xf32, #tpu.memory_space<vmem>>, vector<1x1x64xf32>
    %3 = arith.negf %2 : vector<1x1x64xf32>
    %4 = math.exp %3 : vector<1x1x64xf32>
    %cst = arith.constant 1.000000e+00 : f32
    %5 = vector.broadcast %cst : f32 to vector<1x1x64xf32>
    %6 = arith.addf %5, %4 : vector<1x1x64xf32>
    %7 = arith.divf %5, %6 : vector<1x1x64xf32>
    %c0_5 = arith.constant 0 : index
    %c0_6 = arith.constant 0 : index
    %c0_7 = arith.constant 0 : index
    %8 = vector.load %arg3[%c0_5, %c0_6, %c0_7] : memref<1x32x64xbf16, #tpu.memory_space<vmem>>, vector<1x32x64xbf16>
    %9 = arith.extf %8 : vector<1x32x64xbf16> to vector<1x32x64xf32>
    %10 = vector.broadcast %7 : vector<1x1x64xf32> to vector<1x32x64xf32>
    %11 = arith.mulf %1, %10 : vector<1x32x64xf32>
    %12 = arith.addf %9, %11 : vector<1x32x64xf32>
    %13 = arith.truncf %12 : vector<1x32x64xf32> to vector<1x32x64xbf16>
    %c0_8 = arith.constant 0 : index
    %c0_9 = arith.constant 0 : index
    %c0_10 = arith.constant 0 : index
    %14 = vector.load %arg4[%c0_8, %c0_9, %c0_10] : memref<1x32x64xbf16, #tpu.memory_space<vmem>>, vector<1x32x64xbf16>
    tpu.vector_store %arg4[%c0_8, %c0_9, %c0_10], %13 {strides = array<i32>} : memref<1x32x64xbf16, #tpu.memory_space<vmem>>, vector<1x32x64xbf16>,
    return
  }
  func.func @transform_0(%arg0: i32) -> (i32, i32, i32) {
    %c0_i32 = arith.constant 0 : i32
    %c0_i32_0 = arith.constant 0 : i32
    %c0_i32_1 = arith.constant 0 : i32
    return %arg0, %c0_i32, %c0_i32_0 : i32, i32, i32
  }
  func.func @transform_1(%arg0: i32) -> (i32, i32, i32) {
    %c0_i32 = arith.constant 0 : i32
    %c0_i32_0 = arith.constant 0 : i32
    %c0_i32_1 = arith.constant 0 : i32
    return %arg0, %c0_i32, %c0_i32_0 : i32, i32, i32
  }
  func.func @transform_2(%arg0: i32) -> (i32, i32, i32) {
    %c0_i32 = arith.constant 0 : i32
    %c0_i32_0 = arith.constant 0 : i32
    %c0_i32_1 = arith.constant 0 : i32
    return %arg0, %c0_i32, %c0_i32_0 : i32, i32, i32
  }
  func.func @transform_3(%arg0: i32) -> (i32, i32, i32) {
    %c0_i32 = arith.constant 0 : i32
    %c0_i32_0 = arith.constant 0 : i32
    %c0_i32_1 = arith.constant 0 : i32
    return %arg0, %c0_i32, %c0_i32_0 : i32, i32, i32
  }
}

module attributes {stable_mosaic.version = 11 : i64} {
  func.func @kernel(%arg0: i32, %arg1: memref<16x128xbf16, #tpu.memory_space<vmem>>, %arg2: memref<1x128x64xbf16, #tpu.memory_space<vmem>>, %arg3: memref<1x16x64xbf16, #tpu.memory_space<vmem>>) attributes {dimension_semantics = [#tpu.dimension_semantics<parallel>], iteration_bounds = array<i64: 2>, scalar_prefetch = 0 : i64, scratch_operands = 0 : i64, tpu.core_type = #tpu.core_type<tc>, window_params = [{pipeline_mode = #tpu.pipeline_mode<synchronous>, transform_indices = @transform_0, window_bounds = array<i64: 16, 128>}, {transform_indices = @transform_1, window_bounds = array<i64: 1, 128, 64>}, {transform_indices = @transform_2, window_bounds = array<i64: 1, 16, 64>}]} {
    %c0 = arith.constant 0 : index
    %c0_0 = arith.constant 0 : index
    %0 = vector.load %arg1[%c0, %c0_0] : memref<16x128xbf16, #tpu.memory_space<vmem>>, vector<16x128xbf16>
    %c0_1 = arith.constant 0 : index
    %c0_2 = arith.constant 0 : index
    %c0_3 = arith.constant 0 : index
    %1 = vector.load %arg2[%c0_1, %c0_2, %c0_3] : memref<1x128x64xbf16, #tpu.memory_space<vmem>>, vector<1x128x64xbf16>
    %2 = vector.shape_cast %1 : vector<1x128x64xbf16> to vector<128x64xbf16>
    %cst = arith.constant dense<0.000000e+00> : vector<16x64xf32>
    %3 = tpu.matmul %0, %2, %cst {dimension_numbers = #tpu.dot_dimension_numbers<[1], [0], [0], [1], [0, 0, 1, 1], [], []>} : vector<16x128xbf16>, vector<128x64xbf16>, vector<16x64xf32> -> vector<16x64xf32>
    %4 = arith.truncf %3 : vector<16x64xf32> to vector<16x64xbf16>
    %c0_4 = arith.constant 0 : index
    %c0_5 = arith.constant 0 : index
    %c0_6 = arith.constant 0 : index
    %5 = vector.load %arg3[%c0_4, %c0_5, %c0_6] : memref<1x16x64xbf16, #tpu.memory_space<vmem>>, vector<1x16x64xbf16>
    %6 = vector.shape_cast %5 : vector<1x16x64xbf16> to vector<16x64xbf16>
    %7 = vector.shape_cast %4 : vector<16x64xbf16> to vector<1x16x64xbf16>
    tpu.vector_store %arg3[%c0_4, %c0_5, %c0_6], %7 {strides = array<i32>} : memref<1x16x64xbf16, #tpu.memory_space<vmem>>, vector<1x16x64xbf16>,
    return
  }
  func.func @transform_0(%arg0: i32) -> (i32, i32) {
    %c0_i32 = arith.constant 0 : i32
    %c0_i32_0 = arith.constant 0 : i32
    %c0_i32_1 = arith.constant 0 : i32
    return %c0_i32, %c0_i32_0 : i32, i32
  }
  func.func @transform_1(%arg0: i32) -> (i32, i32, i32) {
    %c0_i32 = arith.constant 0 : i32
    %c0_i32_0 = arith.constant 0 : i32
    %c0_i32_1 = arith.constant 0 : i32
    return %arg0, %c0_i32, %c0_i32_0 : i32, i32, i32
  }
  func.func @transform_2(%arg0: i32) -> (i32, i32, i32) {
    %c0_i32 = arith.constant 0 : i32
    %c0_i32_0 = arith.constant 0 : i32
    %c0_i32_1 = arith.constant 0 : i32
    return %arg0, %c0_i32, %c0_i32_0 : i32, i32, i32
  }
}

module attributes {stable_mosaic.version = 11 : i64} {
  func.func @kernel(%arg0: i32, %arg1: memref<16x64xbf16, #tpu.memory_space<vmem>>, %arg2: memref<1x64x64xbf16, #tpu.memory_space<vmem>>, %arg3: memref<1x16x64xbf16, #tpu.memory_space<vmem>>) attributes {dimension_semantics = [#tpu.dimension_semantics<parallel>], iteration_bounds = array<i64: 2>, scalar_prefetch = 0 : i64, scratch_operands = 0 : i64, tpu.core_type = #tpu.core_type<tc>, window_params = [{pipeline_mode = #tpu.pipeline_mode<synchronous>, transform_indices = @transform_0, window_bounds = array<i64: 16, 64>}, {transform_indices = @transform_1, window_bounds = array<i64: 1, 64, 64>}, {transform_indices = @transform_2, window_bounds = array<i64: 1, 16, 64>}]} {
    %c0 = arith.constant 0 : index
    %c0_0 = arith.constant 0 : index
    %0 = vector.load %arg1[%c0, %c0_0] : memref<16x64xbf16, #tpu.memory_space<vmem>>, vector<16x64xbf16>
    %c0_1 = arith.constant 0 : index
    %c0_2 = arith.constant 0 : index
    %c0_3 = arith.constant 0 : index
    %1 = vector.load %arg2[%c0_1, %c0_2, %c0_3] : memref<1x64x64xbf16, #tpu.memory_space<vmem>>, vector<1x64x64xbf16>
    %2 = vector.shape_cast %1 : vector<1x64x64xbf16> to vector<64x64xbf16>
    %cst = arith.constant dense<0.000000e+00> : vector<16x64xf32>
    %3 = tpu.matmul %0, %2, %cst {dimension_numbers = #tpu.dot_dimension_numbers<[1], [0], [0], [1], [0, 0, 1, 1], [], []>} : vector<16x64xbf16>, vector<64x64xbf16>, vector<16x64xf32> -> vector<16x64xf32>
    %4 = arith.truncf %3 : vector<16x64xf32> to vector<16x64xbf16>
    %c0_4 = arith.constant 0 : index
    %c0_5 = arith.constant 0 : index
    %c0_6 = arith.constant 0 : index
    %5 = vector.load %arg3[%c0_4, %c0_5, %c0_6] : memref<1x16x64xbf16, #tpu.memory_space<vmem>>, vector<1x16x64xbf16>
    %6 = vector.shape_cast %5 : vector<1x16x64xbf16> to vector<16x64xbf16>
    %7 = vector.shape_cast %4 : vector<16x64xbf16> to vector<1x16x64xbf16>
    tpu.vector_store %arg3[%c0_4, %c0_5, %c0_6], %7 {strides = array<i32>} : memref<1x16x64xbf16, #tpu.memory_space<vmem>>, vector<1x16x64xbf16>,
    return
  }
  func.func @transform_0(%arg0: i32) -> (i32, i32) {
    %c0_i32 = arith.constant 0 : i32
    %c0_i32_0 = arith.constant 0 : i32
    %c0_i32_1 = arith.constant 0 : i32
    return %c0_i32, %c0_i32_0 : i32, i32
  }
  func.func @transform_1(%arg0: i32) -> (i32, i32, i32) {
    %c0_i32 = arith.constant 0 : i32
    %c0_i32_0 = arith.constant 0 : i32
    %c0_i32_1 = arith.constant 0 : i32
    return %arg0, %c0_i32, %c0_i32_0 : i32, i32, i32
  }
  func.func @transform_2(%arg0: i32) -> (i32, i32, i32) {
    %c0_i32 = arith.constant 0 : i32
    %c0_i32_0 = arith.constant 0 : i32
    %c0_i32_1 = arith.constant 0 : i32
    return %arg0, %c0_i32, %c0_i32_0 : i32, i32, i32
  }
}

module attributes {stable_mosaic.version = 11 : i64} {
  func.func @kernel(%arg0: i32, %arg1: memref<16x32xbf16, #tpu.memory_space<vmem>>, %arg2: memref<1x32x64xbf16, #tpu.memory_space<vmem>>, %arg3: memref<1x16x64xbf16, #tpu.memory_space<vmem>>) attributes {dimension_semantics = [#tpu.dimension_semantics<parallel>], iteration_bounds = array<i64: 2>, scalar_prefetch = 0 : i64, scratch_operands = 0 : i64, tpu.core_type = #tpu.core_type<tc>, window_params = [{pipeline_mode = #tpu.pipeline_mode<synchronous>, transform_indices = @transform_0, window_bounds = array<i64: 16, 32>}, {transform_indices = @transform_1, window_bounds = array<i64: 1, 32, 64>}, {transform_indices = @transform_2, window_bounds = array<i64: 1, 16, 64>}]} {
    %c0 = arith.constant 0 : index
    %c0_0 = arith.constant 0 : index
    %0 = vector.load %arg1[%c0, %c0_0] : memref<16x32xbf16, #tpu.memory_space<vmem>>, vector<16x32xbf16>
    %c0_1 = arith.constant 0 : index
    %c0_2 = arith.constant 0 : index
    %c0_3 = arith.constant 0 : index
    %1 = vector.load %arg2[%c0_1, %c0_2, %c0_3] : memref<1x32x64xbf16, #tpu.memory_space<vmem>>, vector<1x32x64xbf16>
    %2 = vector.shape_cast %1 : vector<1x32x64xbf16> to vector<32x64xbf16>
    %cst = arith.constant dense<0.000000e+00> : vector<16x64xf32>
    %3 = tpu.matmul %0, %2, %cst {dimension_numbers = #tpu.dot_dimension_numbers<[1], [0], [0], [1], [0, 0, 1, 1], [], []>} : vector<16x32xbf16>, vector<32x64xbf16>, vector<16x64xf32> -> vector<16x64xf32>
    %4 = arith.truncf %3 : vector<16x64xf32> to vector<16x64xbf16>
    %c0_4 = arith.constant 0 : index
    %c0_5 = arith.constant 0 : index
    %c0_6 = arith.constant 0 : index
    %5 = vector.load %arg3[%c0_4, %c0_5, %c0_6] : memref<1x16x64xbf16, #tpu.memory_space<vmem>>, vector<1x16x64xbf16>
    %6 = vector.shape_cast %5 : vector<1x16x64xbf16> to vector<16x64xbf16>
    %7 = vector.shape_cast %4 : vector<16x64xbf16> to vector<1x16x64xbf16>
    tpu.vector_store %arg3[%c0_4, %c0_5, %c0_6], %7 {strides = array<i32>} : memref<1x16x64xbf16, #tpu.memory_space<vmem>>, vector<1x16x64xbf16>,
    return
  }
  func.func @transform_0(%arg0: i32) -> (i32, i32) {
    %c0_i32 = arith.constant 0 : i32
    %c0_i32_0 = arith.constant 0 : i32
    %c0_i32_1 = arith.constant 0 : i32
    return %c0_i32, %c0_i32_0 : i32, i32
  }
  func.func @transform_1(%arg0: i32) -> (i32, i32, i32) {
    %c0_i32 = arith.constant 0 : i32
    %c0_i32_0 = arith.constant 0 : i32
    %c0_i32_1 = arith.constant 0 : i32
    return %arg0, %c0_i32, %c0_i32_0 : i32, i32, i32
  }
  func.func @transform_2(%arg0: i32) -> (i32, i32, i32) {
    %c0_i32 = arith.constant 0 : i32
    %c0_i32_0 = arith.constant 0 : i32
    %c0_i32_1 = arith.constant 0 : i32
    return %arg0, %c0_i32, %c0_i32_0 : i32, i32, i32
  }
}

module attributes {stable_mosaic.version = 11 : i64} {
  func.func @kernel(%arg0: i32, %arg1: memref<8x256xbf16, #tpu.memory_space<vmem>>, %arg2: memref<8x256xbf16, #tpu.memory_space<vmem>>) attributes {dimension_semantics = [#tpu.dimension_semantics<parallel>], iteration_bounds = array<i64: 4>, scalar_prefetch = 0 : i64, scratch_operands = 0 : i64, tpu.core_type = #tpu.core_type<tc>, window_params = [{transform_indices = @transform_0, window_bounds = array<i64: 8, 256>}, {transform_indices = @transform_1, window_bounds = array<i64: 8, 256>}]} {
    %c0 = arith.constant 0 : index
    %c0_0 = arith.constant 0 : index
    %0 = vector.load %arg1[%c0, %c0_0] : memref<8x256xbf16, #tpu.memory_space<vmem>>, vector<8x256xbf16>
    %1 = arith.extf %0 : vector<8x256xbf16> to vector<8x256xf32>
    %cst = arith.constant dense<0.000000e+00> : vector<8xf32>
    %2 = vector.multi_reduction <add>, %1, %cst [1] : vector<8x256xf32> to vector<8xf32>
    %3 = vector.shape_cast %2 : vector<8xf32> to vector<8x1xf32>
    %cst_1 = arith.constant 3.906250e-03 : f32
    %4 = vector.broadcast %cst_1 : f32 to vector<8x1xf32>
    %5 = arith.mulf %3, %4 : vector<8x1xf32>
    %6 = arith.mulf %1, %1 : vector<8x256xf32>
    %cst_2 = arith.constant dense<0.000000e+00> : vector<8xf32>
    %7 = vector.multi_reduction <add>, %6, %cst_2 [1] : vector<8x256xf32> to vector<8xf32>
    %8 = vector.shape_cast %7 : vector<8xf32> to vector<8x1xf32>
    %cst_3 = arith.constant 3.906250e-03 : f32
    %9 = vector.broadcast %cst_3 : f32 to vector<8x1xf32>
    %10 = arith.mulf %8, %9 : vector<8x1xf32>
    %11 = arith.mulf %5, %5 : vector<8x1xf32>
    %12 = arith.subf %10, %11 : vector<8x1xf32>
    %cst_4 = arith.constant 0.000000e+00 : f32
    %13 = vector.broadcast %cst_4 : f32 to vector<8x1xf32>
    %14 = arith.maximumf %12, %13 : vector<8x1xf32>
    %15 = vector.broadcast %5 : vector<8x1xf32> to vector<8x256xf32>
    %16 = arith.subf %1, %15 : vector<8x256xf32>
    %cst_5 = arith.constant 9.99999974E-6 : f32
    %17 = vector.broadcast %cst_5 : f32 to vector<8x1xf32>
    %18 = arith.addf %14, %17 : vector<8x1xf32>
    %19 = math.rsqrt %18 : vector<8x1xf32>
    %20 = vector.broadcast %19 : vector<8x1xf32> to vector<8x256xf32>
    %21 = arith.mulf %16, %20 : vector<8x256xf32>
    %cst_6 = arith.constant 0.000000e+00 : f32
    %22 = vector.broadcast %cst_6 : f32 to vector<8x256xf32>
    %23 = arith.maximumf %21, %22 : vector<8x256xf32>
    %24 = arith.truncf %23 : vector<8x256xf32> to vector<8x256xbf16>
    %c0_7 = arith.constant 0 : index
    %c0_8 = arith.constant 0 : index
    %25 = vector.load %arg2[%c0_7, %c0_8] : memref<8x256xbf16, #tpu.memory_space<vmem>>, vector<8x256xbf16>
    tpu.vector_store %arg2[%c0_7, %c0_8], %24 {strides = array<i32>} : memref<8x256xbf16, #tpu.memory_space<vmem>>, vector<8x256xbf16>,
    return
  }
  func.func @transform_0(%arg0: i32) -> (i32, i32) {
    %c0_i32 = arith.constant 0 : i32
    %c0_i32_0 = arith.constant 0 : i32
    return %arg0, %c0_i32 : i32, i32
  }
  func.func @transform_1(%arg0: i32) -> (i32, i32) {
    %c0_i32 = arith.constant 0 : i32
    %c0_i32_0 = arith.constant 0 : i32
    return %arg0, %c0_i32 : i32, i32
  }
}

module attributes {stable_mosaic.version = 11 : i64} {
  func.func @kernel(%arg0: i32, %arg1: memref<8x32xbf16, #tpu.memory_space<vmem>>, %arg2: memref<1x32x256xbf16, #tpu.memory_space<vmem>>, %arg3: memref<1x8x256xbf16, #tpu.memory_space<vmem>>) attributes {dimension_semantics = [#tpu.dimension_semantics<parallel>], iteration_bounds = array<i64: 2>, scalar_prefetch = 0 : i64, scratch_operands = 0 : i64, tpu.core_type = #tpu.core_type<tc>, window_params = [{pipeline_mode = #tpu.pipeline_mode<synchronous>, transform_indices = @transform_0, window_bounds = array<i64: 8, 32>}, {transform_indices = @transform_1, window_bounds = array<i64: 1, 32, 256>}, {transform_indices = @transform_2, window_bounds = array<i64: 1, 8, 256>}]} {
    %c0 = arith.constant 0 : index
    %c0_0 = arith.constant 0 : index
    %0 = vector.load %arg1[%c0, %c0_0] : memref<8x32xbf16, #tpu.memory_space<vmem>>, vector<8x32xbf16>
    %c0_1 = arith.constant 0 : index
    %c0_2 = arith.constant 0 : index
    %c0_3 = arith.constant 0 : index
    %1 = vector.load %arg2[%c0_1, %c0_2, %c0_3] : memref<1x32x256xbf16, #tpu.memory_space<vmem>>, vector<1x32x256xbf16>
    %2 = vector.shape_cast %1 : vector<1x32x256xbf16> to vector<32x256xbf16>
    %cst = arith.constant dense<0.000000e+00> : vector<8x256xf32>
    %3 = tpu.matmul %0, %2, %cst {dimension_numbers = #tpu.dot_dimension_numbers<[1], [0], [0], [1], [0, 0, 1, 1], [], []>} : vector<8x32xbf16>, vector<32x256xbf16>, vector<8x256xf32> -> vector<8x256xf32>
    %4 = arith.truncf %3 : vector<8x256xf32> to vector<8x256xbf16>
    %c0_4 = arith.constant 0 : index
    %c0_5 = arith.constant 0 : index
    %c0_6 = arith.constant 0 : index
    %5 = vector.load %arg3[%c0_4, %c0_5, %c0_6] : memref<1x8x256xbf16, #tpu.memory_space<vmem>>, vector<1x8x256xbf16>
    %6 = vector.shape_cast %5 : vector<1x8x256xbf16> to vector<8x256xbf16>
    %7 = vector.shape_cast %4 : vector<8x256xbf16> to vector<1x8x256xbf16>
    tpu.vector_store %arg3[%c0_4, %c0_5, %c0_6], %7 {strides = array<i32>} : memref<1x8x256xbf16, #tpu.memory_space<vmem>>, vector<1x8x256xbf16>,
    return
  }
  func.func @transform_0(%arg0: i32) -> (i32, i32) {
    %c0_i32 = arith.constant 0 : i32
    %c0_i32_0 = arith.constant 0 : i32
    %c0_i32_1 = arith.constant 0 : i32
    return %c0_i32, %c0_i32_0 : i32, i32
  }
  func.func @transform_1(%arg0: i32) -> (i32, i32, i32) {
    %c0_i32 = arith.constant 0 : i32
    %c0_i32_0 = arith.constant 0 : i32
    %c0_i32_1 = arith.constant 0 : i32
    return %arg0, %c0_i32, %c0_i32_0 : i32, i32, i32
  }
  func.func @transform_2(%arg0: i32) -> (i32, i32, i32) {
    %c0_i32 = arith.constant 0 : i32
    %c0_i32_0 = arith.constant 0 : i32
    %c0_i32_1 = arith.constant 0 : i32
    return %arg0, %c0_i32, %c0_i32_0 : i32, i32, i32
  }
}

module attributes {stable_mosaic.version = 11 : i64} {
  func.func @kernel(%arg0: i32, %arg1: memref<8x16xbf16, #tpu.memory_space<vmem>>, %arg2: memref<1x16x256xbf16, #tpu.memory_space<vmem>>, %arg3: memref<1x8x256xbf16, #tpu.memory_space<vmem>>) attributes {dimension_semantics = [#tpu.dimension_semantics<parallel>], iteration_bounds = array<i64: 2>, scalar_prefetch = 0 : i64, scratch_operands = 0 : i64, tpu.core_type = #tpu.core_type<tc>, window_params = [{pipeline_mode = #tpu.pipeline_mode<synchronous>, transform_indices = @transform_0, window_bounds = array<i64: 8, 16>}, {transform_indices = @transform_1, window_bounds = array<i64: 1, 16, 256>}, {transform_indices = @transform_2, window_bounds = array<i64: 1, 8, 256>}]} {
    %c0 = arith.constant 0 : index
    %c0_0 = arith.constant 0 : index
    %0 = vector.load %arg1[%c0, %c0_0] : memref<8x16xbf16, #tpu.memory_space<vmem>>, vector<8x16xbf16>
    %c0_1 = arith.constant 0 : index
    %c0_2 = arith.constant 0 : index
    %c0_3 = arith.constant 0 : index
    %1 = vector.load %arg2[%c0_1, %c0_2, %c0_3] : memref<1x16x256xbf16, #tpu.memory_space<vmem>>, vector<1x16x256xbf16>
    %2 = vector.shape_cast %1 : vector<1x16x256xbf16> to vector<16x256xbf16>
    %cst = arith.constant dense<0.000000e+00> : vector<8x256xf32>
    %3 = tpu.matmul %0, %2, %cst {dimension_numbers = #tpu.dot_dimension_numbers<[1], [0], [0], [1], [0, 0, 1, 1], [], []>} : vector<8x16xbf16>, vector<16x256xbf16>, vector<8x256xf32> -> vector<8x256xf32>
    %4 = arith.truncf %3 : vector<8x256xf32> to vector<8x256xbf16>
    %c0_4 = arith.constant 0 : index
    %c0_5 = arith.constant 0 : index
    %c0_6 = arith.constant 0 : index
    %5 = vector.load %arg3[%c0_4, %c0_5, %c0_6] : memref<1x8x256xbf16, #tpu.memory_space<vmem>>, vector<1x8x256xbf16>
    %6 = vector.shape_cast %5 : vector<1x8x256xbf16> to vector<8x256xbf16>
    %7 = vector.shape_cast %4 : vector<8x256xbf16> to vector<1x8x256xbf16>
    tpu.vector_store %arg3[%c0_4, %c0_5, %c0_6], %7 {strides = array<i32>} : memref<1x8x256xbf16, #tpu.memory_space<vmem>>, vector<1x8x256xbf16>,
    return
  }
  func.func @transform_0(%arg0: i32) -> (i32, i32) {
    %c0_i32 = arith.constant 0 : i32
    %c0_i32_0 = arith.constant 0 : i32
    %c0_i32_1 = arith.constant 0 : i32
    return %c0_i32, %c0_i32_0 : i32, i32
  }
  func.func @transform_1(%arg0: i32) -> (i32, i32, i32) {
    %c0_i32 = arith.constant 0 : i32
    %c0_i32_0 = arith.constant 0 : i32
    %c0_i32_1 = arith.constant 0 : i32
    return %arg0, %c0_i32, %c0_i32_0 : i32, i32, i32
  }
  func.func @transform_2(%arg0: i32) -> (i32, i32, i32) {
    %c0_i32 = arith.constant 0 : i32
    %c0_i32_0 = arith.constant 0 : i32
    %c0_i32_1 = arith.constant 0 : i32
    return %arg0, %c0_i32, %c0_i32_0 : i32, i32, i32
  }
}

module attributes {stable_mosaic.version = 11 : i64} {
  func.func @kernel(%arg0: i32, %arg1: memref<8x64xbf16, #tpu.memory_space<vmem>>, %arg2: memref<1x64x256xbf16, #tpu.memory_space<vmem>>, %arg3: memref<1x8x256xbf16, #tpu.memory_space<vmem>>) attributes {dimension_semantics = [#tpu.dimension_semantics<parallel>], iteration_bounds = array<i64: 2>, scalar_prefetch = 0 : i64, scratch_operands = 0 : i64, tpu.core_type = #tpu.core_type<tc>, window_params = [{pipeline_mode = #tpu.pipeline_mode<synchronous>, transform_indices = @transform_0, window_bounds = array<i64: 8, 64>}, {transform_indices = @transform_1, window_bounds = array<i64: 1, 64, 256>}, {transform_indices = @transform_2, window_bounds = array<i64: 1, 8, 256>}]} {
    %c0 = arith.constant 0 : index
    %c0_0 = arith.constant 0 : index
    %0 = vector.load %arg1[%c0, %c0_0] : memref<8x64xbf16, #tpu.memory_space<vmem>>, vector<8x64xbf16>
    %c0_1 = arith.constant 0 : index
    %c0_2 = arith.constant 0 : index
    %c0_3 = arith.constant 0 : index
    %1 = vector.load %arg2[%c0_1, %c0_2, %c0_3] : memref<1x64x256xbf16, #tpu.memory_space<vmem>>, vector<1x64x256xbf16>
    %2 = vector.shape_cast %1 : vector<1x64x256xbf16> to vector<64x256xbf16>
    %cst = arith.constant dense<0.000000e+00> : vector<8x256xf32>
    %3 = tpu.matmul %0, %2, %cst {dimension_numbers = #tpu.dot_dimension_numbers<[1], [0], [0], [1], [0, 0, 1, 1], [], []>} : vector<8x64xbf16>, vector<64x256xbf16>, vector<8x256xf32> -> vector<8x256xf32>
    %4 = arith.truncf %3 : vector<8x256xf32> to vector<8x256xbf16>
    %c0_4 = arith.constant 0 : index
    %c0_5 = arith.constant 0 : index
    %c0_6 = arith.constant 0 : index
    %5 = vector.load %arg3[%c0_4, %c0_5, %c0_6] : memref<1x8x256xbf16, #tpu.memory_space<vmem>>, vector<1x8x256xbf16>
    %6 = vector.shape_cast %5 : vector<1x8x256xbf16> to vector<8x256xbf16>
    %7 = vector.shape_cast %4 : vector<8x256xbf16> to vector<1x8x256xbf16>
    tpu.vector_store %arg3[%c0_4, %c0_5, %c0_6], %7 {strides = array<i32>} : memref<1x8x256xbf16, #tpu.memory_space<vmem>>, vector<1x8x256xbf16>,
    return
  }
  func.func @transform_0(%arg0: i32) -> (i32, i32) {
    %c0_i32 = arith.constant 0 : i32
    %c0_i32_0 = arith.constant 0 : i32
    %c0_i32_1 = arith.constant 0 : i32
    return %c0_i32, %c0_i32_0 : i32, i32
  }
  func.func @transform_1(%arg0: i32) -> (i32, i32, i32) {
    %c0_i32 = arith.constant 0 : i32
    %c0_i32_0 = arith.constant 0 : i32
    %c0_i32_1 = arith.constant 0 : i32
    return %arg0, %c0_i32, %c0_i32_0 : i32, i32, i32
  }
  func.func @transform_2(%arg0: i32) -> (i32, i32, i32) {
    %c0_i32 = arith.constant 0 : i32
    %c0_i32_0 = arith.constant 0 : i32
    %c0_i32_1 = arith.constant 0 : i32
    return %arg0, %c0_i32, %c0_i32_0 : i32, i32, i32
  }
}

module attributes {stable_mosaic.version = 11 : i64} {
  func.func @kernel(%arg0: i32, %arg1: memref<8x1024xbf16, #tpu.memory_space<vmem>>, %arg2: memref<8x1024xbf16, #tpu.memory_space<vmem>>) attributes {dimension_semantics = [#tpu.dimension_semantics<parallel>], iteration_bounds = array<i64: 2>, scalar_prefetch = 0 : i64, scratch_operands = 0 : i64, tpu.core_type = #tpu.core_type<tc>, window_params = [{transform_indices = @transform_0, window_bounds = array<i64: 8, 1024>}, {transform_indices = @transform_1, window_bounds = array<i64: 8, 1024>}]} {
    %c0 = arith.constant 0 : index
    %c0_0 = arith.constant 0 : index
    %0 = vector.load %arg1[%c0, %c0_0] : memref<8x1024xbf16, #tpu.memory_space<vmem>>, vector<8x1024xbf16>
    %1 = arith.extf %0 : vector<8x1024xbf16> to vector<8x1024xf32>
    %cst = arith.constant dense<0.000000e+00> : vector<8xf32>
    %2 = vector.multi_reduction <add>, %1, %cst [1] : vector<8x1024xf32> to vector<8xf32>
    %3 = vector.shape_cast %2 : vector<8xf32> to vector<8x1xf32>
    %cst_1 = arith.constant 9.765625E-4 : f32
    %4 = vector.broadcast %cst_1 : f32 to vector<8x1xf32>
    %5 = arith.mulf %3, %4 : vector<8x1xf32>
    %6 = arith.mulf %1, %1 : vector<8x1024xf32>
    %cst_2 = arith.constant dense<0.000000e+00> : vector<8xf32>
    %7 = vector.multi_reduction <add>, %6, %cst_2 [1] : vector<8x1024xf32> to vector<8xf32>
    %8 = vector.shape_cast %7 : vector<8xf32> to vector<8x1xf32>
    %cst_3 = arith.constant 9.765625E-4 : f32
    %9 = vector.broadcast %cst_3 : f32 to vector<8x1xf32>
    %10 = arith.mulf %8, %9 : vector<8x1xf32>
    %11 = arith.mulf %5, %5 : vector<8x1xf32>
    %12 = arith.subf %10, %11 : vector<8x1xf32>
    %cst_4 = arith.constant 0.000000e+00 : f32
    %13 = vector.broadcast %cst_4 : f32 to vector<8x1xf32>
    %14 = arith.maximumf %12, %13 : vector<8x1xf32>
    %15 = vector.broadcast %5 : vector<8x1xf32> to vector<8x1024xf32>
    %16 = arith.subf %1, %15 : vector<8x1024xf32>
    %cst_5 = arith.constant 9.99999974E-6 : f32
    %17 = vector.broadcast %cst_5 : f32 to vector<8x1xf32>
    %18 = arith.addf %14, %17 : vector<8x1xf32>
    %19 = math.rsqrt %18 : vector<8x1xf32>
    %20 = vector.broadcast %19 : vector<8x1xf32> to vector<8x1024xf32>
    %21 = arith.mulf %16, %20 : vector<8x1024xf32>
    %cst_6 = arith.constant 0.000000e+00 : f32
    %22 = vector.broadcast %cst_6 : f32 to vector<8x1024xf32>
    %23 = arith.maximumf %21, %22 : vector<8x1024xf32>
    %24 = arith.truncf %23 : vector<8x1024xf32> to vector<8x1024xbf16>
    %c0_7 = arith.constant 0 : index
    %c0_8 = arith.constant 0 : index
    %25 = vector.load %arg2[%c0_7, %c0_8] : memref<8x1024xbf16, #tpu.memory_space<vmem>>, vector<8x1024xbf16>
    tpu.vector_store %arg2[%c0_7, %c0_8], %24 {strides = array<i32>} : memref<8x1024xbf16, #tpu.memory_space<vmem>>, vector<8x1024xbf16>,
    return
  }
  func.func @transform_0(%arg0: i32) -> (i32, i32) {
    %c0_i32 = arith.constant 0 : i32
    %c0_i32_0 = arith.constant 0 : i32
    return %arg0, %c0_i32 : i32, i32
  }
  func.func @transform_1(%arg0: i32) -> (i32, i32) {
    %c0_i32 = arith.constant 0 : i32
    %c0_i32_0 = arith.constant 0 : i32
    return %arg0, %c0_i32 : i32, i32
  }
}

module attributes {stable_mosaic.version = 11 : i64} {
  func.func @kernel(%arg0: i32, %arg1: memref<8x392xbf16, #tpu.memory_space<vmem>>, %arg2: memref<1x392x1024xbf16, #tpu.memory_space<vmem>>, %arg3: memref<8x1xf32, #tpu.memory_space<vmem>>, %arg4: memref<1x8x1024xf32, #tpu.memory_space<vmem>>) attributes {dimension_semantics = [#tpu.dimension_semantics<parallel>], iteration_bounds = array<i64: 2>, scalar_prefetch = 0 : i64, scratch_operands = 0 : i64, tpu.core_type = #tpu.core_type<tc>, window_params = [{pipeline_mode = #tpu.pipeline_mode<synchronous>, transform_indices = @transform_0, window_bounds = array<i64: 8, 392>}, {transform_indices = @transform_1, window_bounds = array<i64: 1, 392, 1024>}, {pipeline_mode = #tpu.pipeline_mode<synchronous>, transform_indices = @transform_2, window_bounds = array<i64: 8, 1>}, {transform_indices = @transform_3, window_bounds = array<i64: 1, 8, 1024>}]} {
    %c0 = arith.constant 0 : index
    %c0_0 = arith.constant 0 : index
    %0 = vector.load %arg1[%c0, %c0_0] : memref<8x392xbf16, #tpu.memory_space<vmem>>, vector<8x392xbf16>
    %c0_1 = arith.constant 0 : index
    %c0_2 = arith.constant 0 : index
    %c0_3 = arith.constant 0 : index
    %1 = vector.load %arg2[%c0_1, %c0_2, %c0_3] : memref<1x392x1024xbf16, #tpu.memory_space<vmem>>, vector<1x392x1024xbf16>
    %2 = vector.shape_cast %1 : vector<1x392x1024xbf16> to vector<392x1024xbf16>
    %cst = arith.constant dense<0.000000e+00> : vector<8x1024xf32>
    %3 = tpu.matmul %0, %2, %cst {dimension_numbers = #tpu.dot_dimension_numbers<[1], [0], [0], [1], [0, 0, 1, 1], [], []>} : vector<8x392xbf16>, vector<392x1024xbf16>, vector<8x1024xf32> -> vector<8x1024xf32>
    %c0_4 = arith.constant 0 : index
    %c0_5 = arith.constant 0 : index
    %4 = vector.load %arg3[%c0_4, %c0_5] : memref<8x1xf32, #tpu.memory_space<vmem>>, vector<8x1xf32>
    %5 = vector.broadcast %4 : vector<8x1xf32> to vector<8x1024xf32>
    %6 = arith.addf %3, %5 : vector<8x1024xf32>
    %7 = math.tanh %6 : vector<8x1024xf32>
    %c0_6 = arith.constant 0 : index
    %c0_7 = arith.constant 0 : index
    %c0_8 = arith.constant 0 : index
    %8 = vector.load %arg4[%c0_6, %c0_7, %c0_8] : memref<1x8x1024xf32, #tpu.memory_space<vmem>>, vector<1x8x1024xf32>
    %9 = vector.shape_cast %8 : vector<1x8x1024xf32> to vector<8x1024xf32>
    %10 = vector.shape_cast %7 : vector<8x1024xf32> to vector<1x8x1024xf32>
    tpu.vector_store %arg4[%c0_6, %c0_7, %c0_8], %10 {strides = array<i32>} : memref<1x8x1024xf32, #tpu.memory_space<vmem>>, vector<1x8x1024xf32>,
    return
  }
  func.func @transform_0(%arg0: i32) -> (i32, i32) {
    %c0_i32 = arith.constant 0 : i32
    %c0_i32_0 = arith.constant 0 : i32
    %c0_i32_1 = arith.constant 0 : i32
    return %c0_i32, %c0_i32_0 : i32, i32
  }
  func.func @transform_1(%arg0: i32) -> (i32, i32, i32) {
    %c0_i32 = arith.constant 0 : i32
    %c0_i32_0 = arith.constant 0 : i32
    %c0_i32_1 = arith.constant 0 : i32
    return %arg0, %c0_i32, %c0_i32_0 : i32, i32, i32
  }
  func.func @transform_2(%arg0: i32) -> (i32, i32) {
    %c0_i32 = arith.constant 0 : i32
    %c0_i32_0 = arith.constant 0 : i32
    %c0_i32_1 = arith.constant 0 : i32
    return %c0_i32, %c0_i32_0 : i32, i32
  }
  func.func @transform_3(%arg0: i32) -> (i32, i32, i32) {
    %c0_i32 = arith.constant 0 : i32
    %c0_i32_0 = arith.constant 0 : i32
    %c0_i32_1 = arith.constant 0 : i32
    return %arg0, %c0_i32, %c0_i32_0 : i32, i32, i32
  }
}

</mosaic_0001>

<bundles_post_ra>
// kernel: generator_forward.24
= control target key start
LH: loop header
LB: loop body
LE: loop exit
PB: predicated region body
PF: predicated region fallthrough
CT: control target
= control target key end

     0   :  { %s756_s9 = smov 0   ;;  %s829_s0 = inlined_call_operand.vmem [shape: bf16[8,49], index: 0, kind: input, shape index: {}]   ;;  %s830_s1 = inlined_call_operand.vmem [shape: bf16[2,49,1024], index: 1, kind: input, shape index: {}]   ;;  %s831_s2 = inlined_call_operand.vmem [shape: bf16[2,8,1024], index: 2, kind: output, shape index: {}]  }
   0x1 LB: > { %s657_s10 = sadd.s32 4294967295, %s738_s9   ;;  %p661_p0 = scmp.ge.s32.totalorder %s738_s9, 1  ;;  %s738_s9 = sphi %s756_s9, %s12_s9  }
   0x2   : > { %p112_p1 = scmp.lt.s32.totalorder %s738_s9, 3 }
   0x4   : > { %p113_p2 = pnand %p661_p0, %p112_p1 }
   0x5   : > { %p134_p3 = scmp.lt.s32.totalorder (!%p113_p2), %s657_s10, 1  ;;  %v740_v0 = vmov (!%p113_p2), 0   ;;  %vm318_vm0 = vcmask (!%p113_p2), 1040384   ;;  %v145_v46 = vld [vmem:[%s829_s0] sm:$0xf] (!%p113_p2)  ;;  %vm314_vm1 = vcmask (!%p113_p2), 400384  }
   0x6   : > { %116 = sbr.rel (%p113_p2) target bundleno = 446 (0x1be), region = 28  ;;  %377 = vmatprep.mubr.bf16.mxu0 (!%p113_p2), %v740_v0  ;;  %418 = vmatprep.mubr.bf16.mxu1 (!%p113_p2), %v740_v0  ;;  %v789_v26 = vsel (!%p113_p2), %vm318_vm0, 65535, %v740_v0 }
   0xd   : > { %s833_s10 = smov (!%p134_p3, %s657_s10), 1 }
   0xe   : > { %s712_s11 = smul.u32 224, %s833_s10  ;;  %s707_s17 = sshll.u32 %s833_s10, 5 }
   0xf   : > { %s143_s20 = scalar_lea.vmem %s831_s2, %s707_s17 }
  0x10   : > { %s772_s14 = scalar_lea.vmem %s830_s1, %s712_s11 }
  0x11   : > { %v146_v1 = vld [vmem:[%s772_s14] sm:$0xff]  ;;  %v147_v3 = vld [vmem:[%s772_s14 + $0x8] sm:$0xff]  ;;  %v148_v34 = vld [vmem:[%s772_s14 + $0x10] sm:$0xff] }
  0x12   : > { %v150_v2 = vld [vmem:[%s772_s14 + $0x20] sm:$0xff]  ;;  %v151_v6 = vld [vmem:[%s772_s14 + $0x28] sm:$0xff]  ;;  %v152_v35 = vld [vmem:[%s772_s14 + $0x30] sm:$0xff] }
  0x13   : > { %v666_v4 = vcombine.high %v146_v1, %v150_v2  ;;  %v665_v5 = vcombine.low %v146_v1, %v150_v2  ;;  %v154_v7 = vld [vmem:[%s772_s14 + $0x40] sm:$0xff]  ;;  %v668_v9 = vcombine.high %v147_v3, %v151_v6  ;;  %v667_v10 = vcombine.low %v147_v3, %v151_v6  ;;  %v155_v12 = vld [vmem:[%s772_s14 + $0x48] sm:$0xff]  ;;  %v149_v36 = vld [vmem:[%s772_s14 + $0x18] sm:$0xff] }
  0x14   : > { %v158_v8 = vld [vmem:[%s772_s14 + $0x60] sm:$0xff]  ;;  %v159_v13 = vld [vmem:[%s772_s14 + $0x68] sm:$0xff]  ;;  %v153_v37 = vld [vmem:[%s772_s14 + $0x38] sm:$0xff]  ;;  %v670_v40 = vcombine.high %v148_v34, %v152_v35  ;;  %v669_v47 = vcombine.low %v148_v34, %v152_v35 }
  0x15   : > { %v674_v11 = vcombine.high %v154_v7, %v158_v8  ;;  %v162_v14 = vld [vmem:[%s772_s14 + $0x80] sm:$0xff]  ;;  %345 = vmatprep.subr.bf16.mxu0 %v666_v4  ;;  %v676_v15 = vcombine.high %v155_v12, %v159_v13  ;;  %v163_v17 = vld [vmem:[%s772_s14 + $0x88] sm:$0xff]  ;;  %386 = vmatprep.subr.bf16.mxu1 %v668_v9  ;;  %v673_v19 = vcombine.low %v154_v7, %v158_v8  ;;  %v156_v42 = vld [vmem:[%s772_s14 + $0x50] sm:$0xff] }
  0x16   : > { %v166_v16 = vld [vmem:[%s772_s14 + $0xa0] sm:$0xff]  ;;  %v167_v18 = vld [vmem:[%s772_s14 + $0xa8] sm:$0xff]  ;;  %346 = vmatpush1.bf16.msra.mxu0 %v665_v5  ;;  %387 = vmatpush1.bf16.msra.mxu1 %v667_v10  ;;  %v675_v22 = vcombine.low %v155_v12, %v159_v13  ;;  %v672_v41 = vcombine.high %v149_v36, %v153_v37  ;;  %v160_v43 = vld [vmem:[%s772_s14 + $0x70] sm:$0xff]  ;;  %v671_v48 = vcombine.low %v149_v36, %v153_v37 }
  0x17   : > { %v170_v20 = vld [vmem:[%s772_s14 + $0xc0] sm:$0x11]  ;;  %v171_v21 = vld [vmem:[%s772_s14 + $0xc8] sm:$0x11]  ;;  %347 = vmatprep.subr.bf16.mxu0 %v674_v11  ;;  %v682_v23 = vcombine.high %v162_v14, %v166_v16  ;;  %388 = vmatprep.subr.bf16.mxu1 %v676_v15  ;;  %v684_v25 = vcombine.high %v163_v17, %v167_v18  ;;  %v681_v28 = vcombine.low %v162_v14, %v166_v16  ;;  %v157_v44 = vld [vmem:[%s772_s14 + $0x58] sm:$0xff] }
  0x18   : > { %v690_v24 = vcombine.high %v170_v20, %v170_v20  ;;  %v692_v27 = vcombine.high %v171_v21, %v171_v21  ;;  %v689_v29 = vcombine.low %v170_v20, %v170_v20  ;;  %v683_v30 = vcombine.low %v163_v17, %v167_v18  ;;  %v161_v45 = vld [vmem:[%s772_s14 + $0x78] sm:$0xff]  ;;  %v164_v51 = vld [vmem:[%s772_s14 + $0x90] sm:$0xff] }
  0x19   : > { %v691_v32 = vcombine.low %v171_v21, %v171_v21  ;;  %v678_v49 = vcombine.high %v156_v42, %v160_v43  ;;  %v680_v50 = vcombine.high %v157_v44, %v161_v45  ;;  %v168_v52 = vld [vmem:[%s772_s14 + $0xb0] sm:$0xff]  ;;  %v165_v54 = vld [vmem:[%s772_s14 + $0x98] sm:$0xff]  ;;  %v677_v57 = vcombine.low %v156_v42, %v160_v43 }
  0x1a   : > { %348 = vmatpush1.bf16.msra.mxu0 %v673_v19  ;;  %389 = vmatpush1.bf16.msra.mxu1 %v675_v22  ;;  %v325_v31 = vand.u32 %v690_v24, %v789_v26  ;;  %v331_v33 = vand.u32 %v692_v27, %v789_v26  ;;  %v322_v38 = vand.u32 %v689_v29, %v789_v26  ;;  %v172_v53 = vld [vmem:[%s772_s14 + $0xd0] sm:$0x11]  ;;  %v169_v55 = vld [vmem:[%s772_s14 + $0xb8] sm:$0xff] }
  0x1b   : > { %349 = vmatprep.subr.bf16.mxu0 %v682_v23  ;;  %390 = vmatprep.subr.bf16.mxu1 %v684_v25  ;;  %v328_v39 = vand.u32 %v691_v32, %v789_v26  ;;  %v173_v56 = vld [vmem:[%s772_s14 + $0xd8] sm:$0x11]  ;;  %v679_v58 = vcombine.low %v157_v44, %v161_v45  ;;  %v686_v59 = vcombine.high %v164_v51, %v168_v52 }
  0x1c   : > { %v694_v60 = vcombine.high %v172_v53, %v172_v53  ;;  %v688_v61 = vcombine.high %v165_v54, %v169_v55  ;;  %v696_v62 = vcombine.high %v173_v56, %v173_v56  ;;  %v685_v63 = vcombine.low %v164_v51, %v168_v52 }
  0x1d   : > { %v693_v1 = vcombine.low %v172_v53, %v172_v53  ;;  %v687_v2 = vcombine.low %v165_v54, %v169_v55  ;;  %v695_v4 = vcombine.low %v173_v56, %v173_v56 }
  0x1e   : > { %350 = vmatpush1.bf16.msra.mxu0 %v681_v28  ;;  %391 = vmatpush1.bf16.msra.mxu1 %v683_v30  ;;  %v337_v3 = vand.u32 %v694_v60, %v789_v26  ;;  %v343_v5 = vand.u32 %v696_v62, %v789_v26 }
  0x1f   : > { %351 = vmatprep.subr.bf16.mxu0 %v325_v31  ;;  %392 = vmatprep.subr.bf16.mxu1 %v331_v33  ;;  %v334_v6 = vand.u32 %v693_v1, %v789_v26  ;;  %v340_v7 = vand.u32 %v695_v4, %v789_v26 }
  0x22   : > { %352 = vmatpush1.bf16.msra.mxu0 %v322_v38  ;;  %393 = vmatpush1.bf16.msra.mxu1 %v328_v39 }
  0x23   : > { %427 = vmatprep.subr.bf16.mxu0 %v670_v40  ;;  %468 = vmatprep.subr.bf16.mxu1 %v672_v41 }
  0x25   : > { %697 = vmatmul.mubr.msk.bf16.vlgmr.msra.gmra.mrb[0].mxu0 %vm314_vm1, %v145_v46  ;;  %698 = vmatmul.mubr.msk.bf16.vlgmr.msra.gmra.mrb[0].mxu1 %vm314_vm1, %v145_v46 }
  0x26   : > { %428 = vmatpush1.bf16.msra.mxu0 %v669_v47  ;;  %469 = vmatpush1.bf16.msra.mxu1 %v671_v48 }
  0x27   : > { %429 = vmatprep.subr.bf16.mxu0 %v678_v49  ;;  %470 = vmatprep.subr.bf16.mxu1 %v680_v50 }
  0x28   : > { %459 = vmatprep.mubr.bf16.mxu0 %v740_v0  ;;  %500 = vmatprep.mubr.bf16.mxu1 %v740_v0 }
  0x2a   : > { %430 = vmatpush1.bf16.msra.mxu0 %v677_v57  ;;  %471 = vmatpush1.bf16.msra.mxu1 %v679_v58 }
  0x2b   : > { %431 = vmatprep.subr.bf16.mxu0 %v686_v59  ;;  %472 = vmatprep.subr.bf16.mxu1 %v688_v61 }
  0x2e   : > { %432 = vmatpush1.bf16.msra.mxu0 %v685_v63  ;;  %473 = vmatpush1.bf16.msra.mxu1 %v687_v2 }
  0x2f   : > { %433 = vmatprep.subr.bf16.mxu0 %v337_v3  ;;  %474 = vmatprep.subr.bf16.mxu1 %v343_v5 }
  0x32   : > { %434 = vmatpush1.bf16.msra.mxu0 %v334_v6  ;;  %475 = vmatpush1.bf16.msra.mxu1 %v340_v7 }
  0x35   : > { %699 = vmatmul.mubr.msk.bf16.vlgmr.msra.gmra.mrb[4].mxu0 %vm314_vm1, %v145_v46  ;;  %700 = vmatmul.mubr.msk.bf16.vlgmr.msra.gmra.mrb[4].mxu1 %vm314_vm1, %v145_v46 }
  0xf8   : > { %v379_v0 = vpop.f32.mrb[0].mxu0  ;;  %v420_v10 = vpop.f32.mrb[0].mxu1 }
  0xf9   : > { %v519_v8 = vmul.f32 %v379_v0, %v379_v0  ;;  %v381_v9 = vpop.f32.mrb[1].mxu0  ;;  %v521_v14 = vmul.f32 %v420_v10, %v420_v10  ;;  %v422_v15 = vpop.f32.mrb[1].mxu1 }
  0xfa   : > { %v509_v11 = vadd.f32 %v381_v9, %v379_v0  ;;  %v520_v12 = vmul.f32 %v381_v9, %v381_v9  ;;  %v383_v13 = vpop.f32.mrb[2].mxu0  ;;  %v424_v17 = vpop.f32.mrb[2].mxu1  ;;  %v522_v20 = vmul.f32 %v422_v15, %v422_v15 }
  0xfb   : > { %v384_v16 = vpop.f32.mrb[3].mxu0  ;;  %v425_v21 = vpop.f32.mrb[3].mxu1 }
  0xfc   : > { %v527_v18 = vadd.f32 %v520_v12, %v519_v8  ;;  %v510_v19 = vadd.f32 %v509_v11, %v420_v10 }
  0xfe   : > { %v528_v22 = vadd.f32 %v527_v18, %v521_v14  ;;  %v511_v23 = vadd.f32 %v510_v19, %v422_v15 }
 0x100   : > { %v529_v24 = vadd.f32 %v528_v22, %v522_v20 }
 0x108   : > { %v461_v25 = vpop.f32.mrb[4].mxu0  ;;  %v502_v29 = vpop.f32.mrb[4].mxu1 }
 0x109   : > { %v512_v26 = vadd.f32 %v511_v23, %v461_v25  ;;  %v523_v27 = vmul.f32 %v461_v25, %v461_v25  ;;  %v463_v28 = vpop.f32.mrb[5].mxu0  ;;  %v504_v32 = vpop.f32.mrb[5].mxu1  ;;  %v525_v35 = vmul.f32 %v502_v29, %v502_v29 }
 0x10a   : > { %v524_v30 = vmul.f32 %v463_v28, %v463_v28  ;;  %v465_v31 = vpop.f32.mrb[6].mxu0  ;;  %v506_v37 = vpop.f32.mrb[6].mxu1  ;;  %v526_v42 = vmul.f32 %v504_v32, %v504_v32 }
 0x10b   : > { %v530_v33 = vadd.f32 %v529_v24, %v523_v27  ;;  %v513_v34 = vadd.f32 %v512_v26, %v463_v28  ;;  %v466_v36 = vpop.f32.mrb[7].mxu0  ;;  %v507_v38 = vpop.f32.mrb[7].mxu1 }
 0x10d   : > { %v514_v39 = vadd.f32 %v513_v34, %v502_v29  ;;  %v531_v40 = vadd.f32 %v530_v33, %v524_v30 }
 0x10f   : > { %v515_v41 = vadd.f32 %v514_v39, %v504_v32  ;;  %v532_v43 = vadd.f32 %v531_v40, %v525_v35 }
 0x111   : > { %516 = vadd.xlane.f32.xlu0 %v515_v41  ;;  %v533_v44 = vadd.f32 %v532_v43, %v526_v42 }
 0x115   : > { %534 = vadd.xlane.f32.xlu0 %v533_v44 }
 0x19e   : > { %v517_v45 = vpop.xlane.xlu0 %516 }
 0x19f   : > { %v518_v46 = vmul.f32 0.0009765625, %v517_v45 }
 0x1a1   : > { %v537_v48 = vmul.f32 %v518_v46, %v518_v46  ;;  %v540_v53 = vsub.f32 %v379_v0, %v518_v46  ;;  %v541_v54 = vsub.f32 %v381_v9, %v518_v46  ;;  %v542_v55 = vsub.f32 %v420_v10, %v518_v46 }
 0x1a2   : > { %v535_v47 = vpop.xlane.xlu0 %534  ;;  %v543_v56 = vsub.f32 %v422_v15, %v518_v46  ;;  %v544_v58 = vsub.f32 %v461_v25, %v518_v46  ;;  %v545_v59 = vsub.f32 %v463_v28, %v518_v46  ;;  %v546_v60 = vsub.f32 %v502_v29, %v518_v46 }
 0x1a3   : > { %v536_v49 = vmul.f32 0.0009765625, %v535_v47  ;;  %v547_v61 = vsub.f32 %v504_v32, %v518_v46 }
 0x1a5   : > { %v538_v50 = vsub.f32 %v536_v49, %v537_v48 }
 0x1a7   : > { %v539_v51 = vmax.f32 %v538_v50, 0.0 }
 0x1a9   : > { %v548_v52 = vadd.f32 1e-05, %v539_v51 }
 0x1ab   : > { %730 = vrsqrt.f32 %v548_v52 }
 0x1b5   : > { %v731_v57 = vpop.eup %730 }
 0x1b6   : > { %v550_v62 = vmul.f32 %v731_v57, %v540_v53  ;;  %v551_v63 = vmul.f32 %v731_v57, %v541_v54  ;;  %v552_v1 = vmul.f32 %v731_v57, %v542_v55  ;;  %v553_v2 = vmul.f32 %v731_v57, %v543_v56 }
 0x1b7   : > { %v554_v3 = vmul.f32 %v731_v57, %v544_v58  ;;  %v555_v4 = vmul.f32 %v731_v57, %v545_v59  ;;  %v556_v5 = vmul.f32 %v731_v57, %v546_v60  ;;  %v557_v6 = vmul.f32 %v731_v57, %v547_v61 }
 0x1b8   : > { %v558_v7 = vmax.f32 %v550_v62, 0.0  ;;  %v559_v8 = vmax.f32 %v551_v63, 0.0  ;;  %v560_v0 = vmax.f32 %v552_v1, 0.0  ;;  %v561_v9 = vmax.f32 %v553_v2, 0.0 }
 0x1b9   : > { %v562_v10 = vmax.f32 %v554_v3, 0.0  ;;  %v563_v11 = vmax.f32 %v555_v4, 0.0  ;;  %v564_v12 = vmax.f32 %v556_v5, 0.0  ;;  %v565_v13 = vmax.f32 %v557_v6, 0.0 }
 0x1ba   : > { %v708_v14 = vpack.c.bf16 %v559_v8, %v558_v7  ;;  %v709_v15 = vpack.c.bf16 %v561_v9, %v560_v0 }
 0x1bb   : > { %v710_v16 = vpack.c.bf16 %v563_v11, %v562_v10  ;;  %v711_v17 = vpack.c.bf16 %v565_v13, %v564_v12 }
 0x1bc   : > { %598 = vst [vmem:[%s143_s20] sm:$0xff] %v708_v14  ;;  %599 = vst [vmem:[%s143_s20 + $0x8] sm:$0xff] %v709_v15 }
 0x1bd   : > { %600 = vst [vmem:[%s143_s20 + $0x10] sm:$0xff] %v710_v16  ;;  %601 = vst [vmem:[%s143_s20 + $0x18] sm:$0xff] %v711_v17 }
 0x1be PF: > { %s12_s9 = sadd.s32 1, %s738_s9  }
 0x1bf   : > { %p9_p4 = scmp.ge.s32.totalorder %s12_s9, 4  }
 0x1c1   :  { %11 = sbr.rel (!%p9_p4) target bundleno = 1 (0x1), region = 58 }

// kernel: generator_forward.25
= control target key start
LH: loop header
LB: loop body
LE: loop exit
PB: predicated region body
PF: predicated region fallthrough
CT: control target
= control target key end

     0   :  { %s452_s9 = smov 0   ;;  %s476_s0 = inlined_call_operand.vmem [shape: bf16[16,72], index: 0, kind: input, shape index: {}]   ;;  %s477_s1 = inlined_call_operand.vmem [shape: bf16[2,72,256], index: 1, kind: input, shape index: {}]   ;;  %s478_s2 = inlined_call_operand.vmem [shape: bf16[2,16,256], index: 2, kind: output, shape index: {}]  }
   0x1 LB: > { %s371_s10 = sadd.s32 4294967295, %s434_s9   ;;  %p375_p0 = scmp.ge.s32.totalorder %s434_s9, 1  ;;  %s434_s9 = sphi %s452_s9, %s12_s9  }
   0x2   : > { %p112_p1 = scmp.lt.s32.totalorder %s434_s9, 3 }
   0x4   : > { %p113_p2 = pnand %p375_p0, %p112_p1 }
   0x5   : > { %p134_p3 = scmp.lt.s32.totalorder (!%p113_p2), %s371_s10, 1  ;;  %v436_v0 = vmov (!%p113_p2), 0   ;;  %vm210_vm0 = vcmask (!%p113_p2), 1043456   ;;  %v423_v13 = vld [vmem:[%s476_s0] sm:$0xff] (!%p113_p2)   ;;  %vm206_vm1 = vcmask (!%p113_p2), 588800  }
   0x6   : > { %116 = sbr.rel (%p113_p2) target bundleno = 427 (0x1ab), region = 28  ;;  %249 = vmatprep.mubr.bf16.mxu0 (!%p113_p2), %v436_v0 }
   0xd   : > { %s480_s10 = smov (!%p134_p3, %s371_s10), 1 }
   0xe   : > { %s399_s11 = smul.u32 72, %s480_s10  ;;  %s396_s17 = sshll.u32 %s480_s10, 4 }
   0xf   : > { %s143_s20 = scalar_lea.vmem %s478_s2, %s396_s17 }
  0x10   : > { %s138_s14 = scalar_lea.vmem %s477_s1, %s399_s11 }
  0x11   : > { %v409_v1 = vld [vmem:[%s138_s14 + $0x4] ss:$8 sps:$4 sm:$0xff]   ;;  %v411_v2 = vld [vmem:[%s138_s14] ss:$8 sps:$4 sm:$0xff]   ;;  %v412_v3 = vld [vmem:[%s138_s14 + $0x14] ss:$8 sps:$4 sm:$0xff]  }
  0x12   : > { %217 = vmatprep.subr.bf16.mxu0 %v409_v1  ;;  %v414_v4 = vld [vmem:[%s138_s14 + $0x10] ss:$8 sps:$4 sm:$0xff]   ;;  %v415_v5 = vld [vmem:[%s138_s14 + $0x24] ss:$8 sps:$4 sm:$0xff]   ;;  %v417_v6 = vld [vmem:[%s138_s14 + $0x20] ss:$8 sps:$4 sm:$0xff]  }
  0x13   : > { %218 = vmatpush1.bf16.msra.mxu0 %v411_v2  ;;  %v418_v7 = vld [vmem:[%s138_s14 + $0x34] ss:$8 sps:$4 sm:$0xff]   ;;  %v155_v8 = vld [vmem:[%s138_s14 + $0x40] sm:$0xff]  ;;  %v420_v9 = vld [vmem:[%s138_s14 + $0x30] ss:$8 sps:$4 sm:$0xff]  }
  0x14   : > { %219 = vmatprep.subr.bf16.mxu0 %v412_v3  ;;  %v389_v10 = vcombine.high %v155_v8, %v155_v8  ;;  %v388_v11 = vcombine.low %v155_v8, %v155_v8 }
  0x16   : > { %v212_v12 = vsel %vm210_vm0, %v388_v11, 0 }
  0x17   : > { %220 = vmatpush1.bf16.msra.mxu0 %v414_v4 }
  0x18   : > { %221 = vmatprep.subr.bf16.mxu0 %v415_v5 }
  0x1b   : > { %222 = vmatpush1.bf16.msra.mxu0 %v417_v6 }
  0x1c   : > { %223 = vmatprep.subr.bf16.mxu0 %v418_v7 }
  0x1f   : > { %224 = vmatpush1.bf16.msra.mxu0 %v420_v9 }
  0x20   : > { %390 = vmatprep.subr.msk.bf16.mxu0 %vm210_vm0, %v389_v10 }
  0x23   : > { %226 = vmatpush1.bf16.msra.mxu0 %v212_v12 }
  0x26   : > { %391 = vmatmul.mubr.msk.bf16.vlgmr.msra.gmra.mrb[0].mxu0 %vm206_vm1, %v423_v13 }
  0xf9   : > { %v251_v14 = vpop.f32.mrb[0].mxu0 }
  0xfa   : > { %v253_v15 = vpop.f32.mrb[1].mxu0  ;;  %v268_v16 = vmul.f32 %v251_v14, %v251_v14 }
  0xfb   : > { %v255_v17 = vpop.f32.mrb[2].mxu0  ;;  %v260_v18 = vadd.f32 %v253_v15, %v251_v14  ;;  %v269_v19 = vmul.f32 %v253_v15, %v253_v15 }
  0xfc   : > { %v257_v20 = vpop.f32.mrb[3].mxu0  ;;  %v270_v21 = vmul.f32 %v255_v17, %v255_v17 }
  0xfd   : > { %v271_v22 = vmul.f32 %v257_v20, %v257_v20  ;;  %261 = vadd.xlane.f32.xlu0 %v260_v18  ;;  %v272_v23 = vadd.f32 %v269_v19, %v268_v16  ;;  %v263_v24 = vadd.f32 %v257_v20, %v255_v17 }
  0xff   : > { %273 = vadd.xlane.f32.xlu1 %v272_v23  ;;  %v275_v25 = vadd.f32 %v271_v22, %v270_v21 }
 0x101   : > { %264 = vadd.xlane.f32.xlu0 %v263_v24 }
 0x103   : > { %276 = vadd.xlane.f32.xlu1 %v275_v25 }
 0x18a   : > { %v262_v26 = vpop.xlane.xlu0 %261 }
 0x18b   : > { %v266_v27 = vmul.f32 0.00390625, %v262_v26 }
 0x18c   : > { %v274_v28 = vpop.xlane.xlu1 %273 }
 0x18d   : > { %v278_v29 = vmul.f32 0.00390625, %v274_v28  ;;  %v280_v30 = vmul.f32 %v266_v27, %v266_v27  ;;  %v286_v42 = vsub.f32 %v251_v14, %v266_v27  ;;  %v287_v43 = vsub.f32 %v253_v15, %v266_v27 }
 0x18e   : > { %v265_v31 = vpop.xlane.xlu0 %264 }
 0x18f   : > { %v282_v32 = vsub.f32 %v278_v29, %v280_v30  ;;  %v267_v33 = vmul.f32 0.00390625, %v265_v31 }
 0x190   : > { %v277_v34 = vpop.xlane.xlu1 %276 }
 0x191   : > { %v284_v35 = vmax.f32 %v282_v32, 0.0  ;;  %v279_v36 = vmul.f32 0.00390625, %v277_v34  ;;  %v281_v37 = vmul.f32 %v267_v33, %v267_v33  ;;  %v288_v49 = vsub.f32 %v255_v17, %v267_v33 }
 0x192   : > { %v289_v50 = vsub.f32 %v257_v20, %v267_v33 }
 0x193   : > { %v290_v38 = vadd.f32 1e-05, %v284_v35  ;;  %v283_v39 = vsub.f32 %v279_v36, %v281_v37 }
 0x195   : > { %424 = vrsqrt.f32 %v290_v38  ;;  %v285_v40 = vmax.f32 %v283_v39, 0.0 }
 0x197   : > { %v291_v41 = vadd.f32 1e-05, %v285_v40 }
 0x199   : > { %426 = vrsqrt.f32 %v291_v41 }
 0x19f   : > { %v425_v44 = vpop.eup %424 }
 0x1a0   : > { %v294_v45 = vmul.f32 %v425_v44, %v286_v42  ;;  %v295_v46 = vmul.f32 %v425_v44, %v287_v43 }
 0x1a2   : > { %v298_v47 = vmax.f32 %v294_v45, 0.0  ;;  %v299_v48 = vmax.f32 %v295_v46, 0.0 }
 0x1a3   : > { %v427_v51 = vpop.eup %426 }
 0x1a4   : > { %v397_v52 = vpack.c.bf16 %v299_v48, %v298_v47  ;;  %v296_v53 = vmul.f32 %v427_v51, %v288_v49  ;;  %v297_v54 = vmul.f32 %v427_v51, %v289_v50 }
 0x1a6   : > { %314 = vst [vmem:[%s143_s20] sm:$0xff] %v397_v52  ;;  %v300_v55 = vmax.f32 %v296_v53, 0.0  ;;  %v301_v56 = vmax.f32 %v297_v54, 0.0 }
 0x1a8   : > { %v398_v57 = vpack.c.bf16 %v301_v56, %v300_v55 }
 0x1aa   : > { %315 = vst [vmem:[%s143_s20 + $0x8] sm:$0xff] %v398_v57 }
 0x1ab PF: > { %s12_s9 = sadd.s32 1, %s434_s9  }
 0x1ac   : > { %p9_p4 = scmp.ge.s32.totalorder %s12_s9, 4  }
 0x1ae   :  { %11 = sbr.rel (!%p9_p4) target bundleno = 1 (0x1), region = 58 }

// kernel: generator_forward.26
= control target key start
LH: loop header
LB: loop body
LE: loop exit
PB: predicated region body
PF: predicated region fallthrough
CT: control target
= control target key end

     0   :  { %s549_s9 = smov 0   ;;  %s619_s0 = inlined_call_operand.vmem [shape: bf16[32,144], index: 0, kind: input, shape index: {}]   ;;  %s620_s1 = inlined_call_operand.vmem [shape: bf16[2,144,64], index: 1, kind: input, shape index: {}]   ;;  %s621_s2 = inlined_call_operand.vmem [shape: bf16[2,32,64], index: 2, kind: output, shape index: {}]  }
   0x1 LB: > { %s440_s10 = sadd.s32 4294967295, %s531_s9   ;;  %p444_p0 = scmp.ge.s32.totalorder %s531_s9, 1  ;;  %s531_s9 = sphi %s549_s9, %s12_s9  }
   0x2   : > { %p112_p1 = scmp.lt.s32.totalorder %s531_s9, 3 }
   0x4   : > { %p113_p2 = pnand %p444_p0, %p112_p1 }
   0x5   : > { %p134_p3 = scmp.lt.s32.totalorder (!%p113_p2), %s440_s10, 1  ;;  %v533_v0 = vmov (!%p113_p2), 0   ;;  %v513_v1 = vld [vmem:[%s619_s0 + $0x4] ss:$8 sps:$4 sm:$0xff] (!%p113_p2)   ;;  %vm239_vm0 = vcmask (!%p113_p2), 130048   ;;  %vm295_vm1 = vcmask (!%p113_p2), 523264  }
   0x6   : > { %116 = sbr.rel (%p113_p2) target bundleno = 447 (0x1bf), region = 28  ;;  %246 = vmatprep.subr.bf16.mxu0 (!%p113_p2), %v533_v0  ;;  %474 = vmatprep.subr.bf16.mxu1 (!%p113_p2), %v533_v0  ;;  %v516_v2 = vld [vmem:[%s619_s0 + $0x14] ss:$8 sps:$4 sm:$0xff] (!%p113_p2)   ;;  %v511_v12 = vld [vmem:[%s619_s0] ss:$8 sps:$4 sm:$0xff] (!%p113_p2)   ;;  %vm380_vm2 = vcmask (!%p113_p2), 519168  }
   0x7   : > { %461 = vmatprep.mubr.msk.bf16.mxu0 (!%p113_p2), %vm239_vm0, %v513_v1  ;;  %462 = vmatprep.mubr.msk.bf16.mxu1 (!%p113_p2), %vm239_vm0, %v516_v2  ;;  %v514_v13 = vld [vmem:[%s619_s0 + $0x10] ss:$8 sps:$4 sm:$0xff] (!%p113_p2)  }
   0xd   : > { %s623_s10 = smov (!%p134_p3, %s440_s10), 1 }
   0xe   : > { %s492_s15 = smul.u32 72, %s623_s10  ;;  %s469_s23 = sshll.u32 %s623_s10, 4 }
   0xf   : > { %s143_s26 = scalar_lea.vmem %s621_s2, %s469_s23 }
  0x10   : > { %s569_s18 = scalar_lea.vmem %s620_s1, %s492_s15 }
  0x11   : > { %v502_v3 = vld [vmem:[%s569_s18] sm:$0xff]   ;;  %v503_v4 = vld [vmem:[%s569_s18 + $0x8] sm:$0xff]   ;;  %v504_v5 = vld [vmem:[%s569_s18 + $0x10] sm:$0xff]  }
  0x12   : > { %247 = vmatpush1.bf16.msra.mxu0 %v502_v3  ;;  %483 = vmatpush1.bf16.msra.mxu1 %v502_v3  ;;  %v505_v6 = vld [vmem:[%s569_s18 + $0x18] sm:$0xff]   ;;  %v506_v7 = vld [vmem:[%s569_s18 + $0x20] sm:$0xff]   ;;  %v507_v8 = vld [vmem:[%s569_s18 + $0x28] sm:$0xff]  }
  0x13   : > { %248 = vmatprep.subr.bf16.mxu0 %v533_v0  ;;  %475 = vmatprep.subr.bf16.mxu1 %v533_v0  ;;  %v508_v9 = vld [vmem:[%s569_s18 + $0x30] sm:$0xff]   ;;  %v509_v10 = vld [vmem:[%s569_s18 + $0x38] sm:$0xff]   ;;  %v510_v11 = vld [vmem:[%s569_s18 + $0x40] sm:$0xff]  }
  0x16   : > { %249 = vmatpush1.bf16.msra.mxu0 %v503_v4  ;;  %484 = vmatpush1.bf16.msra.mxu1 %v503_v4 }
  0x17   : > { %250 = vmatprep.subr.bf16.mxu0 %v533_v0  ;;  %476 = vmatprep.subr.bf16.mxu1 %v533_v0 }
  0x1a   : > { %251 = vmatpush1.bf16.msra.mxu0 %v504_v5  ;;  %485 = vmatpush1.bf16.msra.mxu1 %v504_v5 }
  0x1b   : > { %252 = vmatprep.subr.bf16.mxu0 %v533_v0  ;;  %477 = vmatprep.subr.bf16.mxu1 %v533_v0 }
  0x1e   : > { %253 = vmatpush1.bf16.msra.mxu0 %v505_v6  ;;  %486 = vmatpush1.bf16.msra.mxu1 %v505_v6 }
  0x1f   : > { %254 = vmatprep.subr.bf16.mxu0 %v533_v0  ;;  %478 = vmatprep.subr.bf16.mxu1 %v533_v0 }
  0x22   : > { %255 = vmatpush1.bf16.msra.mxu0 %v506_v7  ;;  %487 = vmatpush1.bf16.msra.mxu1 %v506_v7 }
  0x23   : > { %256 = vmatprep.subr.bf16.mxu0 %v533_v0  ;;  %479 = vmatprep.subr.bf16.mxu1 %v533_v0 }
  0x26   : > { %257 = vmatpush1.bf16.msra.mxu0 %v507_v8  ;;  %488 = vmatpush1.bf16.msra.mxu1 %v507_v8 }
  0x27   : > { %258 = vmatprep.subr.bf16.mxu0 %v533_v0  ;;  %480 = vmatprep.subr.bf16.mxu1 %v533_v0 }
  0x2a   : > { %259 = vmatpush1.bf16.msra.mxu0 %v508_v9  ;;  %489 = vmatpush1.bf16.msra.mxu1 %v508_v9 }
  0x2b   : > { %260 = vmatprep.subr.bf16.mxu0 %v533_v0  ;;  %481 = vmatprep.subr.bf16.mxu1 %v533_v0 }
  0x2e   : > { %261 = vmatpush1.bf16.msra.mxu0 %v509_v10  ;;  %490 = vmatpush1.bf16.msra.mxu1 %v509_v10 }
  0x2f   : > { %262 = vmatprep.subr.bf16.mxu0 %v533_v0  ;;  %482 = vmatprep.subr.bf16.mxu1 %v533_v0 }
  0x32   : > { %263 = vmatpush1.bf16.msra.mxu0 %v510_v11  ;;  %491 = vmatpush1.bf16.msra.mxu1 %v510_v11 }
  0x35   : > { %279 = vmatmul.mubr.bf16.vlgmr.msra.gmra.mrb[0].mxu0 %v511_v12  ;;  %287 = vmatmul.mubr.bf16.vlgmr.msra.gmra.mrb[0].mxu1 %v514_v13 }
 0x108   : > { %v586_v14 = vpop.f32.mrb[0].mxu0  ;;  %v588_v15 = vpop.f32.mrb[0].mxu1 }
 0x109   : > { %v282_v16 = vpop.f32.mrb[1].mxu0  ;;  %v290_v17 = vpop.f32.mrb[1].mxu1  ;;  %v302_v18 = vsel %vm295_vm1, %v588_v15, 0.0  ;;  %v296_v19 = vsel %vm295_vm1, %v586_v14, 0.0  ;;  %v312_v27 = vmul.f32 %v586_v14, %v586_v14  ;;  %v314_v31 = vmul.f32 %v588_v15, %v588_v15 }
 0x10a   : > { %303 = vadd.xlane.f32.xlu1 %v302_v18  ;;  %v594_v20 = vpop.f32.mrb[2].mxu1  ;;  %297 = vadd.xlane.f32.xlu0 %v296_v19  ;;  %v283_v21 = vpop.f32.mrb[2].mxu0 }
 0x10b   : > { %v285_v22 = vpop.f32.mrb[3].mxu0  ;;  %v293_v23 = vpop.f32.mrb[3].mxu1  ;;  %v305_v24 = vsel %vm295_vm1, %v594_v20, 0.0  ;;  %v299_v25 = vsel %vm295_vm1, %v283_v21, 0.0  ;;  %v313_v26 = vmul.f32 %v283_v21, %v283_v21  ;;  %v316_v29 = vsel %vm295_vm1, %v312_v27, 0.0 }
 0x10c   : > { %v315_v30 = vmul.f32 %v594_v20, %v594_v20  ;;  %v322_v33 = vsel %vm295_vm1, %v314_v31, 0.0 }
 0x10d   : > { %v319_v28 = vsel %vm295_vm1, %v313_v26, 0.0 }
 0x10e   : > { %306 = vadd.xlane.f32.xlu1 %v305_v24  ;;  %300 = vadd.xlane.f32.xlu0 %v299_v25  ;;  %v325_v32 = vsel %vm295_vm1, %v315_v30, 0.0 }
 0x112   : > { %320 = vadd.xlane.f32.xlu1 %v319_v28  ;;  %317 = vadd.xlane.f32.xlu0 %v316_v29 }
 0x116   : > { %326 = vadd.xlane.f32.xlu1 %v325_v32  ;;  %323 = vadd.xlane.f32.xlu0 %v322_v33 }
 0x197   : > { %v304_v34 = vpop.xlane.xlu1 %303  ;;  %v298_v35 = vpop.xlane.xlu0 %297 }
 0x198   : > { %v308_v38 = vmul.f32 0.015625, %v298_v35  ;;  %v310_v40 = vmul.f32 0.015625, %v304_v34 }
 0x19a   : > { %v332_v44 = vmul.f32 %v308_v38, %v308_v38  ;;  %v334_v50 = vmul.f32 %v310_v40, %v310_v40  ;;  %v344_v4 = vsub.f32 %v586_v14, %v308_v38  ;;  %v346_v11 = vsub.f32 %v588_v15, %v310_v40 }
 0x19b   : > { %v307_v36 = vpop.xlane.xlu1 %306  ;;  %v301_v37 = vpop.xlane.xlu0 %300 }
 0x19c   : > { %v309_v39 = vmul.f32 0.015625, %v301_v37  ;;  %v311_v41 = vmul.f32 0.015625, %v307_v36 }
 0x19e   : > { %v333_v45 = vmul.f32 %v309_v39, %v309_v39  ;;  %v335_v51 = vmul.f32 %v311_v41, %v311_v41  ;;  %v345_v2 = vsub.f32 %v283_v21, %v309_v39  ;;  %v347_v8 = vsub.f32 %v594_v20, %v311_v41 }
 0x19f   : > { %v321_v42 = vpop.xlane.xlu1 %320  ;;  %v318_v43 = vpop.xlane.xlu0 %317 }
 0x1a0   : > { %v329_v46 = vmul.f32 0.015625, %v321_v42  ;;  %v328_v47 = vmul.f32 0.015625, %v318_v43 }
 0x1a2   : > { %v337_v48 = vsub.f32 %v329_v46, %v333_v45  ;;  %v336_v49 = vsub.f32 %v328_v47, %v332_v44 }
 0x1a3   : > { %v327_v52 = vpop.xlane.xlu1 %326  ;;  %v324_v53 = vpop.xlane.xlu0 %323 }
 0x1a4   : > { %v341_v54 = vmax.f32 %v337_v48, 0.0  ;;  %v340_v55 = vmax.f32 %v336_v49, 0.0  ;;  %v331_v56 = vmul.f32 0.015625, %v327_v52  ;;  %v330_v57 = vmul.f32 0.015625, %v324_v53 }
 0x1a6   : > { %v349_v58 = vadd.f32 1e-05, %v341_v54  ;;  %v348_v59 = vadd.f32 1e-05, %v340_v55  ;;  %v339_v60 = vsub.f32 %v331_v56, %v335_v51  ;;  %v338_v61 = vsub.f32 %v330_v57, %v334_v50 }
 0x1a8   : > { %517 = vrsqrt.f32 %v349_v58  ;;  %v343_v62 = vmax.f32 %v339_v60, 0.0  ;;  %v342_v63 = vmax.f32 %v338_v61, 0.0 }
 0x1a9   : > { %519 = vrsqrt.f32 %v348_v59 }
 0x1aa   : > { %v351_v0 = vadd.f32 1e-05, %v343_v62  ;;  %v350_v1 = vadd.f32 1e-05, %v342_v63 }
 0x1ac   : > { %521 = vrsqrt.f32 %v351_v0 }
 0x1ad   : > { %523 = vrsqrt.f32 %v350_v1 }
 0x1b2   : > { %v518_v3 = vpop.eup %517 }
 0x1b3   : > { %v520_v5 = vpop.eup %519  ;;  %v357_v6 = vmul.f32 %v518_v3, %v345_v2 }
 0x1b4   : > { %v356_v7 = vmul.f32 %v520_v5, %v344_v4 }
 0x1b5   : > { %v361_v9 = vmax.f32 %v357_v6, 0.0 }
 0x1b6   : > { %v522_v10 = vpop.eup %521  ;;  %v360_v12 = vmax.f32 %v356_v7, 0.0 }
 0x1b7   : > { %v524_v13 = vpop.eup %523  ;;  %v471_v16 = vpack.c.bf16 %v361_v9, %v361_v9  ;;  %v359_v17 = vmul.f32 %v522_v10, %v347_v8 }
 0x1b8   : > { %v470_v14 = vpack.c.bf16 %v360_v12, %v360_v12  ;;  %v358_v18 = vmul.f32 %v524_v13, %v346_v11 }
 0x1b9   : > { %382 = vst.msk [vmem:[%s143_s26 + $0x4] sm:$0xf] %vm380_vm2, %v471_v16  ;;  %v363_v19 = vmax.f32 %v359_v17, 0.0 }
 0x1ba   : > { %381 = vst.msk [vmem:[%s143_s26] sm:$0xf] %vm380_vm2, %v470_v14  ;;  %v362_v21 = vmax.f32 %v358_v18, 0.0 }
 0x1bb   : > { %v473_v20 = vpack.c.bf16 %v363_v19, %v363_v19 }
 0x1bc   : > { %v472_v22 = vpack.c.bf16 %v362_v21, %v362_v21 }
 0x1bd   : > { %384 = vst.msk [vmem:[%s143_s26 + $0xc] sm:$0xf] %vm380_vm2, %v473_v20 }
 0x1be   : > { %383 = vst.msk [vmem:[%s143_s26 + $0x8] sm:$0xf] %vm380_vm2, %v472_v22 }
 0x1bf PF: > { %s12_s9 = sadd.s32 1, %s531_s9  }
 0x1c0   : > { %p9_p4 = scmp.ge.s32.totalorder %s12_s9, 4  }
 0x1c2   :  { %11 = sbr.rel (!%p9_p4) target bundleno = 1 (0x1), region = 58 }

// kernel: generator_forward.28
= control target key start
LH: loop header
LB: loop body
LE: loop exit
PB: predicated region body
PF: predicated region fallthrough
CT: control target
= control target key end

     0   :  { %s724_s9 = smov 0   ;;  %s817_s0 = inlined_call_operand.vmem [shape: bf16[32,288], index: 0, kind: input, shape index: {}]   ;;  %s818_s1 = inlined_call_operand.vmem [shape: bf16[2,288,64], index: 1, kind: input, shape index: {}]   ;;  %s819_s2 = inlined_call_operand.vmem [shape: bf16[2,32,64], index: 2, kind: output, shape index: {}]  }
   0x1 LB: > { %s573_s10 = sadd.s32 4294967295, %s707_s9   ;;  %p577_p0 = scmp.ge.s32.totalorder %s707_s9, 1  ;;  %s707_s9 = sphi %s724_s9, %s12_s9  }
   0x2   : > { %p112_p1 = scmp.lt.s32.totalorder %s707_s9, 3 }
   0x4   : > { %p113_p2 = pnand %p577_p0, %p112_p1 }
   0x5   : > { %p134_p3 = scmp.lt.s32.totalorder (!%p113_p2), %s573_s10, 1  ;;  %vm327_vm0 = vcmask (!%p113_p2), 261120   ;;  %v685_v0 = vld [vmem:[%s817_s0 + $0x8] ss:$12 sps:$4 sm:$0xff] (!%p113_p2)   ;;  %v688_v1 = vld [vmem:[%s817_s0 + $0x4] ss:$12 sps:$4 sm:$0xff] (!%p113_p2)  }
   0x6   : > { %116 = sbr.rel (%p113_p2) target bundleno = 450 (0x1c2), region = 28  ;;  %654 = vmatprep.mubr.msk.bf16.mxu1 (!%p113_p2), %vm327_vm0, %v685_v0  ;;  %366 = vmatprep.mubr.bf16.mxu0 (!%p113_p2), %v688_v1  ;;  %v689_v15 = vld [vmem:[%s817_s0 + $0x20] ss:$12 sps:$4 sm:$0xff] (!%p113_p2)   ;;  %v690_v22 = vld [vmem:[%s817_s0 + $0x1c] ss:$12 sps:$4 sm:$0xff] (!%p113_p2)   ;;  %vm432_vm1 = vcmask (!%p113_p2), 523264  }
   0x7   : > { %v686_v21 = vld [vmem:[%s817_s0] ss:$12 sps:$4 sm:$0xff] (!%p113_p2)   ;;  %v692_v23 = vld [vmem:[%s817_s0 + $0x18] ss:$12 sps:$4 sm:$0xff] (!%p113_p2)   ;;  %vm513_vm2 = vcmask (!%p113_p2), 519168  }
   0xd   : > { %s821_s10 = smov (!%p134_p3, %s573_s10), 1 }
   0xe   : > { %s658_s15 = smul.u32 144, %s821_s10  ;;  %s613_s27 = sshll.u32 %s821_s10, 4 }
   0xf   : > { %s143_s30 = scalar_lea.vmem %s819_s2, %s613_s27 }
  0x10   : > { %s745_s18 = scalar_lea.vmem %s818_s1, %s658_s15 }
  0x11   : > { %v667_v2 = vld [vmem:[%s745_s18 + $0x40] sm:$0xff]   ;;  %v669_v4 = vld [vmem:[%s745_s18 + $0x48] sm:$0xff]   ;;  %v671_v6 = vld [vmem:[%s745_s18 + $0x50] sm:$0xff]  }
  0x12   : > { %v668_v3 = vld [vmem:[%s745_s18] sm:$0xff]   ;;  %618 = vmatprep.subr.bf16.mxu0 %v667_v2  ;;  %v670_v5 = vld [vmem:[%s745_s18 + $0x8] sm:$0xff]   ;;  %v672_v7 = vld [vmem:[%s745_s18 + $0x10] sm:$0xff]  }
  0x13   : > { %619 = vmatpush3.bf16.msra.mxu0 %v668_v3  ;;  %v673_v8 = vld [vmem:[%s745_s18 + $0x58] sm:$0xff]   ;;  %v675_v10 = vld [vmem:[%s745_s18 + $0x60] sm:$0xff]   ;;  %v682_v13 = vld [vmem:[%s745_s18 + $0x88] sm:$0xff]  }
  0x14   : > { %620 = vmatprep.subr.bf16.mxu0 %v669_v4  ;;  %v674_v9 = vld [vmem:[%s745_s18 + $0x18] sm:$0xff]   ;;  %v679_v11 = vld [vmem:[%s745_s18 + $0x80] sm:$0xff]   ;;  %v677_v14 = vld [vmem:[%s745_s18 + $0x68] sm:$0xff]  }
  0x15   : > { %v676_v12 = vld [vmem:[%s745_s18 + $0x20] sm:$0xff]   ;;  %650 = vmatprep.subr.bf16.mxu1 %v679_v11  ;;  %v678_v16 = vld [vmem:[%s745_s18 + $0x28] sm:$0xff]   ;;  %v680_v17 = vld [vmem:[%s745_s18 + $0x70] sm:$0xff]  }
  0x16   : > { %651 = vmatpush3.bf16.msra.mxu1 %v679_v11  ;;  %v681_v18 = vld [vmem:[%s745_s18 + $0x30] sm:$0xff]   ;;  %v683_v19 = vld [vmem:[%s745_s18 + $0x78] sm:$0xff]  }
  0x17   : > { %621 = vmatpush3.bf16.msra.mxu0 %v670_v5  ;;  %652 = vmatprep.subr.bf16.mxu1 %v682_v13  ;;  %v684_v20 = vld [vmem:[%s745_s18 + $0x38] sm:$0xff]  }
  0x18   : > { %622 = vmatprep.subr.bf16.mxu0 %v671_v6 }
  0x1a   : > { %653 = vmatpush3.bf16.msra.mxu1 %v682_v13 }
  0x1b   : > { %623 = vmatpush3.bf16.msra.mxu0 %v672_v7 }
  0x1c   : > { %624 = vmatprep.subr.bf16.mxu0 %v673_v8 }
  0x1d   : > { %655 = vmatmul.mubr.msk.bf16.vlgmr.msra.gmra.mrb[0].mxu1 %vm327_vm0, %v689_v15 }
  0x1f   : > { %625 = vmatpush3.bf16.msra.mxu0 %v674_v9 }
  0x20   : > { %626 = vmatprep.subr.bf16.mxu0 %v675_v10 }
  0x23   : > { %627 = vmatpush3.bf16.msra.mxu0 %v676_v12 }
  0x24   : > { %628 = vmatprep.subr.bf16.mxu0 %v677_v14 }
  0x27   : > { %629 = vmatpush3.bf16.msra.mxu0 %v678_v16 }
  0x28   : > { %630 = vmatprep.subr.bf16.mxu0 %v680_v17 }
  0x2b   : > { %631 = vmatpush3.bf16.msra.mxu0 %v681_v18 }
  0x2c   : > { %632 = vmatprep.subr.bf16.mxu0 %v683_v19 }
  0x2f   : > { %633 = vmatpush3.bf16.msra.mxu0 %v684_v20 }
  0x32   : > { %367 = vmatmul.mubr.bf16.vlgmr.msra.gmra.mrb[0].mxu0 %v686_v21 }
  0x33   : > { %374 = vmatprep.mubr.bf16.mxu0 %v690_v22 }
  0x3a   : > { %375 = vmatmul.mubr.bf16.gmra.mrb[4].mxu0 %v692_v23 }
  0xf0   : > { %v656_v24 = vpop.f32.mrb[0].mxu1 }
  0xf1   : > { %v417_v25 = vpop.f32.mrb[1].mxu1 }
  0xf2   : > { %v657_v26 = vpop.f32.mrb[2].mxu1 }
  0xf3   : > { %v420_v27 = vpop.f32.mrb[3].mxu1 }
 0x105   : > { %v634_v28 = vpop.f32.mrb[0].mxu0 }
 0x106   : > { %v635_v29 = vpop.f32.mrb[1].mxu0 }
 0x107   : > { %v636_v30 = vadd.f32 %v635_v29, %v634_v28  ;;  %v637_v31 = vpop.f32.mrb[2].mxu0 }
 0x108   : > { %v638_v32 = vpop.f32.mrb[3].mxu0 }
 0x109   : > { %v778_v33 = vadd.f32 %v636_v30, %v417_v25  ;;  %v639_v34 = vadd.f32 %v638_v32, %v637_v31 }
 0x10b   : > { %v780_v35 = vadd.f32 %v639_v34, %v420_v27  ;;  %v433_v36 = vsel %vm432_vm1, %v778_v33, 0.0  ;;  %v449_v44 = vmul.f32 %v778_v33, %v778_v33 }
 0x10c   : > { %434 = vadd.xlane.f32.xlu0 %v433_v36 }
 0x10d   : > { %v640_v37 = vpop.f32.mrb[4].mxu0  ;;  %v450_v38 = vmul.f32 %v780_v35, %v780_v35  ;;  %v436_v43 = vsel %vm432_vm1, %v780_v35, 0.0  ;;  %v453_v50 = vsel %vm432_vm1, %v449_v44, 0.0 }
 0x10e   : > { %v641_v39 = vpop.f32.mrb[5].mxu0 }
 0x10f   : > { %v642_v40 = vadd.f32 %v641_v39, %v640_v37  ;;  %v643_v41 = vpop.f32.mrb[6].mxu0  ;;  %v456_v42 = vsel %vm432_vm1, %v450_v38, 0.0 }
 0x110   : > { %v644_v45 = vpop.f32.mrb[7].mxu0  ;;  %457 = vadd.xlane.f32.xlu1 %v456_v42  ;;  %437 = vadd.xlane.f32.xlu0 %v436_v43 }
 0x111   : > { %v791_v46 = vadd.f32 %v656_v24, %v642_v40  ;;  %v645_v47 = vadd.f32 %v644_v45, %v643_v41 }
 0x113   : > { %v793_v48 = vadd.f32 %v657_v26, %v645_v47  ;;  %v439_v49 = vsel %vm432_vm1, %v791_v46, 0.0  ;;  %v451_v51 = vmul.f32 %v791_v46, %v791_v46 }
 0x114   : > { %440 = vadd.xlane.f32.xlu1 %v439_v49  ;;  %454 = vadd.xlane.f32.xlu0 %v453_v50 }
 0x115   : > { %v442_v52 = vsel %vm432_vm1, %v793_v48, 0.0  ;;  %v459_v53 = vsel %vm432_vm1, %v451_v51, 0.0  ;;  %v452_v54 = vmul.f32 %v793_v48, %v793_v48 }
 0x117   : > { %v462_v55 = vsel %vm432_vm1, %v452_v54, 0.0 }
 0x118   : > { %443 = vadd.xlane.f32.xlu1 %v442_v52  ;;  %460 = vadd.xlane.f32.xlu0 %v459_v53 }
 0x11c   : > { %463 = vadd.xlane.f32.xlu1 %v462_v55 }
 0x199   : > { %v435_v56 = vpop.xlane.xlu0 %434 }
 0x19a   : > { %v445_v59 = vmul.f32 0.015625, %v435_v56 }
 0x19c   : > { %v469_v1 = vmul.f32 %v445_v59, %v445_v59  ;;  %v481_v26 = vsub.f32 %v778_v33, %v445_v59 }
 0x19d   : > { %v458_v57 = vpop.xlane.xlu1 %457  ;;  %v438_v58 = vpop.xlane.xlu0 %437 }
 0x19e   : > { %v446_v60 = vmul.f32 0.015625, %v438_v58  ;;  %v466_v61 = vmul.f32 0.015625, %v458_v57 }
 0x1a0   : > { %v470_v62 = vmul.f32 %v446_v60, %v446_v60  ;;  %v482_v24 = vsub.f32 %v780_v35, %v446_v60 }
 0x1a1   : > { %v441_v63 = vpop.xlane.xlu1 %440  ;;  %v455_v0 = vpop.xlane.xlu0 %454 }
 0x1a2   : > { %v474_v2 = vsub.f32 %v466_v61, %v470_v62  ;;  %v465_v3 = vmul.f32 0.015625, %v455_v0  ;;  %v447_v4 = vmul.f32 0.015625, %v441_v63 }
 0x1a4   : > { %v478_v5 = vmax.f32 %v474_v2, 0.0  ;;  %v473_v6 = vsub.f32 %v465_v3, %v469_v1  ;;  %v471_v13 = vmul.f32 %v447_v4, %v447_v4  ;;  %v483_v32 = vsub.f32 %v791_v46, %v447_v4 }
 0x1a5   : > { %v444_v7 = vpop.xlane.xlu1 %443  ;;  %v461_v8 = vpop.xlane.xlu0 %460 }
 0x1a6   : > { %v486_v9 = vadd.f32 1e-05, %v478_v5  ;;  %v477_v10 = vmax.f32 %v473_v6, 0.0  ;;  %v448_v11 = vmul.f32 0.015625, %v444_v7  ;;  %v467_v12 = vmul.f32 0.015625, %v461_v8 }
 0x1a8   : > { %693 = vrsqrt.f32 %v486_v9  ;;  %v485_v14 = vadd.f32 1e-05, %v477_v10  ;;  %v475_v15 = vsub.f32 %v467_v12, %v471_v13  ;;  %v472_v17 = vmul.f32 %v448_v11, %v448_v11 }
 0x1a9   : > { %v464_v16 = vpop.xlane.xlu1 %463  ;;  %v484_v36 = vsub.f32 %v793_v48, %v448_v11 }
 0x1aa   : > { %695 = vrsqrt.f32 %v485_v14  ;;  %v468_v18 = vmul.f32 0.015625, %v464_v16  ;;  %v479_v19 = vmax.f32 %v475_v15, 0.0 }
 0x1ac   : > { %v476_v20 = vsub.f32 %v468_v18, %v472_v17  ;;  %v487_v21 = vadd.f32 1e-05, %v479_v19 }
 0x1ae   : > { %v480_v22 = vmax.f32 %v476_v20, 0.0  ;;  %697 = vrsqrt.f32 %v487_v21 }
 0x1b0   : > { %v488_v23 = vadd.f32 1e-05, %v480_v22 }
 0x1b2   : > { %v694_v25 = vpop.eup %693  ;;  %699 = vrsqrt.f32 %v488_v23 }
 0x1b3   : > { %v494_v27 = vmul.f32 %v694_v25, %v482_v24 }
 0x1b4   : > { %v696_v28 = vpop.eup %695 }
 0x1b5   : > { %v615_v29 = vpack.c.bf16 %v494_v27, %v494_v27  ;;  %v493_v30 = vmul.f32 %v696_v28, %v481_v26 }
 0x1b7   : > { %515 = vst.msk [vmem:[%s143_s30 + $0x4] sm:$0xf] %vm513_vm2, %v615_v29  ;;  %v614_v31 = vpack.c.bf16 %v493_v30, %v493_v30 }
 0x1b8   : > { %v698_v34 = vpop.eup %697 }
 0x1b9   : > { %514 = vst.msk [vmem:[%s143_s30] sm:$0xf] %vm513_vm2, %v614_v31  ;;  %v495_v35 = vmul.f32 %v698_v34, %v483_v32 }
 0x1bb   : > { %v616_v33 = vpack.c.bf16 %v495_v35, %v495_v35 }
 0x1bc   : > { %v700_v37 = vpop.eup %699 }
 0x1bd   : > { %v496_v38 = vmul.f32 %v700_v37, %v484_v36  ;;  %516 = vst.msk [vmem:[%s143_s30 + $0x8] sm:$0xf] %vm513_vm2, %v616_v33 }
 0x1bf   : > { %v617_v39 = vpack.c.bf16 %v496_v38, %v496_v38 }
 0x1c1   : > { %517 = vst.msk [vmem:[%s143_s30 + $0xc] sm:$0xf] %vm513_vm2, %v617_v39 }
 0x1c2 PF: > { %s12_s9 = sadd.s32 1, %s707_s9  }
 0x1c3   : > { %p9_p4 = scmp.ge.s32.totalorder %s12_s9, 4  }
 0x1c5   :  { %11 = sbr.rel (!%p9_p4) target bundleno = 1 (0x1), region = 58 }

// kernel: generator_forward.27
= control target key start
LH: loop header
LB: loop body
LE: loop exit
PB: predicated region body
PF: predicated region fallthrough
CT: control target
= control target key end

     0   :  { %s728_s9 = smov 0   ;;  %s825_s0 = inlined_call_operand.vmem [shape: bf16[32,288], index: 0, kind: input, shape index: {}]   ;;  %s826_s1 = inlined_call_operand.vmem [shape: bf16[2,288,64], index: 1, kind: input, shape index: {}]   ;;  %s827_s2 = inlined_call_operand.vmem [shape: bf16[2,32,64], index: 2, kind: output, shape index: {}]  }
   0x1 LB: > { %s577_s10 = sadd.s32 4294967295, %s711_s9   ;;  %p581_p0 = scmp.ge.s32.totalorder %s711_s9, 1  ;;  %s711_s9 = sphi %s728_s9, %s12_s9  }
   0x2   : > { %p112_p1 = scmp.lt.s32.totalorder %s711_s9, 3 }
   0x4   : > { %p113_p2 = pnand %p581_p0, %p112_p1 }
   0x5   : > { %p134_p3 = scmp.lt.s32.totalorder (!%p113_p2), %s577_s10, 1  ;;  %vm327_vm0 = vcmask (!%p113_p2), 261120   ;;  %v689_v0 = vld [vmem:[%s825_s0 + $0x8] ss:$12 sps:$4 sm:$0xff] (!%p113_p2)   ;;  %v692_v1 = vld [vmem:[%s825_s0 + $0x4] ss:$12 sps:$4 sm:$0xff] (!%p113_p2)  }
   0x6   : > { %116 = sbr.rel (%p113_p2) target bundleno = 452 (0x1c4), region = 28  ;;  %658 = vmatprep.mubr.msk.bf16.mxu1 (!%p113_p2), %vm327_vm0, %v689_v0  ;;  %366 = vmatprep.mubr.bf16.mxu0 (!%p113_p2), %v692_v1  ;;  %v693_v15 = vld [vmem:[%s825_s0 + $0x20] ss:$12 sps:$4 sm:$0xff] (!%p113_p2)   ;;  %v694_v22 = vld [vmem:[%s825_s0 + $0x1c] ss:$12 sps:$4 sm:$0xff] (!%p113_p2)   ;;  %vm432_vm1 = vcmask (!%p113_p2), 523264  }
   0x7   : > { %v690_v21 = vld [vmem:[%s825_s0] ss:$12 sps:$4 sm:$0xff] (!%p113_p2)   ;;  %v696_v23 = vld [vmem:[%s825_s0 + $0x18] ss:$12 sps:$4 sm:$0xff] (!%p113_p2)   ;;  %vm517_vm2 = vcmask (!%p113_p2), 519168  }
   0xd   : > { %s829_s10 = smov (!%p134_p3, %s577_s10), 1 }
   0xe   : > { %s662_s15 = smul.u32 144, %s829_s10  ;;  %s617_s27 = sshll.u32 %s829_s10, 4 }
   0xf   : > { %s143_s30 = scalar_lea.vmem %s827_s2, %s617_s27 }
  0x10   : > { %s749_s18 = scalar_lea.vmem %s826_s1, %s662_s15 }
  0x11   : > { %v671_v2 = vld [vmem:[%s749_s18 + $0x40] sm:$0xff]   ;;  %v673_v4 = vld [vmem:[%s749_s18 + $0x48] sm:$0xff]   ;;  %v675_v6 = vld [vmem:[%s749_s18 + $0x50] sm:$0xff]  }
  0x12   : > { %v672_v3 = vld [vmem:[%s749_s18] sm:$0xff]   ;;  %622 = vmatprep.subr.bf16.mxu0 %v671_v2  ;;  %v674_v5 = vld [vmem:[%s749_s18 + $0x8] sm:$0xff]   ;;  %v676_v7 = vld [vmem:[%s749_s18 + $0x10] sm:$0xff]  }
  0x13   : > { %623 = vmatpush3.bf16.msra.mxu0 %v672_v3  ;;  %v677_v8 = vld [vmem:[%s749_s18 + $0x58] sm:$0xff]   ;;  %v679_v10 = vld [vmem:[%s749_s18 + $0x60] sm:$0xff]   ;;  %v686_v13 = vld [vmem:[%s749_s18 + $0x88] sm:$0xff]  }
  0x14   : > { %624 = vmatprep.subr.bf16.mxu0 %v673_v4  ;;  %v678_v9 = vld [vmem:[%s749_s18 + $0x18] sm:$0xff]   ;;  %v683_v11 = vld [vmem:[%s749_s18 + $0x80] sm:$0xff]   ;;  %v681_v14 = vld [vmem:[%s749_s18 + $0x68] sm:$0xff]  }
  0x15   : > { %v680_v12 = vld [vmem:[%s749_s18 + $0x20] sm:$0xff]   ;;  %654 = vmatprep.subr.bf16.mxu1 %v683_v11  ;;  %v682_v16 = vld [vmem:[%s749_s18 + $0x28] sm:$0xff]   ;;  %v684_v17 = vld [vmem:[%s749_s18 + $0x70] sm:$0xff]  }
  0x16   : > { %655 = vmatpush3.bf16.msra.mxu1 %v683_v11  ;;  %v685_v18 = vld [vmem:[%s749_s18 + $0x30] sm:$0xff]   ;;  %v687_v19 = vld [vmem:[%s749_s18 + $0x78] sm:$0xff]  }
  0x17   : > { %625 = vmatpush3.bf16.msra.mxu0 %v674_v5  ;;  %656 = vmatprep.subr.bf16.mxu1 %v686_v13  ;;  %v688_v20 = vld [vmem:[%s749_s18 + $0x38] sm:$0xff]  }
  0x18   : > { %626 = vmatprep.subr.bf16.mxu0 %v675_v6 }
  0x1a   : > { %657 = vmatpush3.bf16.msra.mxu1 %v686_v13 }
  0x1b   : > { %627 = vmatpush3.bf16.msra.mxu0 %v676_v7 }
  0x1c   : > { %628 = vmatprep.subr.bf16.mxu0 %v677_v8 }
  0x1d   : > { %659 = vmatmul.mubr.msk.bf16.vlgmr.msra.gmra.mrb[0].mxu1 %vm327_vm0, %v693_v15 }
  0x1f   : > { %629 = vmatpush3.bf16.msra.mxu0 %v678_v9 }
  0x20   : > { %630 = vmatprep.subr.bf16.mxu0 %v679_v10 }
  0x23   : > { %631 = vmatpush3.bf16.msra.mxu0 %v680_v12 }
  0x24   : > { %632 = vmatprep.subr.bf16.mxu0 %v681_v14 }
  0x27   : > { %633 = vmatpush3.bf16.msra.mxu0 %v682_v16 }
  0x28   : > { %634 = vmatprep.subr.bf16.mxu0 %v684_v17 }
  0x2b   : > { %635 = vmatpush3.bf16.msra.mxu0 %v685_v18 }
  0x2c   : > { %636 = vmatprep.subr.bf16.mxu0 %v687_v19 }
  0x2f   : > { %637 = vmatpush3.bf16.msra.mxu0 %v688_v20 }
  0x32   : > { %367 = vmatmul.mubr.bf16.vlgmr.msra.gmra.mrb[0].mxu0 %v690_v21 }
  0x33   : > { %374 = vmatprep.mubr.bf16.mxu0 %v694_v22 }
  0x3a   : > { %375 = vmatmul.mubr.bf16.gmra.mrb[4].mxu0 %v696_v23 }
  0xf0   : > { %v660_v24 = vpop.f32.mrb[0].mxu1 }
  0xf1   : > { %v417_v25 = vpop.f32.mrb[1].mxu1 }
  0xf2   : > { %v661_v26 = vpop.f32.mrb[2].mxu1 }
  0xf3   : > { %v420_v27 = vpop.f32.mrb[3].mxu1 }
 0x105   : > { %v638_v28 = vpop.f32.mrb[0].mxu0 }
 0x106   : > { %v639_v29 = vpop.f32.mrb[1].mxu0 }
 0x107   : > { %v640_v30 = vadd.f32 %v639_v29, %v638_v28  ;;  %v641_v31 = vpop.f32.mrb[2].mxu0 }
 0x108   : > { %v642_v32 = vpop.f32.mrb[3].mxu0 }
 0x109   : > { %v782_v33 = vadd.f32 %v640_v30, %v417_v25  ;;  %v643_v34 = vadd.f32 %v642_v32, %v641_v31 }
 0x10b   : > { %v784_v35 = vadd.f32 %v643_v34, %v420_v27  ;;  %v433_v36 = vsel %vm432_vm1, %v782_v33, 0.0  ;;  %v449_v44 = vmul.f32 %v782_v33, %v782_v33 }
 0x10c   : > { %434 = vadd.xlane.f32.xlu0 %v433_v36 }
 0x10d   : > { %v644_v37 = vpop.f32.mrb[4].mxu0  ;;  %v450_v38 = vmul.f32 %v784_v35, %v784_v35  ;;  %v436_v43 = vsel %vm432_vm1, %v784_v35, 0.0  ;;  %v453_v50 = vsel %vm432_vm1, %v449_v44, 0.0 }
 0x10e   : > { %v645_v39 = vpop.f32.mrb[5].mxu0 }
 0x10f   : > { %v646_v40 = vadd.f32 %v645_v39, %v644_v37  ;;  %v647_v41 = vpop.f32.mrb[6].mxu0  ;;  %v456_v42 = vsel %vm432_vm1, %v450_v38, 0.0 }
 0x110   : > { %v648_v45 = vpop.f32.mrb[7].mxu0  ;;  %457 = vadd.xlane.f32.xlu1 %v456_v42  ;;  %437 = vadd.xlane.f32.xlu0 %v436_v43 }
 0x111   : > { %v795_v46 = vadd.f32 %v660_v24, %v646_v40  ;;  %v649_v47 = vadd.f32 %v648_v45, %v647_v41 }
 0x113   : > { %v797_v48 = vadd.f32 %v661_v26, %v649_v47  ;;  %v439_v49 = vsel %vm432_vm1, %v795_v46, 0.0  ;;  %v451_v51 = vmul.f32 %v795_v46, %v795_v46 }
 0x114   : > { %440 = vadd.xlane.f32.xlu1 %v439_v49  ;;  %454 = vadd.xlane.f32.xlu0 %v453_v50 }
 0x115   : > { %v442_v52 = vsel %vm432_vm1, %v797_v48, 0.0  ;;  %v459_v53 = vsel %vm432_vm1, %v451_v51, 0.0  ;;  %v452_v54 = vmul.f32 %v797_v48, %v797_v48 }
 0x117   : > { %v462_v55 = vsel %vm432_vm1, %v452_v54, 0.0 }
 0x118   : > { %443 = vadd.xlane.f32.xlu1 %v442_v52  ;;  %460 = vadd.xlane.f32.xlu0 %v459_v53 }
 0x11c   : > { %463 = vadd.xlane.f32.xlu1 %v462_v55 }
 0x199   : > { %v435_v56 = vpop.xlane.xlu0 %434 }
 0x19a   : > { %v445_v59 = vmul.f32 0.015625, %v435_v56 }
 0x19c   : > { %v469_v1 = vmul.f32 %v445_v59, %v445_v59  ;;  %v481_v26 = vsub.f32 %v782_v33, %v445_v59 }
 0x19d   : > { %v458_v57 = vpop.xlane.xlu1 %457  ;;  %v438_v58 = vpop.xlane.xlu0 %437 }
 0x19e   : > { %v446_v60 = vmul.f32 0.015625, %v438_v58  ;;  %v466_v61 = vmul.f32 0.015625, %v458_v57 }
 0x1a0   : > { %v470_v62 = vmul.f32 %v446_v60, %v446_v60  ;;  %v482_v24 = vsub.f32 %v784_v35, %v446_v60 }
 0x1a1   : > { %v441_v63 = vpop.xlane.xlu1 %440  ;;  %v455_v0 = vpop.xlane.xlu0 %454 }
 0x1a2   : > { %v474_v2 = vsub.f32 %v466_v61, %v470_v62  ;;  %v465_v3 = vmul.f32 0.015625, %v455_v0  ;;  %v447_v4 = vmul.f32 0.015625, %v441_v63 }
 0x1a4   : > { %v478_v5 = vmax.f32 %v474_v2, 0.0  ;;  %v473_v6 = vsub.f32 %v465_v3, %v469_v1  ;;  %v471_v13 = vmul.f32 %v447_v4, %v447_v4  ;;  %v483_v34 = vsub.f32 %v795_v46, %v447_v4 }
 0x1a5   : > { %v444_v7 = vpop.xlane.xlu1 %443  ;;  %v461_v8 = vpop.xlane.xlu0 %460 }
 0x1a6   : > { %v486_v9 = vadd.f32 1e-05, %v478_v5  ;;  %v477_v10 = vmax.f32 %v473_v6, 0.0  ;;  %v448_v11 = vmul.f32 0.015625, %v444_v7  ;;  %v467_v12 = vmul.f32 0.015625, %v461_v8 }
 0x1a8   : > { %697 = vrsqrt.f32 %v486_v9  ;;  %v485_v14 = vadd.f32 1e-05, %v477_v10  ;;  %v475_v15 = vsub.f32 %v467_v12, %v471_v13  ;;  %v472_v17 = vmul.f32 %v448_v11, %v448_v11 }
 0x1a9   : > { %v464_v16 = vpop.xlane.xlu1 %463  ;;  %v484_v33 = vsub.f32 %v797_v48, %v448_v11 }
 0x1aa   : > { %699 = vrsqrt.f32 %v485_v14  ;;  %v468_v18 = vmul.f32 0.015625, %v464_v16  ;;  %v479_v19 = vmax.f32 %v475_v15, 0.0 }
 0x1ac   : > { %v476_v20 = vsub.f32 %v468_v18, %v472_v17  ;;  %v487_v21 = vadd.f32 1e-05, %v479_v19 }
 0x1ae   : > { %v480_v22 = vmax.f32 %v476_v20, 0.0  ;;  %701 = vrsqrt.f32 %v487_v21 }
 0x1b0   : > { %v488_v23 = vadd.f32 1e-05, %v480_v22 }
 0x1b2   : > { %v698_v25 = vpop.eup %697  ;;  %703 = vrsqrt.f32 %v488_v23 }
 0x1b3   : > { %v494_v27 = vmul.f32 %v698_v25, %v482_v24 }
 0x1b4   : > { %v700_v28 = vpop.eup %699 }
 0x1b5   : > { %v498_v29 = vmax.f32 %v494_v27, 0.0  ;;  %v493_v30 = vmul.f32 %v700_v28, %v481_v26 }
 0x1b7   : > { %v619_v31 = vpack.c.bf16 %v498_v29, %v498_v29  ;;  %v497_v32 = vmax.f32 %v493_v30, 0.0 }
 0x1b8   : > { %v702_v36 = vpop.eup %701 }
 0x1b9   : > { %519 = vst.msk [vmem:[%s143_s30 + $0x4] sm:$0xf] %vm517_vm2, %v619_v31  ;;  %v618_v35 = vpack.c.bf16 %v497_v32, %v497_v32  ;;  %v495_v37 = vmul.f32 %v702_v36, %v483_v34 }
 0x1bb   : > { %518 = vst.msk [vmem:[%s143_s30] sm:$0xf] %vm517_vm2, %v618_v35  ;;  %v499_v39 = vmax.f32 %v495_v37, 0.0 }
 0x1bc   : > { %v704_v38 = vpop.eup %703 }
 0x1bd   : > { %v496_v40 = vmul.f32 %v704_v38, %v484_v33  ;;  %v620_v41 = vpack.c.bf16 %v499_v39, %v499_v39 }
 0x1bf   : > { %v500_v42 = vmax.f32 %v496_v40, 0.0  ;;  %520 = vst.msk [vmem:[%s143_s30 + $0x8] sm:$0xf] %vm517_vm2, %v620_v41 }
 0x1c1   : > { %v621_v43 = vpack.c.bf16 %v500_v42, %v500_v42 }
 0x1c3   : > { %521 = vst.msk [vmem:[%s143_s30 + $0xc] sm:$0xf] %vm517_vm2, %v621_v43 }
 0x1c4 PF: > { %s12_s9 = sadd.s32 1, %s711_s9  }
 0x1c5   : > { %p9_p4 = scmp.ge.s32.totalorder %s12_s9, 4  }
 0x1c7   :  { %11 = sbr.rel (!%p9_p4) target bundleno = 1 (0x1), region = 58 }

// kernel: generator_forward.29
= control target key start
LH: loop header
LB: loop body
LE: loop exit
PB: predicated region body
PF: predicated region fallthrough
CT: control target
= control target key end

     0   :  { %s532_s15 = smov 0   ;;  %s632_s0 = inlined_call_operand.vmem [shape: bf16[2,32,64], index: 0, kind: input, shape index: {}]   ;;  %s633_s1 = inlined_call_operand.vmem [shape: f32[32,2], index: 1, kind: input, shape index: {}]   ;;  %s634_s2 = inlined_call_operand.vmem [shape: f32[32,2], index: 2, kind: input, shape index: {}]   ;;  %s635_s3 = inlined_call_operand.vmem [shape: bf16[2,32,64], index: 3, kind: output, shape index: {0}]   ;;  %s636_s4 = inlined_call_operand.vmem [shape: bf16[2,2,64], index: 4, kind: output, shape index: {1}]  }
   0x1 LB: > { %s441_s16 = sadd.s32 4294967295, %s505_s15   ;;  %p445_p0 = scmp.ge.s32.totalorder %s505_s15, 1  ;;  %s505_s15 = sphi %s532_s15, %s15_s15  }
   0x2   : > { %p165_p1 = scmp.lt.s32.totalorder %s505_s15, 3 }
   0x4   : > { %p166_p2 = pnand %p445_p0, %p165_p1 }
   0x5   : > { %p194_p3 = scmp.lt.s32.totalorder (!%p166_p2), %s441_s16, 1  ;;  %vm215_vm0 = vcmask (!%p166_p2), 523264   ;;  %v232_v13 = vld [vmem:[%s633_s1] sm:$0xff] (!%p166_p2)  ;;  %v234_v15 = vld [vmem:[%s633_s1 + $0x10] sm:$0xff] (!%p166_p2)  ;;  %v233_v16 = vld [vmem:[%s633_s1 + $0x8] sm:$0xff] (!%p166_p2)  ;;  %vm240_vm1 = vcmask (!%p166_p2), 15360  }
   0x6   : > { %169 = sbr.rel (%p166_p2) target bundleno = 394 (0x18a), region = 32  ;;  %v235_v18 = vld [vmem:[%s633_s1 + $0x18] sm:$0xff] (!%p166_p2)  ;;  %v256_v39 = vld [vmem:[%s634_s2 + $0x8] sm:$0xff] (!%p166_p2)  ;;  %v255_v40 = vld [vmem:[%s634_s2] sm:$0xff] (!%p166_p2)  ;;  %vm323_vm2 = vcmask (!%p166_p2), 519168   ;;  %vm356_vm3 = vcmask (!%p166_p2), 1040384  }
   0x7   : > { %v258_v42 = vld [vmem:[%s634_s2 + $0x18] sm:$0xff] (!%p166_p2)  ;;  %v257_v43 = vld [vmem:[%s634_s2 + $0x10] sm:$0xff] (!%p166_p2)  ;;  %vm359_vm4 = vcmask (!%p166_p2), 516096  }
   0xd   : > { %s638_s16 = smov (!%p194_p3, %s441_s16), 1 }
   0xe   : > { %s460_s17 = sshll.u32 %s638_s16, 4  ;;  %s206_s18 = scalar_lea.vmem %s636_s4, %s638_s16 }
   0xf   : > { %s198_s20 = scalar_lea.vmem %s632_s0, %s460_s17  ;;  %s203_s13 = scalar_lea.vmem %s635_s3, %s460_s17 }
  0x10   : > { %v548_v0 = vld [vmem:[%s198_s20] sm:$0xff]   ;;  %v550_v1 = vld [vmem:[%s198_s20 + $0x8] sm:$0xff]  }
  0x11   : > { %v468_v2 = vunpack.c.l.bf16 %v548_v0  ;;  %v472_v3 = vunpack.c.l.bf16 %v550_v1  ;;  %v469_v4 = vunpack.c.h.bf16 %v548_v0  ;;  %v473_v5 = vunpack.c.h.bf16 %v550_v1 }
  0x13   : > { %v216_v6 = vsel %vm215_vm0, %v468_v2, 0.0  ;;  %v222_v7 = vsel %vm215_vm0, %v472_v3, 0.0  ;;  %v219_v8 = vsel %vm215_vm0, %v469_v4, 0.0  ;;  %v225_v9 = vsel %vm215_vm0, %v473_v5, 0.0 }
  0x14   : > { %217 = vadd.xlane.f32.xlu0 %v216_v6  ;;  %223 = vadd.xlane.f32.xlu1 %v222_v7 }
  0x18   : > { %220 = vadd.xlane.f32.xlu0 %v219_v8  ;;  %226 = vadd.xlane.f32.xlu1 %v225_v9 }
  0xa1   : > { %v218_v10 = vpop.xlane.xlu0 %217  ;;  %v224_v11 = vpop.xlane.xlu1 %223 }
  0xa2   : > { %v228_v12 = vmul.f32 0.015625, %v218_v10  ;;  %v230_v14 = vmul.f32 0.015625, %v224_v11 }
  0xa4   : > { %v236_v20 = vmul.f32 %v232_v13, %v228_v12  ;;  %v238_v23 = vmul.f32 %v234_v15, %v230_v14 }
  0xa5   : > { %v221_v17 = vpop.xlane.xlu0 %220  ;;  %v227_v19 = vpop.xlane.xlu1 %226 }
  0xa6   : > { %v229_v21 = vmul.f32 0.015625, %v221_v17  ;;  %v231_v22 = vmul.f32 0.015625, %v227_v19  ;;  %v241_v26 = vsel %vm240_vm1, %v236_v20, 0.0  ;;  %v244_v29 = vsel %vm240_vm1, %v238_v23, 0.0 }
  0xa8   : > { %v237_v24 = vmul.f32 %v233_v16, %v229_v21  ;;  %v239_v25 = vmul.f32 %v235_v18, %v231_v22 }
  0xaa   : > { %v242_v27 = vsel %vm240_vm1, %v237_v24, 0.0  ;;  %v246_v30 = vsel %vm240_vm1, %v239_v25, 0.0 }
  0xab   : > { %v243_v28 = vadd.f32 %v242_v27, %v241_v26 }
  0xad   : > { %v245_v31 = vadd.f32 %v244_v29, %v243_v28 }
  0xaf   : > { %v247_v32 = vadd.f32 %v246_v30, %v245_v31 }
  0xb1   : > { %v248_v33 = vrot.slane %v247_v32, 4 }
  0xb3   : > { %v249_v34 = vadd.f32 %v248_v33, %v247_v32 }
  0xb5   : > { %v250_v35 = vrot.slane %v249_v34, 2 }
  0xb7   : > { %v251_v36 = vadd.f32 %v250_v35, %v249_v34 }
  0xb9   : > { %v252_v37 = vrot.slane %v251_v36, 1 }
  0xbb   : > { %v253_v38 = vadd.f32 %v252_v37, %v251_v36 }
  0xbd   : > { %v254_v41 = vmax.f32 %v253_v38, 0.0 }
  0xbf   : > { %v260_v44 = vmul.f32 %v256_v39, %v254_v41  ;;  %v259_v45 = vmul.f32 %v255_v40, %v254_v41  ;;  %v262_v48 = vmul.f32 %v258_v42, %v254_v41  ;;  %v261_v49 = vmul.f32 %v257_v43, %v254_v41 }
  0xc1   : > { %v266_v46 = vsel %vm240_vm1, %v260_v44, 0.0  ;;  %v263_v47 = vsel %vm240_vm1, %v259_v45, 0.0  ;;  %v272_v50 = vsel %vm240_vm1, %v262_v48, 0.0  ;;  %v269_v51 = vsel %vm240_vm1, %v261_v49, 0.0 }
  0xc2   : > { %267 = vadd.xlane.f32.xlu1 %v266_v46  ;;  %264 = vadd.xlane.f32.xlu0 %v263_v47 }
  0xc6   : > { %273 = vadd.xlane.f32.xlu1 %v272_v50  ;;  %270 = vadd.xlane.f32.xlu0 %v269_v51 }
 0x14f   : > { %v268_v52 = vpop.xlane.xlu1 %267  ;;  %v265_v53 = vpop.xlane.xlu0 %264 }
 0x150   : > { %v451_v54 = vmul.f32 -2.0, %v268_v52  ;;  %v450_v55 = vmul.f32 -2.0, %v265_v53 }
 0x152   : > { %v285_v56 = vmul.f32 1.442695, %v451_v54  ;;  %v283_v57 = vmul.f32 1.442695, %v450_v55 }
 0x153   : > { %v274_v58 = vpop.xlane.xlu1 %273  ;;  %v271_v59 = vpop.xlane.xlu0 %270 }
 0x154   : > { %483 = vpow2.f32 %v285_v56  ;;  %v453_v60 = vmul.f32 -2.0, %v274_v58  ;;  %v452_v61 = vmul.f32 -2.0, %v271_v59 }
 0x155   : > { %485 = vpow2.f32 %v283_v57 }
 0x156   : > { %v289_v62 = vmul.f32 1.442695, %v453_v60  ;;  %v287_v63 = vmul.f32 1.442695, %v452_v61 }
 0x158   : > { %487 = vpow2.f32 %v289_v62 }
 0x159   : > { %489 = vpow2.f32 %v287_v63 }
 0x15e   : > { %v484_v6 = vpop.eup %483 }
 0x15f   : > { %v486_v7 = vpop.eup %485  ;;  %v292_v8 = vadd.f32 1.0, %v484_v6 }
 0x160   : > { %v291_v9 = vadd.f32 1.0, %v486_v7 }
 0x161   : > { %491 = vrcp.f32 %v292_v8 }
 0x162   : > { %v488_v10 = vpop.eup %487  ;;  %493 = vrcp.f32 %v291_v9 }
 0x163   : > { %v490_v11 = vpop.eup %489  ;;  %v294_v12 = vadd.f32 1.0, %v488_v10 }
 0x164   : > { %v293_v13 = vadd.f32 1.0, %v490_v11 }
 0x165   : > { %495 = vrcp.f32 %v294_v12 }
 0x166   : > { %497 = vrcp.f32 %v293_v13 }
 0x16b   : > { %v492_v14 = vpop.eup %491 }
 0x16c   : > { %v494_v15 = vpop.eup %493  ;;  %v304_v16 = vmul.f32 %v492_v14, %v469_v4 }
 0x16d   : > { %v303_v17 = vmul.f32 %v494_v15, %v468_v2 }
 0x16e   : > { %v463_v18 = vpack.c.bf16 %v304_v16, %v304_v16  ;;  %v329_v20 = vsel %vm215_vm0, %v304_v16, 0.0  ;;  %v344_v24 = vsel %vm215_vm0, %v304_v16, -inf }
 0x16f   : > { %v496_v19 = vpop.eup %495  ;;  %v462_v21 = vpack.c.bf16 %v303_v17, %v303_v17  ;;  %v328_v22 = vsel %vm215_vm0, %v303_v17, 0.0  ;;  %v343_v0 = vsel %vm215_vm0, %v303_v17, -inf }
 0x170   : > { %v498_v23 = vpop.eup %497  ;;  %325 = vst.msk [vmem:[%s203_s13 + $0x4] sm:$0xf] %vm323_vm2, %v463_v18  ;;  %v306_v4 = vmul.f32 %v496_v19, %v473_v5  ;;  %v330_v25 = vadd.f32 %v329_v20, %v328_v22  ;;  %v347_v31 = vmax.f32 %v343_v0, %v344_v24 }
 0x171   : > { %324 = vst.msk [vmem:[%s203_s13] sm:$0xf] %vm323_vm2, %v462_v21  ;;  %v305_v2 = vmul.f32 %v498_v23, %v472_v3 }
 0x172   : > { %v465_v26 = vpack.c.bf16 %v306_v4, %v306_v4  ;;  %v346_v27 = vsel %vm215_vm0, %v306_v4, -inf  ;;  %v333_v33 = vsel %vm215_vm0, %v306_v4, 0.0 }
 0x173   : > { %v464_v28 = vpack.c.bf16 %v305_v2, %v305_v2  ;;  %v331_v29 = vsel %vm215_vm0, %v305_v2, 0.0  ;;  %v345_v30 = vsel %vm215_vm0, %v305_v2, -inf }
 0x174   : > { %327 = vst.msk [vmem:[%s203_s13 + $0xc] sm:$0xf] %vm323_vm2, %v465_v26  ;;  %v332_v5 = vadd.f32 %v331_v29, %v330_v25  ;;  %v348_v32 = vmax.f32 %v345_v30, %v346_v27 }
 0x175   : > { %326 = vst.msk [vmem:[%s203_s13 + $0x8] sm:$0xf] %vm323_vm2, %v464_v28 }
 0x176   : > { %v334_v1 = vadd.f32 %v333_v33, %v332_v5  ;;  %v349_v3 = vmax.f32 %v347_v31, %v348_v32 }
 0x178   : > { %v335_v34 = vrot.slane %v334_v1, 4  ;;  %v350_v35 = vrot.slane %v349_v3, 4 }
 0x17a   : > { %v336_v36 = vadd.f32 %v335_v34, %v334_v1  ;;  %v351_v37 = vmax.f32 %v349_v3, %v350_v35 }
 0x17c   : > { %v337_v38 = vrot.slane %v336_v36, 2  ;;  %v352_v39 = vrot.slane %v351_v37, 2 }
 0x17e   : > { %v338_v40 = vadd.f32 %v337_v38, %v336_v36  ;;  %v353_v41 = vmax.f32 %v351_v37, %v352_v39 }
 0x180   : > { %v339_v42 = vrot.slane %v338_v40, 1  ;;  %v354_v43 = vrot.slane %v353_v41, 1 }
 0x182   : > { %v340_v44 = vadd.f32 %v339_v42, %v338_v40  ;;  %v355_v46 = vmax.f32 %v353_v41, %v354_v43 }
 0x184   : > { %v342_v45 = vmul.f32 0.03125, %v340_v44 }
 0x186   : > { %v357_v47 = vsel %vm356_vm3, %v342_v45, %v355_v46 }
 0x187   : > { %v358_v48 = vpack.c.bf16 %v357_v47, %v357_v47 }
 0x189   : > { %360 = vst.msk [vmem:[%s206_s18] sm:$0x1] %vm359_vm4, %v358_v48 }
 0x18a PF: > { %s15_s15 = sadd.s32 1, %s505_s15  }
 0x18b   : > { %p12_p4 = scmp.ge.s32.totalorder %s15_s15, 4  }
 0x18d   :  { %14 = sbr.rel (!%p12_p4) target bundleno = 1 (0x1), region = 74 }

// kernel: generator_forward.30
= control target key start
LH: loop header
LB: loop body
LE: loop exit
PB: predicated region body
PF: predicated region fallthrough
CT: control target
= control target key end

     0   :  { %s385_s9 = smov 0   ;;  %s409_s0 = inlined_call_operand.vmem [shape: bf16[8,98], index: 0, kind: input, shape index: {}]   ;;  %s410_s1 = inlined_call_operand.vmem [shape: bf16[2,98,64], index: 1, kind: input, shape index: {}]   ;;  %s411_s2 = inlined_call_operand.vmem [shape: f32[2,8,64], index: 2, kind: output, shape index: {}]  }
   0x1 LB: > { %s299_s10 = sadd.s32 4294967295, %s366_s9   ;;  %p303_p0 = scmp.ge.s32.totalorder %s366_s9, 1  ;;  %s366_s9 = sphi %s385_s9, %s12_s9  }
   0x2   : > { %p112_p1 = scmp.lt.s32.totalorder %s366_s9, 3 }
   0x4   : > { %p113_p2 = pnand %p303_p0, %p112_p1 }
   0x5   : > { %p133_p3 = scmp.lt.s32.totalorder (!%p113_p2), %s299_s10, 1  ;;  %v368_v0 = vmov (!%p113_p2), 0.0   ;;  %vm369_vm0 = vmmov (!%p113_p2), 0   ;;  %vm200_vm1 = vcmask (!%p113_p2), 1040384   ;;  %v143_v9 = vld [vmem:[%s409_s0] sm:$0xf] (!%p113_p2) }
   0x6   : > { %116 = sbr.rel (%p113_p2) target bundleno = 260 (0x104), region = 28  ;;  %324 = vmatprep.subr.bf16.mxu0 (!%p113_p2), %v368_v0  ;;  %338 = vmatprep.mubr.msk.bf16.mxu0 (!%p113_p2), %vm369_vm0, %v368_v0  ;;  %vm196_vm2 = vcmask (!%p113_p2), 801792   ;;  %vm244_vm3 = vcmask (!%p113_p2), 523264  }
   0xd   : > { %s413_s10 = smov (!%p133_p3, %s299_s10), 1 }
   0xe   : > { %s342_s11 = smul.u32 52, %s413_s10  ;;  %s305_s17 = sshll.u32 %s413_s10, 3 }
   0xf   : > { %s141_s20 = scalar_lea.vmem %s411_s2, %s305_s17 }
  0x10   : > { %s137_s14 = scalar_lea.vmem %s410_s1, %s342_s11 }
  0x11   : > { %v353_v1 = vld [vmem:[%s137_s14] sm:$0xff]   ;;  %v354_v2 = vld [vmem:[%s137_s14 + $0x8] sm:$0xff]   ;;  %v355_v3 = vld [vmem:[%s137_s14 + $0x10] sm:$0xff]  }
  0x12   : > { %325 = vmatpush3.bf16.msra.mxu0 %v353_v1  ;;  %v356_v4 = vld [vmem:[%s137_s14 + $0x18] sm:$0xff]   ;;  %v357_v5 = vld [vmem:[%s137_s14 + $0x20] sm:$0xff]   ;;  %v358_v6 = vld [vmem:[%s137_s14 + $0x28] sm:$0xff]  }
  0x13   : > { %326 = vmatprep.subr.bf16.mxu0 %v368_v0  ;;  %v359_v7 = vld [vmem:[%s137_s14 + $0x30] ss:$0 sps:$4 sm:$0x11]  }
  0x14   : > { %v202_v8 = vsel %vm200_vm1, %v359_v7, 0 }
  0x16   : > { %327 = vmatpush3.bf16.msra.mxu0 %v354_v2 }
  0x17   : > { %328 = vmatprep.subr.bf16.mxu0 %v368_v0 }
  0x1a   : > { %329 = vmatpush3.bf16.msra.mxu0 %v355_v3 }
  0x1b   : > { %330 = vmatprep.subr.bf16.mxu0 %v368_v0 }
  0x1e   : > { %331 = vmatpush3.bf16.msra.mxu0 %v356_v4 }
  0x1f   : > { %332 = vmatprep.subr.bf16.mxu0 %v368_v0 }
  0x22   : > { %333 = vmatpush3.bf16.msra.mxu0 %v357_v5 }
  0x23   : > { %334 = vmatprep.subr.bf16.mxu0 %v368_v0 }
  0x26   : > { %335 = vmatpush3.bf16.msra.mxu0 %v358_v6 }
  0x27   : > { %336 = vmatprep.subr.bf16.mxu0 %v368_v0 }
  0x2a   : > { %337 = vmatpush3.bf16.msra.mxu0 %v202_v8 }
  0x2d   : > { %339 = vmatmul.mubr.msk.bf16.vlgmr.msra.gmra.mrb[0].mxu0 %vm196_vm2, %v143_v9 }
 0x100   : > { %v238_v10 = vpop.f32.mrb[0].mxu0 }
 0x101   : > { %245 = vst.msk [vmem:[%s141_s20] sm:$0xff] %vm244_vm3, %v238_v10  ;;  %v340_v11 = vpop.f32.mrb[1].mxu0 }
 0x102   : > { %v241_v12 = vpop.f32.mrb[2].mxu0 }
 0x103   : > { %v341_v13 = vpop.f32.mrb[3].mxu0 }
 0x104 PF: > { %s12_s9 = sadd.s32 1, %s366_s9  }
 0x105   : > { %p9_p4 = scmp.ge.s32.totalorder %s12_s9, 4  }
 0x107   :  { %11 = sbr.rel (!%p9_p4) target bundleno = 1 (0x1), region = 58 }

// kernel: generator_forward.31
= control target key start
LH: loop header
LB: loop body
LE: loop exit
PB: predicated region body
PF: predicated region fallthrough
CT: control target
= control target key end

     0   :  { %s422_s12 = smov 0   ;;  %s445_s0 = inlined_call_operand.vmem [shape: bf16[2,32,64], index: 0, kind: input, shape index: {}]   ;;  %s446_s1 = inlined_call_operand.vmem [shape: f32[2,1,64], index: 1, kind: input, shape index: {}]   ;;  %s447_s2 = inlined_call_operand.vmem [shape: bf16[2,32,64], index: 2, kind: input, shape index: {}]   ;;  %s448_s3 = inlined_call_operand.vmem [shape: bf16[2,32,64], index: 3, kind: output, shape index: {}]  }
   0x1 LB: > { %s339_s13 = sadd.s32 4294967295, %s400_s12   ;;  %p343_p0 = scmp.ge.s32.totalorder %s400_s12, 1  ;;  %s400_s12 = sphi %s422_s12, %s13_s12  }
   0x2   : > { %p155_p1 = scmp.lt.s32.totalorder %s400_s12, 3 }
   0x4   : > { %p156_p2 = pnand %p343_p0, %p155_p1 }
   0x5   : > { %p187_p3 = scmp.lt.s32.totalorder (!%p156_p2), %s339_s13, 1  ;;  %v229_v4 = vlaneseq (!%p156_p2)  ;;  %vm258_vm0 = vcmask (!%p156_p2), 519168  }
   0x6   : > { %159 = sbr.rel (%p156_p2) target bundleno = 52 (0x34), region = 32 }
   0x7   : > { %v230_v5 = vshrl.u32 (!%p156_p2), %v229_v4, 7 }
   0x9   : > { %v231_v9 = vsub.s32 (!%p156_p2), 0, %v230_v5 }
   0xd   : > { %s450_s13 = smov (!%p187_p3, %s339_s13), 1 }
   0xe   : > { %s194_s16 = scalar_lea.vmem %s446_s1, %s450_s13  ;;  %s357_s17 = sshll.u32 %s450_s13, 4 }
   0xf   : > { %v213_v0 = vld [vmem:[%s194_s16] sm:$0x1]  ;;  %s191_s20 = scalar_lea.vmem %s445_s0, %s357_s17  ;;  %s199_s23 = scalar_lea.vmem %s447_s2, %s357_s17 }
  0x10   : > { %v350_v1 = vmul.f32 -1.442695, %v213_v0  ;;  %v365_v6 = vld [vmem:[%s191_s20] sm:$0xff]   ;;  %v380_v7 = vld [vmem:[%s191_s20 + $0x8] sm:$0xff]   ;;  %s204_s26 = scalar_lea.vmem %s448_s3, %s357_s17 }
  0x11   : > { %v373_v8 = vld [vmem:[%s199_s23] sm:$0xff]   ;;  %v381_v10 = vld [vmem:[%s199_s23 + $0x8] sm:$0xff]   ;;  %v366_v11 = vunpack.c.l.bf16 %v365_v6  ;;  %v367_v12 = vunpack.c.h.bf16 %v365_v6  ;;  %v370_v13 = vunpack.c.l.bf16 %v380_v7  ;;  %v371_v14 = vunpack.c.h.bf16 %v380_v7 }
  0x12   : > { %390 = vpow2.f32 %v350_v1  ;;  %v374_v16 = vunpack.c.l.bf16 %v373_v8  ;;  %v375_v18 = vunpack.c.h.bf16 %v373_v8  ;;  %v378_v19 = vunpack.c.l.bf16 %v381_v10 }
  0x13   : > { %v379_v20 = vunpack.c.h.bf16 %v381_v10 }
  0x1c   : > { %v391_v2 = vpop.eup %390 }
  0x1d   : > { %v217_v3 = vadd.f32 1.0, %v391_v2 }
  0x1f   : > { %392 = vrcp.f32 %v217_v3 }
  0x29   : > { %v393_v15 = vpop.eup %392 }
  0x2a   : > { %v232_v17 = vrot.slane %v393_v15, %v231_v9 }
  0x2c   : > { %v234_v21 = vmul.f32 %v366_v11, %v232_v17  ;;  %v235_v22 = vmul.f32 %v367_v12, %v232_v17  ;;  %v236_v23 = vmul.f32 %v370_v13, %v232_v17  ;;  %v237_v24 = vmul.f32 %v371_v14, %v232_v17 }
  0x2e   : > { %v238_v25 = vadd.f32 %v374_v16, %v234_v21  ;;  %v239_v26 = vadd.f32 %v375_v18, %v235_v22  ;;  %v240_v27 = vadd.f32 %v378_v19, %v236_v23  ;;  %v241_v28 = vadd.f32 %v379_v20, %v237_v24 }
  0x30   : > { %v360_v29 = vpack.c.bf16 %v238_v25, %v238_v25  ;;  %v361_v30 = vpack.c.bf16 %v239_v26, %v239_v26  ;;  %v362_v31 = vpack.c.bf16 %v240_v27, %v240_v27  ;;  %v363_v32 = vpack.c.bf16 %v241_v28, %v241_v28 }
  0x32   : > { %259 = vst.msk [vmem:[%s204_s26] sm:$0xf] %vm258_vm0, %v360_v29  ;;  %260 = vst.msk [vmem:[%s204_s26 + $0x4] sm:$0xf] %vm258_vm0, %v361_v30 }
  0x33   : > { %261 = vst.msk [vmem:[%s204_s26 + $0x8] sm:$0xf] %vm258_vm0, %v362_v31  ;;  %262 = vst.msk [vmem:[%s204_s26 + $0xc] sm:$0xf] %vm258_vm0, %v363_v32 }
  0x34 PF: > { %s13_s12 = sadd.s32 1, %s400_s12  }
  0x35   : > { %p10_p4 = scmp.ge.s32.totalorder %s13_s12, 4  }
  0x37   :  { %12 = sbr.rel (!%p10_p4) target bundleno = 1 (0x1), region = 68 }

// kernel: generator_forward.40
= control target key start
LH: loop header
LB: loop body
LE: loop exit
PB: predicated region body
PF: predicated region fallthrough
CT: control target
= control target key end

     0   :  { %s423_s9 = smov 0   ;;  %s447_s0 = inlined_call_operand.vmem [shape: bf16[16,128], index: 0, kind: input, shape index: {}]   ;;  %s448_s1 = inlined_call_operand.vmem [shape: bf16[2,128,64], index: 1, kind: input, shape index: {}]   ;;  %s449_s2 = inlined_call_operand.vmem [shape: bf16[2,16,64], index: 2, kind: output, shape index: {}]  }
   0x1 LB: > { %s324_s10 = sadd.s32 4294967295, %s404_s9   ;;  %p328_p0 = scmp.ge.s32.totalorder %s404_s9, 1  ;;  %s404_s9 = sphi %s423_s9, %s12_s9  }
   0x2   : > { %p112_p1 = scmp.lt.s32.totalorder %s404_s9, 3 }
   0x4   : > { %p113_p2 = pnand %p328_p0, %p112_p1 }
   0x5   : > { %p134_p3 = scmp.lt.s32.totalorder (!%p113_p2), %s324_s10, 1  ;;  %v406_v0 = vmov (!%p113_p2), 0.0   ;;  %vm407_vm0 = vmmov (!%p113_p2), 0   ;;  %v397_v9 = vld [vmem:[%s447_s0] sm:$0xff] (!%p113_p2)   ;;  %vm266_vm1 = vcmask (!%p113_p2), 519168  }
   0x6   : > { %116 = sbr.rel (%p113_p2) target bundleno = 265 (0x109), region = 28  ;;  %359 = vmatprep.subr.bf16.mxu0 (!%p113_p2), %v406_v0  ;;  %375 = vmatprep.mubr.msk.bf16.mxu0 (!%p113_p2), %vm407_vm0, %v406_v0 }
   0xd   : > { %s451_s10 = smov (!%p134_p3, %s324_s10), 1 }
   0xe   : > { %s346_s11 = sshll.u32 %s451_s10, 6  ;;  %s347_s17 = sshll.u32 %s451_s10, 3 }
   0xf   : > { %s138_s14 = scalar_lea.vmem %s448_s1, %s346_s11  ;;  %s143_s20 = scalar_lea.vmem %s449_s2, %s347_s17 }
  0x10   : > { %v389_v1 = vld [vmem:[%s138_s14] sm:$0xff]   ;;  %v390_v2 = vld [vmem:[%s138_s14 + $0x8] sm:$0xff]   ;;  %v391_v3 = vld [vmem:[%s138_s14 + $0x10] sm:$0xff]  }
  0x11   : > { %360 = vmatpush3.bf16.msra.mxu0 %v389_v1  ;;  %v392_v4 = vld [vmem:[%s138_s14 + $0x18] sm:$0xff]   ;;  %v393_v5 = vld [vmem:[%s138_s14 + $0x20] sm:$0xff]   ;;  %v394_v6 = vld [vmem:[%s138_s14 + $0x28] sm:$0xff]  }
  0x12   : > { %361 = vmatprep.subr.bf16.mxu0 %v406_v0  ;;  %v395_v7 = vld [vmem:[%s138_s14 + $0x30] sm:$0xff]   ;;  %v396_v8 = vld [vmem:[%s138_s14 + $0x38] sm:$0xff]  }
  0x15   : > { %362 = vmatpush3.bf16.msra.mxu0 %v390_v2 }
  0x16   : > { %363 = vmatprep.subr.bf16.mxu0 %v406_v0 }
  0x19   : > { %364 = vmatpush3.bf16.msra.mxu0 %v391_v3 }
  0x1a   : > { %365 = vmatprep.subr.bf16.mxu0 %v406_v0 }
  0x1d   : > { %366 = vmatpush3.bf16.msra.mxu0 %v392_v4 }
  0x1e   : > { %367 = vmatprep.subr.bf16.mxu0 %v406_v0 }
  0x21   : > { %368 = vmatpush3.bf16.msra.mxu0 %v393_v5 }
  0x22   : > { %369 = vmatprep.subr.bf16.mxu0 %v406_v0 }
  0x25   : > { %370 = vmatpush3.bf16.msra.mxu0 %v394_v6 }
  0x26   : > { %371 = vmatprep.subr.bf16.mxu0 %v406_v0 }
  0x29   : > { %372 = vmatpush3.bf16.msra.mxu0 %v395_v7 }
  0x2a   : > { %373 = vmatprep.subr.bf16.mxu0 %v406_v0 }
  0x2d   : > { %374 = vmatpush3.bf16.msra.mxu0 %v396_v8 }
  0x30   : > { %376 = vmatmul.mubr.bf16.vlgmr.msra.gmra.mrb[0].mxu0 %v397_v9 }
 0x103   : > { %v251_v10 = vpop.f32.mrb[0].mxu0 }
 0x104   : > { %v348_v11 = vpack.c.bf16 %v251_v10, %v251_v10  ;;  %v377_v12 = vpop.f32.mrb[1].mxu0 }
 0x105   : > { %v254_v13 = vpop.f32.mrb[2].mxu0 }
 0x106   : > { %267 = vst.msk [vmem:[%s143_s20] sm:$0xf] %vm266_vm1, %v348_v11  ;;  %v349_v14 = vpack.c.bf16 %v254_v13, %v254_v13  ;;  %v378_v15 = vpop.f32.mrb[3].mxu0 }
 0x108   : > { %268 = vst.msk [vmem:[%s143_s20 + $0x4] sm:$0xf] %vm266_vm1, %v349_v14 }
 0x109 PF: > { %s12_s9 = sadd.s32 1, %s404_s9  }
 0x10a   : > { %p9_p4 = scmp.ge.s32.totalorder %s12_s9, 4  }
 0x10c   :  { %11 = sbr.rel (!%p9_p4) target bundleno = 1 (0x1), region = 58 }

// kernel: generator_forward.39
= control target key start
LH: loop header
LB: loop body
LE: loop exit
PB: predicated region body
PF: predicated region fallthrough
CT: control target
= control target key end

     0   :  { %s375_s9 = smov 0   ;;  %s395_s0 = inlined_call_operand.vmem [shape: bf16[16,64], index: 0, kind: input, shape index: {}]   ;;  %s396_s1 = inlined_call_operand.vmem [shape: bf16[2,64,64], index: 1, kind: input, shape index: {}]   ;;  %s397_s2 = inlined_call_operand.vmem [shape: bf16[2,16,64], index: 2, kind: output, shape index: {}]  }
   0x1 LB: > { %s295_s10 = sadd.s32 4294967295, %s356_s9   ;;  %p299_p0 = scmp.ge.s32.totalorder %s356_s9, 1  ;;  %s356_s9 = sphi %s375_s9, %s12_s9  }
   0x2   : > { %p112_p1 = scmp.lt.s32.totalorder %s356_s9, 3 }
   0x4   : > { %p113_p2 = pnand %p299_p0, %p112_p1 }
   0x5   : > { %p134_p3 = scmp.lt.s32.totalorder (!%p113_p2), %s295_s10, 1  ;;  %v358_v0 = vmov (!%p113_p2), 0.0   ;;  %vm359_vm0 = vmmov (!%p113_p2), 0   ;;  %v349_v5 = vld [vmem:[%s395_s0] sm:$0xff] (!%p113_p2)   ;;  %vm184_vm1 = vcmask (!%p113_p2), 523264   ;;  %vm237_vm2 = vcmask (!%p113_p2), 519168  }
   0x6   : > { %116 = sbr.rel (%p113_p2) target bundleno = 249 (0xf9), region = 28  ;;  %323 = vmatprep.subr.bf16.mxu0 (!%p113_p2), %v358_v0  ;;  %331 = vmatprep.mubr.msk.bf16.mxu0 (!%p113_p2), %vm359_vm0, %v358_v0 }
   0xd   : > { %s399_s10 = smov (!%p134_p3, %s295_s10), 1 }
   0xe   : > { %s314_s11 = sshll.u32 %s399_s10, 5  ;;  %s315_s17 = sshll.u32 %s399_s10, 3 }
   0xf   : > { %s138_s14 = scalar_lea.vmem %s396_s1, %s314_s11  ;;  %s143_s20 = scalar_lea.vmem %s397_s2, %s315_s17 }
  0x10   : > { %v345_v1 = vld [vmem:[%s138_s14] sm:$0xff]   ;;  %v346_v2 = vld [vmem:[%s138_s14 + $0x8] sm:$0xff]   ;;  %v347_v3 = vld [vmem:[%s138_s14 + $0x10] sm:$0xff]  }
  0x11   : > { %324 = vmatpush3.bf16.msra.mxu0 %v345_v1  ;;  %v348_v4 = vld [vmem:[%s138_s14 + $0x18] sm:$0xff]  }
  0x12   : > { %325 = vmatprep.subr.bf16.mxu0 %v358_v0 }
  0x15   : > { %326 = vmatpush3.bf16.msra.mxu0 %v346_v2 }
  0x16   : > { %327 = vmatprep.subr.bf16.mxu0 %v358_v0 }
  0x19   : > { %328 = vmatpush3.bf16.msra.mxu0 %v347_v3 }
  0x1a   : > { %329 = vmatprep.subr.bf16.mxu0 %v358_v0 }
  0x1d   : > { %330 = vmatpush3.bf16.msra.mxu0 %v348_v4 }
  0x20   : > { %332 = vmatmul.mubr.msk.bf16.vlgmr.msra.gmra.mrb[0].mxu0 %vm184_vm1, %v349_v5 }
  0xf3   : > { %v222_v6 = vpop.f32.mrb[0].mxu0 }
  0xf4   : > { %v316_v7 = vpack.c.bf16 %v222_v6, %v222_v6  ;;  %v333_v8 = vpop.f32.mrb[1].mxu0 }
  0xf5   : > { %v225_v9 = vpop.f32.mrb[2].mxu0 }
  0xf6   : > { %238 = vst.msk [vmem:[%s143_s20] sm:$0xf] %vm237_vm2, %v316_v7  ;;  %v317_v10 = vpack.c.bf16 %v225_v9, %v225_v9  ;;  %v334_v11 = vpop.f32.mrb[3].mxu0 }
  0xf8   : > { %239 = vst.msk [vmem:[%s143_s20 + $0x4] sm:$0xf] %vm237_vm2, %v317_v10 }
  0xf9 PF: > { %s12_s9 = sadd.s32 1, %s356_s9  }
  0xfa   : > { %p9_p4 = scmp.ge.s32.totalorder %s12_s9, 4  }
  0xfc   :  { %11 = sbr.rel (!%p9_p4) target bundleno = 1 (0x1), region = 58 }

// kernel: generator_forward.37
= control target key start
LH: loop header
LB: loop body
LE: loop exit
PB: predicated region body
PF: predicated region fallthrough
CT: control target
= control target key end

     0   :  { %s349_s9 = smov 0   ;;  %s369_s0 = inlined_call_operand.vmem [shape: bf16[16,32], index: 0, kind: input, shape index: {}]   ;;  %s370_s1 = inlined_call_operand.vmem [shape: bf16[2,32,64], index: 1, kind: input, shape index: {}]   ;;  %s371_s2 = inlined_call_operand.vmem [shape: bf16[2,16,64], index: 2, kind: output, shape index: {}]  }
   0x1 LB: > { %s279_s10 = sadd.s32 4294967295, %s330_s9   ;;  %p283_p0 = scmp.ge.s32.totalorder %s330_s9, 1  ;;  %s330_s9 = sphi %s349_s9, %s12_s9  }
   0x2   : > { %p112_p1 = scmp.lt.s32.totalorder %s330_s9, 3 }
   0x4   : > { %p113_p2 = pnand %p283_p0, %p112_p1 }
   0x5   : > { %p134_p3 = scmp.lt.s32.totalorder (!%p113_p2), %s279_s10, 1  ;;  %v332_v0 = vmov (!%p113_p2), 0.0   ;;  %vm333_vm0 = vmmov (!%p113_p2), 0   ;;  %v323_v3 = vld [vmem:[%s369_s0] sm:$0xff] (!%p113_p2)   ;;  %vm168_vm1 = vcmask (!%p113_p2), 261120   ;;  %vm221_vm2 = vcmask (!%p113_p2), 519168  }
   0x6   : > { %116 = sbr.rel (%p113_p2) target bundleno = 241 (0xf1), region = 28  ;;  %303 = vmatprep.subr.bf16.mxu0 (!%p113_p2), %v332_v0  ;;  %307 = vmatprep.mubr.msk.bf16.mxu0 (!%p113_p2), %vm333_vm0, %v332_v0 }
   0xd   : > { %s373_s10 = smov (!%p134_p3, %s279_s10), 1 }
   0xe   : > { %s296_s11 = sshll.u32 %s373_s10, 4  ;;  %s297_s17 = sshll.u32 %s373_s10, 3 }
   0xf   : > { %s138_s14 = scalar_lea.vmem %s370_s1, %s296_s11  ;;  %s143_s20 = scalar_lea.vmem %s371_s2, %s297_s17 }
  0x10   : > { %v321_v1 = vld [vmem:[%s138_s14] sm:$0xff]   ;;  %v322_v2 = vld [vmem:[%s138_s14 + $0x8] sm:$0xff]  }
  0x11   : > { %304 = vmatpush3.bf16.msra.mxu0 %v321_v1 }
  0x12   : > { %305 = vmatprep.subr.bf16.mxu0 %v332_v0 }
  0x15   : > { %306 = vmatpush3.bf16.msra.mxu0 %v322_v2 }
  0x18   : > { %308 = vmatmul.mubr.msk.bf16.vlgmr.msra.gmra.mrb[0].mxu0 %vm168_vm1, %v323_v3 }
  0xeb   : > { %v206_v4 = vpop.f32.mrb[0].mxu0 }
  0xec   : > { %v298_v5 = vpack.c.bf16 %v206_v4, %v206_v4  ;;  %v309_v6 = vpop.f32.mrb[1].mxu0 }
  0xed   : > { %v209_v7 = vpop.f32.mrb[2].mxu0 }
  0xee   : > { %222 = vst.msk [vmem:[%s143_s20] sm:$0xf] %vm221_vm2, %v298_v5  ;;  %v299_v8 = vpack.c.bf16 %v209_v7, %v209_v7  ;;  %v310_v9 = vpop.f32.mrb[3].mxu0 }
  0xf0   : > { %223 = vst.msk [vmem:[%s143_s20 + $0x4] sm:$0xf] %vm221_vm2, %v299_v8 }
  0xf1 PF: > { %s12_s9 = sadd.s32 1, %s330_s9  }
  0xf2   : > { %p9_p4 = scmp.ge.s32.totalorder %s12_s9, 4  }
  0xf4   :  { %11 = sbr.rel (!%p9_p4) target bundleno = 1 (0x1), region = 58 }

// kernel: generator_forward.41
= control target key start
LH: loop header
LB: loop body
LE: loop exit
PB: predicated region body
PF: predicated region fallthrough
CT: control target
= control target key end

     0   :  { %s248_s6 = smov 0   ;;  %s268_s0 = inlined_call_operand.vmem [shape: bf16[32,256], index: 0, kind: input, shape index: {}]   ;;  %s269_s1 = inlined_call_operand.vmem [shape: bf16[32,256], index: 1, kind: output, shape index: {}]  }
   0x1 LB: > { %s205_s7 = sadd.s32 4294967295, %s236_s6   ;;  %p209_p0 = scmp.ge.s32.totalorder %s236_s6, 1  ;;  %s236_s6 = sphi %s248_s6, %s11_s6  }
   0x2   : > { %p87_p1 = scmp.lt.s32.totalorder %s236_s6, 5 }
   0x4   : > { %p88_p2 = pnand %p209_p0, %p87_p1 }
   0x5   : > { %p107_p3 = scmp.lt.s32.totalorder (!%p88_p2), %s205_s7, 3 }
   0x6   : > { %91 = sbr.rel (%p88_p2) target bundleno = 193 (0xc1), region = 24 }
   0xd   : > { %s271_s7 = smov (!%p107_p3, %s205_s7), 3 }
   0xe   : > { %s217_s8 = sshll.u32 %s271_s7, 3 }
   0xf   : > { %s111_s11 = scalar_lea.vmem %s268_s0, %s217_s8  ;;  %s116_s14 = scalar_lea.vmem %s269_s1, %s217_s8 }
  0x10   : > { %v117_v0 = vld [vmem:[%s111_s11] sm:$0xff] }
  0x11   : > { %v118_v1 = vunpack.c.l.bf16 %v117_v0  ;;  %v119_v2 = vunpack.c.h.bf16 %v117_v0 }
  0x13   : > { %v120_v3 = vadd.f32 %v119_v2, %v118_v1  ;;  %v124_v4 = vmul.f32 %v118_v1, %v118_v1  ;;  %v125_v5 = vmul.f32 %v119_v2, %v119_v2 }
  0x15   : > { %121 = vadd.xlane.f32.xlu0 %v120_v3  ;;  %v126_v6 = vadd.f32 %v125_v5, %v124_v4 }
  0x19   : > { %127 = vadd.xlane.f32.xlu0 %v126_v6 }
  0xa2   : > { %v122_v7 = vpop.xlane.xlu0 %121 }
  0xa3   : > { %v123_v8 = vmul.f32 0.00390625, %v122_v7 }
  0xa5   : > { %v130_v10 = vmul.f32 %v123_v8, %v123_v8  ;;  %v133_v15 = vsub.f32 %v118_v1, %v123_v8  ;;  %v134_v16 = vsub.f32 %v119_v2, %v123_v8 }
  0xa6   : > { %v128_v9 = vpop.xlane.xlu0 %127 }
  0xa7   : > { %v129_v11 = vmul.f32 0.00390625, %v128_v9 }
  0xa9   : > { %v131_v12 = vsub.f32 %v129_v11, %v130_v10 }
  0xab   : > { %v132_v13 = vmax.f32 %v131_v12, 0.0 }
  0xad   : > { %v135_v14 = vadd.f32 1e-05, %v132_v13 }
  0xaf   : > { %228 = vrsqrt.f32 %v135_v14 }
  0xb9   : > { %v229_v17 = vpop.eup %228 }
  0xba   : > { %v137_v18 = vmul.f32 %v229_v17, %v133_v15  ;;  %v138_v19 = vmul.f32 %v229_v17, %v134_v16 }
  0xbc   : > { %v139_v20 = vmax.f32 %v137_v18, 0.0  ;;  %v140_v21 = vmax.f32 %v138_v19, 0.0 }
  0xbe   : > { %v219_v22 = vpack.c.bf16 %v140_v21, %v139_v20 }
  0xc0   : > { %149 = vst [vmem:[%s116_s14] sm:$0xff] %v219_v22 }
  0xc1 PF: > { %s11_s6 = sadd.s32 1, %s236_s6  }
  0xc2   : > { %p8_p4 = scmp.ge.s32.totalorder %s11_s6, 6  }
  0xc4   :  { %10 = sbr.rel (!%p8_p4) target bundleno = 1 (0x1), region = 54 }

// kernel: generator_forward.43
= control target key start
LH: loop header
LB: loop body
LE: loop exit
PB: predicated region body
PF: predicated region fallthrough
CT: control target
= control target key end

     0   :  { %s338_s9 = smov 0   ;;  %s358_s0 = inlined_call_operand.vmem [shape: bf16[8,32], index: 0, kind: input, shape index: {}]   ;;  %s359_s1 = inlined_call_operand.vmem [shape: bf16[2,32,256], index: 1, kind: input, shape index: {}]   ;;  %s360_s2 = inlined_call_operand.vmem [shape: bf16[2,8,256], index: 2, kind: output, shape index: {}]  }
   0x1 LB: > { %s279_s10 = sadd.s32 4294967295, %s320_s9   ;;  %p283_p0 = scmp.ge.s32.totalorder %s320_s9, 1  ;;  %s320_s9 = sphi %s338_s9, %s12_s9  }
   0x2   : > { %p112_p1 = scmp.lt.s32.totalorder %s320_s9, 3 }
   0x4   : > { %p113_p2 = pnand %p283_p0, %p112_p1 }
   0x5   : > { %p134_p3 = scmp.lt.s32.totalorder (!%p113_p2), %s279_s10, 1  ;;  %v322_v0 = vmov (!%p113_p2), 0   ;;  %v145_v5 = vld [vmem:[%s358_s0] sm:$0xf] (!%p113_p2)  ;;  %vm170_vm0 = vcmask (!%p113_p2), 261120  }
   0x6   : > { %116 = sbr.rel (%p113_p2) target bundleno = 241 (0xf1), region = 28  ;;  %206 = vmatprep.mubr.bf16.mxu0 (!%p113_p2), %v322_v0 }
   0xd   : > { %s362_s10 = smov (!%p134_p3, %s279_s10), 1 }
   0xe   : > { %s296_s11 = sshll.u32 %s362_s10, 5  ;;  %s297_s17 = sshll.u32 %s362_s10, 3 }
   0xf   : > { %s138_s14 = scalar_lea.vmem %s359_s1, %s296_s11  ;;  %s143_s20 = scalar_lea.vmem %s360_s2, %s297_s17 }
  0x10   : > { %v308_v1 = vld [vmem:[%s138_s14 + $0x4] ss:$8 sps:$4 sm:$0xff]   ;;  %v310_v2 = vld [vmem:[%s138_s14] ss:$8 sps:$4 sm:$0xff]   ;;  %v311_v3 = vld [vmem:[%s138_s14 + $0x14] ss:$8 sps:$4 sm:$0xff]  }
  0x11   : > { %174 = vmatprep.subr.bf16.mxu0 %v308_v1  ;;  %v313_v4 = vld [vmem:[%s138_s14 + $0x10] ss:$8 sps:$4 sm:$0xff]  }
  0x12   : > { %175 = vmatpush1.bf16.msra.mxu0 %v310_v2 }
  0x13   : > { %176 = vmatprep.subr.bf16.mxu0 %v311_v3 }
  0x16   : > { %177 = vmatpush1.bf16.msra.mxu0 %v313_v4 }
  0x19   : > { %292 = vmatmul.mubr.msk.bf16.vlgmr.msra.gmra.mrb[0].mxu0 %vm170_vm0, %v145_v5 }
  0xec   : > { %v208_v6 = vpop.f32.mrb[0].mxu0 }
  0xed   : > { %v210_v7 = vpop.f32.mrb[1].mxu0 }
  0xee   : > { %v298_v8 = vpack.c.bf16 %v210_v7, %v208_v6  ;;  %v212_v9 = vpop.f32.mrb[2].mxu0 }
  0xef   : > { %v213_v10 = vpop.f32.mrb[3].mxu0 }
  0xf0   : > { %223 = vst [vmem:[%s143_s20] sm:$0xff] %v298_v8 }
  0xf1 PF: > { %s12_s9 = sadd.s32 1, %s320_s9  }
  0xf2   : > { %p9_p4 = scmp.ge.s32.totalorder %s12_s9, 4  }
  0xf4   :  { %11 = sbr.rel (!%p9_p4) target bundleno = 1 (0x1), region = 58 }

// kernel: generator_forward.42
= control target key start
LH: loop header
LB: loop body
LE: loop exit
PB: predicated region body
PF: predicated region fallthrough
CT: control target
= control target key end

     0   :  { %s321_s9 = smov 0   ;;  %s341_s0 = inlined_call_operand.vmem [shape: bf16[8,16], index: 0, kind: input, shape index: {}]   ;;  %s342_s1 = inlined_call_operand.vmem [shape: bf16[2,16,256], index: 1, kind: input, shape index: {}]   ;;  %s343_s2 = inlined_call_operand.vmem [shape: bf16[2,8,256], index: 2, kind: output, shape index: {}]  }
   0x1 LB: > { %s267_s10 = sadd.s32 4294967295, %s303_s9   ;;  %p271_p0 = scmp.ge.s32.totalorder %s303_s9, 1  ;;  %s303_s9 = sphi %s321_s9, %s12_s9  }
   0x2   : > { %p112_p1 = scmp.lt.s32.totalorder %s303_s9, 3 }
   0x4   : > { %p113_p2 = pnand %p271_p0, %p112_p1 }
   0x5   : > { %p134_p3 = scmp.lt.s32.totalorder (!%p113_p2), %s267_s10, 1  ;;  %v305_v0 = vmov (!%p113_p2), 0   ;;  %v145_v3 = vld [vmem:[%s341_s0] sm:$0xf] (!%p113_p2)  ;;  %vm158_vm0 = vcmask (!%p113_p2), 130048  }
   0x6   : > { %116 = sbr.rel (%p113_p2) target bundleno = 237 (0xed), region = 28  ;;  %194 = vmatprep.mubr.bf16.mxu0 (!%p113_p2), %v305_v0 }
   0xd   : > { %s345_s10 = smov (!%p134_p3, %s267_s10), 1 }
   0xe   : > { %s282_s11 = sshll.u32 %s345_s10, 4  ;;  %s283_s17 = sshll.u32 %s345_s10, 3 }
   0xf   : > { %s138_s14 = scalar_lea.vmem %s342_s1, %s282_s11  ;;  %s143_s20 = scalar_lea.vmem %s343_s2, %s283_s17 }
  0x10   : > { %v294_v1 = vld [vmem:[%s138_s14 + $0x4] ss:$8 sps:$4 sm:$0xff]   ;;  %v296_v2 = vld [vmem:[%s138_s14] ss:$8 sps:$4 sm:$0xff]  }
  0x11   : > { %162 = vmatprep.subr.bf16.mxu0 %v294_v1 }
  0x12   : > { %163 = vmatpush1.bf16.msra.mxu0 %v296_v2 }
  0x15   : > { %278 = vmatmul.mubr.msk.bf16.vlgmr.msra.gmra.mrb[0].mxu0 %vm158_vm0, %v145_v3 }
  0xe8   : > { %v196_v4 = vpop.f32.mrb[0].mxu0 }
  0xe9   : > { %v198_v5 = vpop.f32.mrb[1].mxu0 }
  0xea   : > { %v284_v6 = vpack.c.bf16 %v198_v5, %v196_v4  ;;  %v200_v7 = vpop.f32.mrb[2].mxu0 }
  0xeb   : > { %v201_v8 = vpop.f32.mrb[3].mxu0 }
  0xec   : > { %211 = vst [vmem:[%s143_s20] sm:$0xff] %v284_v6 }
  0xed PF: > { %s12_s9 = sadd.s32 1, %s303_s9  }
  0xee   : > { %p9_p4 = scmp.ge.s32.totalorder %s12_s9, 4  }
  0xf0   :  { %11 = sbr.rel (!%p9_p4) target bundleno = 1 (0x1), region = 58 }

// kernel: generator_forward.45
= control target key start
LH: loop header
LB: loop body
LE: loop exit
PB: predicated region body
PF: predicated region fallthrough
CT: control target
= control target key end

     0   :  { %s372_s9 = smov 0   ;;  %s392_s0 = inlined_call_operand.vmem [shape: bf16[8,64], index: 0, kind: input, shape index: {}]   ;;  %s393_s1 = inlined_call_operand.vmem [shape: bf16[2,64,256], index: 1, kind: input, shape index: {}]   ;;  %s394_s2 = inlined_call_operand.vmem [shape: bf16[2,8,256], index: 2, kind: output, shape index: {}]  }
   0x1 LB: > { %s303_s10 = sadd.s32 4294967295, %s354_s9   ;;  %p307_p0 = scmp.ge.s32.totalorder %s354_s9, 1  ;;  %s354_s9 = sphi %s372_s9, %s12_s9  }
   0x2   : > { %p112_p1 = scmp.lt.s32.totalorder %s354_s9, 3 }
   0x4   : > { %p113_p2 = pnand %p307_p0, %p112_p1 }
   0x5   : > { %p134_p3 = scmp.lt.s32.totalorder (!%p113_p2), %s303_s10, 1  ;;  %v356_v0 = vmov (!%p113_p2), 0   ;;  %v145_v9 = vld [vmem:[%s392_s0] sm:$0xf] (!%p113_p2)  ;;  %vm194_vm0 = vcmask (!%p113_p2), 523264  }
   0x6   : > { %116 = sbr.rel (%p113_p2) target bundleno = 249 (0xf9), region = 28  ;;  %230 = vmatprep.mubr.bf16.mxu0 (!%p113_p2), %v356_v0 }
   0xd   : > { %s396_s10 = smov (!%p134_p3, %s303_s10), 1 }
   0xe   : > { %s324_s11 = sshll.u32 %s396_s10, 6  ;;  %s325_s17 = sshll.u32 %s396_s10, 3 }
   0xf   : > { %s138_s14 = scalar_lea.vmem %s393_s1, %s324_s11  ;;  %s143_s20 = scalar_lea.vmem %s394_s2, %s325_s17 }
  0x10   : > { %v336_v1 = vld [vmem:[%s138_s14 + $0x4] ss:$8 sps:$4 sm:$0xff]   ;;  %v338_v2 = vld [vmem:[%s138_s14] ss:$8 sps:$4 sm:$0xff]   ;;  %v339_v3 = vld [vmem:[%s138_s14 + $0x14] ss:$8 sps:$4 sm:$0xff]  }
  0x11   : > { %198 = vmatprep.subr.bf16.mxu0 %v336_v1  ;;  %v341_v4 = vld [vmem:[%s138_s14 + $0x10] ss:$8 sps:$4 sm:$0xff]   ;;  %v342_v5 = vld [vmem:[%s138_s14 + $0x24] ss:$8 sps:$4 sm:$0xff]   ;;  %v344_v6 = vld [vmem:[%s138_s14 + $0x20] ss:$8 sps:$4 sm:$0xff]  }
  0x12   : > { %199 = vmatpush1.bf16.msra.mxu0 %v338_v2  ;;  %v345_v7 = vld [vmem:[%s138_s14 + $0x34] ss:$8 sps:$4 sm:$0xff]   ;;  %v347_v8 = vld [vmem:[%s138_s14 + $0x30] ss:$8 sps:$4 sm:$0xff]  }
  0x13   : > { %200 = vmatprep.subr.bf16.mxu0 %v339_v3 }
  0x16   : > { %201 = vmatpush1.bf16.msra.mxu0 %v341_v4 }
  0x17   : > { %202 = vmatprep.subr.bf16.mxu0 %v342_v5 }
  0x1a   : > { %203 = vmatpush1.bf16.msra.mxu0 %v344_v6 }
  0x1b   : > { %204 = vmatprep.subr.bf16.mxu0 %v345_v7 }
  0x1e   : > { %205 = vmatpush1.bf16.msra.mxu0 %v347_v8 }
  0x21   : > { %320 = vmatmul.mubr.msk.bf16.vlgmr.msra.gmra.mrb[0].mxu0 %vm194_vm0, %v145_v9 }
  0xf4   : > { %v232_v10 = vpop.f32.mrb[0].mxu0 }
  0xf5   : > { %v234_v11 = vpop.f32.mrb[1].mxu0 }
  0xf6   : > { %v326_v12 = vpack.c.bf16 %v234_v11, %v232_v10  ;;  %v236_v13 = vpop.f32.mrb[2].mxu0 }
  0xf7   : > { %v237_v14 = vpop.f32.mrb[3].mxu0 }
  0xf8   : > { %247 = vst [vmem:[%s143_s20] sm:$0xff] %v326_v12 }
  0xf9 PF: > { %s12_s9 = sadd.s32 1, %s354_s9  }
  0xfa   : > { %p9_p4 = scmp.ge.s32.totalorder %s12_s9, 4  }
  0xfc   :  { %11 = sbr.rel (!%p9_p4) target bundleno = 1 (0x1), region = 58 }

// kernel: generator_forward.46
= control target key start
LH: loop header
LB: loop body
LE: loop exit
PB: predicated region body
PF: predicated region fallthrough
CT: control target
= control target key end

     0   :  { %s326_s6 = smov 0   ;;  %s350_s0 = inlined_call_operand.vmem [shape: bf16[16,1024], index: 0, kind: input, shape index: {}]   ;;  %s351_s1 = inlined_call_operand.vmem [shape: bf16[16,1024], index: 1, kind: output, shape index: {}]  }
   0x1 LB: > { %s277_s7 = sadd.s32 4294967295, %s314_s6   ;;  %p281_p0 = scmp.ge.s32.totalorder %s314_s6, 1  ;;  %s314_s6 = sphi %s326_s6, %s11_s6  }
   0x2   : > { %p87_p1 = scmp.lt.s32.totalorder %s314_s6, 3 }
   0x4   : > { %p88_p2 = pnand %p281_p0, %p87_p1 }
   0x5   : > { %p107_p3 = scmp.lt.s32.totalorder (!%p88_p2), %s277_s7, 1 }
   0x6   : > { %91 = sbr.rel (%p88_p2) target bundleno = 206 (0xce), region = 24 }
   0xd   : > { %s353_s7 = smov (!%p107_p3, %s277_s7), 1 }
   0xe   : > { %s292_s8 = sshll.u32 %s353_s7, 5 }
   0xf   : > { %s111_s11 = scalar_lea.vmem %s350_s0, %s292_s8  ;;  %s116_s14 = scalar_lea.vmem %s351_s1, %s292_s8 }
  0x10   : > { %v117_v0 = vld [vmem:[%s111_s11] sm:$0xff]  ;;  %v118_v1 = vld [vmem:[%s111_s11 + $0x8] sm:$0xff]  ;;  %v119_v5 = vld [vmem:[%s111_s11 + $0x10] sm:$0xff] }
  0x11   : > { %v121_v2 = vunpack.c.l.bf16 %v117_v0  ;;  %v122_v3 = vunpack.c.h.bf16 %v117_v0  ;;  %v123_v4 = vunpack.c.l.bf16 %v118_v1  ;;  %v124_v6 = vunpack.c.h.bf16 %v118_v1  ;;  %v120_v15 = vld [vmem:[%s111_s11 + $0x18] sm:$0xff] }
  0x12   : > { %v125_v11 = vunpack.c.l.bf16 %v119_v5  ;;  %v126_v16 = vunpack.c.h.bf16 %v119_v5  ;;  %v127_v20 = vunpack.c.l.bf16 %v120_v15  ;;  %v128_v24 = vunpack.c.h.bf16 %v120_v15 }
  0x13   : > { %v129_v7 = vadd.f32 %v122_v3, %v121_v2  ;;  %v139_v8 = vmul.f32 %v121_v2, %v121_v2  ;;  %v140_v9 = vmul.f32 %v122_v3, %v122_v3  ;;  %v141_v10 = vmul.f32 %v123_v4, %v123_v4 }
  0x14   : > { %v142_v13 = vmul.f32 %v124_v6, %v124_v6  ;;  %v143_v18 = vmul.f32 %v125_v11, %v125_v11  ;;  %v144_v22 = vmul.f32 %v126_v16, %v126_v16  ;;  %v145_v26 = vmul.f32 %v127_v20, %v127_v20 }
  0x15   : > { %v130_v12 = vadd.f32 %v129_v7, %v123_v4  ;;  %v147_v14 = vadd.f32 %v140_v9, %v139_v8  ;;  %v146_v29 = vmul.f32 %v128_v24, %v128_v24 }
  0x17   : > { %v131_v17 = vadd.f32 %v130_v12, %v124_v6  ;;  %v148_v19 = vadd.f32 %v147_v14, %v141_v10 }
  0x19   : > { %v132_v21 = vadd.f32 %v131_v17, %v125_v11  ;;  %v149_v23 = vadd.f32 %v148_v19, %v142_v13 }
  0x1b   : > { %v133_v25 = vadd.f32 %v132_v21, %v126_v16  ;;  %v150_v27 = vadd.f32 %v149_v23, %v143_v18 }
  0x1d   : > { %v134_v28 = vadd.f32 %v133_v25, %v127_v20  ;;  %v151_v30 = vadd.f32 %v150_v27, %v144_v22 }
  0x1f   : > { %v135_v31 = vadd.f32 %v134_v28, %v128_v24  ;;  %v152_v32 = vadd.f32 %v151_v30, %v145_v26 }
  0x21   : > { %136 = vadd.xlane.f32.xlu0 %v135_v31  ;;  %v153_v33 = vadd.f32 %v152_v32, %v146_v29 }
  0x25   : > { %154 = vadd.xlane.f32.xlu0 %v153_v33 }
  0xae   : > { %v137_v34 = vpop.xlane.xlu0 %136 }
  0xaf   : > { %v138_v35 = vmul.f32 0.0009765625, %v137_v34 }
  0xb1   : > { %v157_v37 = vmul.f32 %v138_v35, %v138_v35  ;;  %v160_v42 = vsub.f32 %v121_v2, %v138_v35  ;;  %v161_v43 = vsub.f32 %v122_v3, %v138_v35  ;;  %v162_v44 = vsub.f32 %v123_v4, %v138_v35 }
  0xb2   : > { %v155_v36 = vpop.xlane.xlu0 %154  ;;  %v163_v45 = vsub.f32 %v124_v6, %v138_v35  ;;  %v164_v47 = vsub.f32 %v125_v11, %v138_v35  ;;  %v165_v48 = vsub.f32 %v126_v16, %v138_v35  ;;  %v166_v49 = vsub.f32 %v127_v20, %v138_v35 }
  0xb3   : > { %v156_v38 = vmul.f32 0.0009765625, %v155_v36  ;;  %v167_v50 = vsub.f32 %v128_v24, %v138_v35 }
  0xb5   : > { %v158_v39 = vsub.f32 %v156_v38, %v157_v37 }
  0xb7   : > { %v159_v40 = vmax.f32 %v158_v39, 0.0 }
  0xb9   : > { %v168_v41 = vadd.f32 1e-05, %v159_v40 }
  0xbb   : > { %306 = vrsqrt.f32 %v168_v41 }
  0xc5   : > { %v307_v46 = vpop.eup %306 }
  0xc6   : > { %v170_v51 = vmul.f32 %v307_v46, %v160_v42  ;;  %v171_v52 = vmul.f32 %v307_v46, %v161_v43  ;;  %v172_v53 = vmul.f32 %v307_v46, %v162_v44  ;;  %v173_v54 = vmul.f32 %v307_v46, %v163_v45 }
  0xc7   : > { %v174_v55 = vmul.f32 %v307_v46, %v164_v47  ;;  %v175_v56 = vmul.f32 %v307_v46, %v165_v48  ;;  %v176_v57 = vmul.f32 %v307_v46, %v166_v49  ;;  %v177_v58 = vmul.f32 %v307_v46, %v167_v50 }
  0xc8   : > { %v178_v59 = vmax.f32 %v170_v51, 0.0  ;;  %v179_v60 = vmax.f32 %v171_v52, 0.0  ;;  %v180_v61 = vmax.f32 %v172_v53, 0.0  ;;  %v181_v62 = vmax.f32 %v173_v54, 0.0 }
  0xc9   : > { %v182_v63 = vmax.f32 %v174_v55, 0.0  ;;  %v183_v0 = vmax.f32 %v175_v56, 0.0  ;;  %v184_v1 = vmax.f32 %v176_v57, 0.0  ;;  %v185_v2 = vmax.f32 %v177_v58, 0.0 }
  0xca   : > { %v294_v3 = vpack.c.bf16 %v179_v60, %v178_v59  ;;  %v295_v4 = vpack.c.bf16 %v181_v62, %v180_v61 }
  0xcb   : > { %v296_v5 = vpack.c.bf16 %v183_v0, %v182_v63  ;;  %v297_v6 = vpack.c.bf16 %v185_v2, %v184_v1 }
  0xcc   : > { %218 = vst [vmem:[%s116_s14] sm:$0xff] %v294_v3  ;;  %219 = vst [vmem:[%s116_s14 + $0x8] sm:$0xff] %v295_v4 }
  0xcd   : > { %220 = vst [vmem:[%s116_s14 + $0x10] sm:$0xff] %v296_v5  ;;  %221 = vst [vmem:[%s116_s14 + $0x18] sm:$0xff] %v297_v6 }
  0xce PF: > { %s11_s6 = sadd.s32 1, %s314_s6  }
  0xcf   : > { %p8_p4 = scmp.ge.s32.totalorder %s11_s6, 4  }
  0xd1   :  { %10 = sbr.rel (!%p8_p4) target bundleno = 1 (0x1), region = 54 }

// kernel: generator_forward.47
= control target key start
LH: loop header
LB: loop body
LE: loop exit
PB: predicated region body
PF: predicated region fallthrough
CT: control target
= control target key end

     0   :  { %s2112_s12 = smov 0   ;;  %s2398_s0 = inlined_call_operand.vmem [shape: bf16[8,392], index: 0, kind: input, shape index: {}]   ;;  %s2399_s1 = inlined_call_operand.vmem [shape: bf16[2,392,1024], index: 1, kind: input, shape index: {}]   ;;  %s2400_s2 = inlined_call_operand.vmem [shape: f32[8,1], index: 2, kind: input, shape index: {}]   ;;  %s2401_s3 = inlined_call_operand.vmem [shape: f32[2,8,1024], index: 3, kind: output, shape index: {}]  }
   0x1 LB: > { %s1797_s13 = sadd.s32 4294967295, %s2089_s12   ;;  %p1801_p0 = scmp.ge.s32.totalorder %s2089_s12, 1  ;;  %s2089_s12 = sphi %s2112_s12, %s13_s12  }
   0x2   : > { %p137_p1 = scmp.lt.s32.totalorder %s2089_s12, 3 }
   0x4   : > { %p138_p2 = pnand %p1801_p0, %p137_p1 }
   0x5   : > { %p161_p3 = scmp.lt.s32.totalorder (!%p138_p2), %s1797_s13, 1  ;;  %v2123_v0 = vld [vmem:[%s2398_s0] sm:$0xff] (!%p138_p2)  ;;  %vm1369_vm0 = vcmask (!%p138_p2), 64512   ;;  %vm1373_vm1 = vcmask (!%p138_p2), 1043456  }
   0x6   : > { %141 = sbr.rel (%p138_p2) target bundleno = 450 (0x1c2), region = 32  ;;  %v2127_v1 = vcombine.high (!%p138_p2), %v2123_v0, %v2123_v0 }
   0x8   : > { %1430 = vmatprep.mubr.bf16.mxu0 (!%p138_p2), %v2127_v1  ;;  %1512 = vmatprep.mubr.bf16.mxu1 (!%p138_p2), %v2127_v1 }
   0xd   : > { %s2403_s13 = smov (!%p161_p3, %s1797_s13), 1 }
   0xe   : > { %s2044_s16 = smul.u32 1568, %s2403_s13  ;;  %s2019_s24 = sshll.u32 %s2403_s13, 6 }
   0xf   : > { %s2385_s27 = scalar_lea.vmem %s2401_s3, %s2019_s24 }
  0x10   : > { %s2137_s19 = scalar_lea.vmem %s2399_s1, %s2044_s16 }
  0x11   : > { %v174_v2 = vld [vmem:[%s2137_s19] sm:$0xff]  ;;  %v175_v4 = vld [vmem:[%s2137_s19 + $0x8] sm:$0xff] }
  0x12   : > { %v178_v3 = vld [vmem:[%s2137_s19 + $0x20] sm:$0xff]  ;;  %v179_v6 = vld [vmem:[%s2137_s19 + $0x28] sm:$0xff] }
  0x13   : > { %v1810_v5 = vcombine.high %v174_v2, %v178_v3  ;;  %v1809_v7 = vcombine.low %v174_v2, %v178_v3  ;;  %v182_v8 = vld [vmem:[%s2137_s19 + $0x40] sm:$0xff]  ;;  %v1812_v10 = vcombine.high %v175_v4, %v179_v6  ;;  %v1811_v11 = vcombine.low %v175_v4, %v179_v6  ;;  %v183_v13 = vld [vmem:[%s2137_s19 + $0x48] sm:$0xff] }
  0x14   : > { %v186_v9 = vld [vmem:[%s2137_s19 + $0x60] sm:$0xff]  ;;  %v187_v14 = vld [vmem:[%s2137_s19 + $0x68] sm:$0xff] }
  0x15   : > { %v1818_v12 = vcombine.high %v182_v8, %v186_v9  ;;  %v190_v15 = vld [vmem:[%s2137_s19 + $0x80] sm:$0xff]  ;;  %1398 = vmatprep.subr.bf16.mxu0 %v1810_v5  ;;  %v1820_v16 = vcombine.high %v183_v13, %v187_v14  ;;  %v191_v18 = vld [vmem:[%s2137_s19 + $0x88] sm:$0xff]  ;;  %1480 = vmatprep.subr.bf16.mxu1 %v1812_v10  ;;  %v1817_v20 = vcombine.low %v182_v8, %v186_v9 }
  0x16   : > { %v194_v17 = vld [vmem:[%s2137_s19 + $0xa0] sm:$0xff]  ;;  %v195_v19 = vld [vmem:[%s2137_s19 + $0xa8] sm:$0xff]  ;;  %1399 = vmatpush1.bf16.msra.mxu0 %v1809_v7  ;;  %1481 = vmatpush1.bf16.msra.mxu1 %v1811_v11  ;;  %v1819_v21 = vcombine.low %v183_v13, %v187_v14 }
  0x17   : > { %1400 = vmatprep.subr.bf16.mxu0 %v1818_v12  ;;  %v1826_v22 = vcombine.high %v190_v15, %v194_v17  ;;  %1482 = vmatprep.subr.bf16.mxu1 %v1820_v16  ;;  %v1828_v23 = vcombine.high %v191_v18, %v195_v19  ;;  %v198_v24 = vld [vmem:[%s2137_s19 + $0xc0] sm:$0xff]  ;;  %v199_v26 = vld [vmem:[%s2137_s19 + $0xc8] sm:$0xff]  ;;  %v1825_v28 = vcombine.low %v190_v15, %v194_v17 }
  0x18   : > { %v202_v25 = vld [vmem:[%s2137_s19 + $0xe0] sm:$0xff]  ;;  %v203_v27 = vld [vmem:[%s2137_s19 + $0xe8] sm:$0xff]  ;;  %v1827_v29 = vcombine.low %v191_v18, %v195_v19 }
  0x19   : > { %v1834_v30 = vcombine.high %v198_v24, %v202_v25  ;;  %v1836_v31 = vcombine.high %v199_v26, %v203_v27  ;;  %v206_v32 = vld [vmem:[%s2137_s19 + $0x100] sm:$0xff]  ;;  %v207_v34 = vld [vmem:[%s2137_s19 + $0x108] sm:$0xff]  ;;  %v1833_v36 = vcombine.low %v198_v24, %v202_v25  ;;  %v1835_v37 = vcombine.low %v199_v26, %v203_v27 }
  0x1a   : > { %1401 = vmatpush1.bf16.msra.mxu0 %v1817_v20  ;;  %1483 = vmatpush1.bf16.msra.mxu1 %v1819_v21  ;;  %v210_v33 = vld [vmem:[%s2137_s19 + $0x120] sm:$0xff]  ;;  %v211_v35 = vld [vmem:[%s2137_s19 + $0x128] sm:$0xff] }
  0x1b   : > { %1402 = vmatprep.subr.bf16.mxu0 %v1826_v22  ;;  %1484 = vmatprep.subr.bf16.mxu1 %v1828_v23  ;;  %v1842_v38 = vcombine.high %v206_v32, %v210_v33  ;;  %v1844_v39 = vcombine.high %v207_v34, %v211_v35  ;;  %v214_v40 = vld [vmem:[%s2137_s19 + $0x140] sm:$0xff]  ;;  %v215_v42 = vld [vmem:[%s2137_s19 + $0x148] sm:$0xff]  ;;  %v1841_v44 = vcombine.low %v206_v32, %v210_v33 }
  0x1c   : > { %v218_v41 = vld [vmem:[%s2137_s19 + $0x160] sm:$0xff]  ;;  %v219_v43 = vld [vmem:[%s2137_s19 + $0x168] sm:$0xff]  ;;  %v1843_v45 = vcombine.low %v207_v34, %v211_v35 }
  0x1d   : > { %v1850_v46 = vcombine.high %v214_v40, %v218_v41  ;;  %v1852_v47 = vcombine.high %v215_v42, %v219_v43  ;;  %v222_v48 = vld [vmem:[%s2137_s19 + $0x180] sm:$0xff]  ;;  %v223_v50 = vld [vmem:[%s2137_s19 + $0x188] sm:$0xff]  ;;  %v1849_v52 = vcombine.low %v214_v40, %v218_v41  ;;  %v1851_v53 = vcombine.low %v215_v42, %v219_v43 }
  0x1e   : > { %1403 = vmatpush1.bf16.msra.mxu0 %v1825_v28  ;;  %1485 = vmatpush1.bf16.msra.mxu1 %v1827_v29  ;;  %v226_v49 = vld [vmem:[%s2137_s19 + $0x1a0] sm:$0xff]  ;;  %v227_v51 = vld [vmem:[%s2137_s19 + $0x1a8] sm:$0xff] }
  0x1f   : > { %1404 = vmatprep.subr.bf16.mxu0 %v1834_v30  ;;  %1486 = vmatprep.subr.bf16.mxu1 %v1836_v31  ;;  %v1858_v54 = vcombine.high %v222_v48, %v226_v49  ;;  %v1860_v55 = vcombine.high %v223_v50, %v227_v51  ;;  %v230_v56 = vld [vmem:[%s2137_s19 + $0x1c0] sm:$0xff]  ;;  %v231_v58 = vld [vmem:[%s2137_s19 + $0x1c8] sm:$0xff]  ;;  %v1857_v60 = vcombine.low %v222_v48, %v226_v49 }
  0x20   : > { %v234_v57 = vld [vmem:[%s2137_s19 + $0x1e0] sm:$0xff]  ;;  %v235_v59 = vld [vmem:[%s2137_s19 + $0x1e8] sm:$0xff]  ;;  %v1859_v61 = vcombine.low %v223_v50, %v227_v51 }
  0x21   : > { %v1866_v62 = vcombine.high %v230_v56, %v234_v57  ;;  %v1868_v63 = vcombine.high %v231_v58, %v235_v59  ;;  %v238_v2 = vld [vmem:[%s2137_s19 + $0x200] sm:$0xff]  ;;  %v239_v4 = vld [vmem:[%s2137_s19 + $0x208] sm:$0xff]  ;;  %v1865_v6 = vcombine.low %v230_v56, %v234_v57  ;;  %v1867_v7 = vcombine.low %v231_v58, %v235_v59 }
  0x22   : > { %1405 = vmatpush1.bf16.msra.mxu0 %v1833_v36  ;;  %1487 = vmatpush1.bf16.msra.mxu1 %v1835_v37  ;;  %v242_v3 = vld [vmem:[%s2137_s19 + $0x220] sm:$0xff]  ;;  %v243_v5 = vld [vmem:[%s2137_s19 + $0x228] sm:$0xff] }
  0x23   : > { %1406 = vmatprep.subr.bf16.mxu0 %v1842_v38  ;;  %1488 = vmatprep.subr.bf16.mxu1 %v1844_v39  ;;  %v1874_v8 = vcombine.high %v238_v2, %v242_v3  ;;  %v1876_v9 = vcombine.high %v239_v4, %v243_v5  ;;  %v246_v10 = vld [vmem:[%s2137_s19 + $0x240] sm:$0xff]  ;;  %v247_v12 = vld [vmem:[%s2137_s19 + $0x248] sm:$0xff]  ;;  %v1873_v14 = vcombine.low %v238_v2, %v242_v3 }
  0x24   : > { %v250_v11 = vld [vmem:[%s2137_s19 + $0x260] sm:$0xff]  ;;  %v251_v13 = vld [vmem:[%s2137_s19 + $0x268] sm:$0xff]  ;;  %v1875_v15 = vcombine.low %v239_v4, %v243_v5 }
  0x25   : > { %v1882_v16 = vcombine.high %v246_v10, %v250_v11  ;;  %v1884_v17 = vcombine.high %v247_v12, %v251_v13  ;;  %v254_v18 = vld [vmem:[%s2137_s19 + $0x280] sm:$0xff]  ;;  %v255_v20 = vld [vmem:[%s2137_s19 + $0x288] sm:$0xff]  ;;  %v1881_v22 = vcombine.low %v246_v10, %v250_v11  ;;  %v1883_v23 = vcombine.low %v247_v12, %v251_v13 }
  0x26   : > { %1407 = vmatpush1.bf16.msra.mxu0 %v1841_v44  ;;  %1489 = vmatpush1.bf16.msra.mxu1 %v1843_v45  ;;  %v258_v19 = vld [vmem:[%s2137_s19 + $0x2a0] sm:$0xff]  ;;  %v259_v21 = vld [vmem:[%s2137_s19 + $0x2a8] sm:$0xff] }
  0x27   : > { %1408 = vmatprep.subr.bf16.mxu0 %v1850_v46  ;;  %1490 = vmatprep.subr.bf16.mxu1 %v1852_v47  ;;  %v1890_v24 = vcombine.high %v254_v18, %v258_v19  ;;  %v1892_v25 = vcombine.high %v255_v20, %v259_v21  ;;  %v262_v26 = vld [vmem:[%s2137_s19 + $0x2c0] sm:$0xff]  ;;  %v263_v28 = vld [vmem:[%s2137_s19 + $0x2c8] sm:$0xff]  ;;  %v1889_v30 = vcombine.low %v254_v18, %v258_v19 }
  0x28   : > { %v266_v27 = vld [vmem:[%s2137_s19 + $0x2e0] sm:$0xff]  ;;  %v267_v29 = vld [vmem:[%s2137_s19 + $0x2e8] sm:$0xff]  ;;  %v1891_v31 = vcombine.low %v255_v20, %v259_v21 }
  0x29   : > { %v1898_v32 = vcombine.high %v262_v26, %v266_v27  ;;  %v1900_v33 = vcombine.high %v263_v28, %v267_v29  ;;  %v270_v34 = vld [vmem:[%s2137_s19 + $0x300] sm:$0xff]  ;;  %v271_v36 = vld [vmem:[%s2137_s19 + $0x308] sm:$0xff]  ;;  %v1897_v38 = vcombine.low %v262_v26, %v266_v27  ;;  %v1899_v39 = vcombine.low %v263_v28, %v267_v29 }
  0x2a   : > { %1409 = vmatpush1.bf16.msra.mxu0 %v1849_v52  ;;  %1491 = vmatpush1.bf16.msra.mxu1 %v1851_v53  ;;  %v274_v35 = vld [vmem:[%s2137_s19 + $0x320] sm:$0xff]  ;;  %v275_v37 = vld [vmem:[%s2137_s19 + $0x328] sm:$0xff] }
  0x2b   : > { %1410 = vmatprep.subr.bf16.mxu0 %v1858_v54  ;;  %1492 = vmatprep.subr.bf16.mxu1 %v1860_v55  ;;  %v1906_v40 = vcombine.high %v270_v34, %v274_v35  ;;  %v1908_v41 = vcombine.high %v271_v36, %v275_v37  ;;  %v278_v42 = vld [vmem:[%s2137_s19 + $0x340] sm:$0xff]  ;;  %v279_v44 = vld [vmem:[%s2137_s19 + $0x348] sm:$0xff]  ;;  %v1905_v46 = vcombine.low %v270_v34, %v274_v35 }
  0x2c   : > { %v282_v43 = vld [vmem:[%s2137_s19 + $0x360] sm:$0xff]  ;;  %v283_v45 = vld [vmem:[%s2137_s19 + $0x368] sm:$0xff]  ;;  %v1907_v47 = vcombine.low %v271_v36, %v275_v37 }
  0x2d   : > { %v1914_v48 = vcombine.high %v278_v42, %v282_v43  ;;  %v1916_v49 = vcombine.high %v279_v44, %v283_v45  ;;  %v286_v50 = vld [vmem:[%s2137_s19 + $0x380] sm:$0xff]  ;;  %v287_v52 = vld [vmem:[%s2137_s19 + $0x388] sm:$0xff]  ;;  %v1913_v54 = vcombine.low %v278_v42, %v282_v43  ;;  %v1915_v55 = vcombine.low %v279_v44, %v283_v45 }
  0x2e   : > { %1411 = vmatpush1.bf16.msra.mxu0 %v1857_v60  ;;  %1493 = vmatpush1.bf16.msra.mxu1 %v1859_v61  ;;  %v290_v51 = vld [vmem:[%s2137_s19 + $0x3a0] sm:$0xff]  ;;  %v291_v53 = vld [vmem:[%s2137_s19 + $0x3a8] sm:$0xff] }
  0x2f   : > { %1412 = vmatprep.subr.bf16.mxu0 %v1866_v62  ;;  %1494 = vmatprep.subr.bf16.mxu1 %v1868_v63  ;;  %v1922_v56 = vcombine.high %v286_v50, %v290_v51  ;;  %v1924_v57 = vcombine.high %v287_v52, %v291_v53  ;;  %v294_v58 = vld [vmem:[%s2137_s19 + $0x3c0] sm:$0xff]  ;;  %v295_v60 = vld [vmem:[%s2137_s19 + $0x3c8] sm:$0xff]  ;;  %v1921_v62 = vcombine.low %v286_v50, %v290_v51 }
  0x30   : > { %v298_v59 = vld [vmem:[%s2137_s19 + $0x3e0] sm:$0xff]  ;;  %v299_v61 = vld [vmem:[%s2137_s19 + $0x3e8] sm:$0xff]  ;;  %v1923_v63 = vcombine.low %v287_v52, %v291_v53 }
  0x31   : > { %v1930_v2 = vcombine.high %v294_v58, %v298_v59  ;;  %v1932_v3 = vcombine.high %v295_v60, %v299_v61  ;;  %v302_v4 = vld [vmem:[%s2137_s19 + $0x400] sm:$0xff]  ;;  %v1931_v11 = vcombine.low %v295_v60, %v299_v61  ;;  %v315_v18 = vld [vmem:[%s2137_s19 + $0x468] sm:$0xff] }
  0x32   : > { %1413 = vmatpush1.bf16.msra.mxu0 %v1865_v6  ;;  %1495 = vmatpush1.bf16.msra.mxu1 %v1867_v7  ;;  %v306_v5 = vld [vmem:[%s2137_s19 + $0x420] sm:$0xff]  ;;  %v303_v6 = vld [vmem:[%s2137_s19 + $0x408] sm:$0xff] }
  0x33   : > { %1414 = vmatprep.subr.bf16.mxu0 %v1874_v8  ;;  %1496 = vmatprep.subr.bf16.mxu1 %v1876_v9  ;;  %v307_v7 = vld [vmem:[%s2137_s19 + $0x428] sm:$0xff]  ;;  %v2091_v8 = vmov 0   ;;  %v1929_v9 = vcombine.low %v294_v58, %v298_v59  ;;  %v370_v10 = vld [vmem:[%s2400_s2] sm:$0xff]  ;;  %v1938_v12 = vcombine.high %v302_v4, %v306_v5  ;;  %v1937_v20 = vcombine.low %v302_v4, %v306_v5 }
  0x34   : > { %2054 = vset.pattern.permute.xlu0 %v2091_v8  ;;  %v1940_v13 = vcombine.high %v303_v6, %v307_v7  ;;  %v2221_v19 = vld [vmem:[%s2398_s0 + $0x8] sm:$0xff]  ;;  %v1939_v21 = vcombine.low %v303_v6, %v307_v7 }
  0x35   : > { %373 = vperm.xlu0 %2054, %v370_v10   ;;  %v319_v26 = vld [vmem:[%s2137_s19 + $0x488] sm:$0xff]  ;;  %v366_v10 = vld [vmem:[%s2137_s19 + $0x600] sm:$0xff] }
  0x36   : > { %1415 = vmatpush1.bf16.msra.mxu0 %v1873_v14  ;;  %1497 = vmatpush1.bf16.msra.mxu1 %v1875_v15  ;;  %v310_v14 = vld [vmem:[%s2137_s19 + $0x440] sm:$0xff]  ;;  %v323_v27 = vld [vmem:[%s2137_s19 + $0x4a8] sm:$0xff] }
  0x37   : > { %1416 = vmatprep.subr.bf16.mxu0 %v1882_v16  ;;  %1498 = vmatprep.subr.bf16.mxu1 %v1884_v17  ;;  %v314_v15 = vld [vmem:[%s2137_s19 + $0x460] sm:$0xff]  ;;  %v2214_v16 = vcombine.low %v2123_v0, %v2123_v0  ;;  %v311_v17 = vld [vmem:[%s2137_s19 + $0x448] sm:$0xff]  ;;  %v1955_v37 = vcombine.low %v319_v26, %v323_v27 }
  0x38   : > { %v322_v0 = vld [vmem:[%s2137_s19 + $0x4a0] sm:$0xff]  ;;  %v1945_v28 = vcombine.low %v310_v14, %v314_v15  ;;  %v1947_v29 = vcombine.low %v311_v17, %v315_v18  ;;  %v327_v34 = vld [vmem:[%s2137_s19 + $0x4c8] sm:$0xff] }
  0x39   : > { %v331_v35 = vld [vmem:[%s2137_s19 + $0x4e8] sm:$0xff] }
  0x3a   : > { %1417 = vmatpush1.bf16.msra.mxu0 %v1881_v22  ;;  %1499 = vmatpush1.bf16.msra.mxu1 %v1883_v23  ;;  %v1946_v22 = vcombine.high %v310_v14, %v314_v15  ;;  %v1948_v23 = vcombine.high %v311_v17, %v315_v18  ;;  %v335_v42 = vld [vmem:[%s2137_s19 + $0x508] sm:$0xff]  ;;  %v1963_v45 = vcombine.low %v327_v34, %v331_v35 }
  0x3b   : > { %1418 = vmatprep.subr.bf16.mxu0 %v1890_v24  ;;  %1500 = vmatprep.subr.bf16.mxu1 %v1892_v25  ;;  %v318_v24 = vld [vmem:[%s2137_s19 + $0x480] sm:$0xff]  ;;  %v2227_v25 = vcombine.high %v2221_v19, %v2221_v19  ;;  %v339_v43 = vld [vmem:[%s2137_s19 + $0x528] sm:$0xff]  ;;  %v2002_v14 = vcombine.high %v366_v10, %v366_v10  ;;  %v2001_v15 = vcombine.low %v366_v10, %v366_v10 }
  0x3c   : > { %v1953_v36 = vcombine.low %v318_v24, %v322_v0  ;;  %v343_v50 = vld [vmem:[%s2137_s19 + $0x548] sm:$0xff]  ;;  %v1971_v53 = vcombine.low %v335_v42, %v339_v43 }
  0x3d   : > { %v347_v51 = vld [vmem:[%s2137_s19 + $0x568] sm:$0xff] }
  0x3e   : > { %1419 = vmatpush1.bf16.msra.mxu0 %v1889_v30  ;;  %1501 = vmatpush1.bf16.msra.mxu1 %v1891_v31  ;;  %v1954_v30 = vcombine.high %v318_v24, %v322_v0  ;;  %v1956_v31 = vcombine.high %v319_v26, %v323_v27  ;;  %v351_v58 = vld [vmem:[%s2137_s19 + $0x588] sm:$0xff]  ;;  %v1979_v61 = vcombine.low %v343_v50, %v347_v51  ;;  %v1375_v24 = vsel %vm1373_vm1, %v2001_v15, 0  ;;  %v233_v15 = vld [vmem:[%s2137_s19 + $0x1d8] sm:$0xff] }
  0x3f   : > { %1420 = vmatprep.subr.bf16.mxu0 %v1898_v32  ;;  %1502 = vmatprep.subr.bf16.mxu1 %v1900_v33  ;;  %v326_v32 = vld [vmem:[%s2137_s19 + $0x4c0] sm:$0xff]  ;;  %v355_v59 = vld [vmem:[%s2137_s19 + $0x5a8] sm:$0xff] }
  0x40   : > { %v330_v33 = vld [vmem:[%s2137_s19 + $0x4e0] sm:$0xff]  ;;  %v359_v4 = vld [vmem:[%s2137_s19 + $0x5c8] sm:$0xff]  ;;  %v1987_v7 = vcombine.low %v351_v58, %v355_v59 }
  0x41   : > { %v1961_v44 = vcombine.low %v326_v32, %v330_v33  ;;  %v363_v5 = vld [vmem:[%s2137_s19 + $0x5e8] sm:$0xff] }
  0x42   : > { %1421 = vmatpush1.bf16.msra.mxu0 %v1897_v38  ;;  %1503 = vmatpush1.bf16.msra.mxu1 %v1899_v39  ;;  %v1962_v38 = vcombine.high %v326_v32, %v330_v33  ;;  %v1964_v39 = vcombine.high %v327_v34, %v331_v35  ;;  %v189_v32 = vld [vmem:[%s2137_s19 + $0x78] sm:$0xff] }
  0x43   : > { %1422 = vmatprep.subr.bf16.mxu0 %v1906_v40  ;;  %1504 = vmatprep.subr.bf16.mxu1 %v1908_v41  ;;  %v334_v40 = vld [vmem:[%s2137_s19 + $0x500] sm:$0xff] }
  0x44   : > { %v338_v41 = vld [vmem:[%s2137_s19 + $0x520] sm:$0xff] }
  0x45   : > { %v1969_v52 = vcombine.low %v334_v40, %v338_v41 }
  0x46   : > { %1423 = vmatpush1.bf16.msra.mxu0 %v1905_v46  ;;  %1505 = vmatpush1.bf16.msra.mxu1 %v1907_v47  ;;  %v1970_v46 = vcombine.high %v334_v40, %v338_v41  ;;  %v1972_v47 = vcombine.high %v335_v42, %v339_v43 }
  0x47   : > { %1424 = vmatprep.subr.bf16.mxu0 %v1914_v48  ;;  %1506 = vmatprep.subr.bf16.mxu1 %v1916_v49  ;;  %v342_v48 = vld [vmem:[%s2137_s19 + $0x540] sm:$0xff] }
  0x48   : > { %v346_v49 = vld [vmem:[%s2137_s19 + $0x560] sm:$0xff] }
  0x49   : > { %v1977_v60 = vcombine.low %v342_v48, %v346_v49 }
  0x4a   : > { %1425 = vmatpush1.bf16.msra.mxu0 %v1913_v54  ;;  %1507 = vmatpush1.bf16.msra.mxu1 %v1915_v55  ;;  %v1978_v54 = vcombine.high %v342_v48, %v346_v49  ;;  %v1980_v55 = vcombine.high %v343_v50, %v347_v51 }
  0x4b   : > { %1426 = vmatprep.subr.bf16.mxu0 %v1922_v56  ;;  %1508 = vmatprep.subr.bf16.mxu1 %v1924_v57  ;;  %v350_v56 = vld [vmem:[%s2137_s19 + $0x580] sm:$0xff] }
  0x4c   : > { %v354_v57 = vld [vmem:[%s2137_s19 + $0x5a0] sm:$0xff] }
  0x4d   : > { %v1985_v6 = vcombine.low %v350_v56, %v354_v57 }
  0x4e   : > { %1427 = vmatpush1.bf16.msra.mxu0 %v1921_v62  ;;  %1509 = vmatpush1.bf16.msra.mxu1 %v1923_v63  ;;  %v1986_v62 = vcombine.high %v350_v56, %v354_v57  ;;  %v1988_v63 = vcombine.high %v351_v58, %v355_v59  ;;  %v216_v59 = vld [vmem:[%s2137_s19 + $0x150] sm:$0xff] }
  0x4f   : > { %1428 = vmatprep.subr.bf16.mxu0 %v1930_v2  ;;  %1510 = vmatprep.subr.bf16.mxu1 %v1932_v3  ;;  %v358_v2 = vld [vmem:[%s2137_s19 + $0x5c0] sm:$0xff] }
  0x50   : > { %v362_v3 = vld [vmem:[%s2137_s19 + $0x5e0] sm:$0xff] }
  0x51   : > { %v1994_v8 = vcombine.high %v358_v2, %v362_v3 }
  0x52   : > { %1429 = vmatpush1.bf16.msra.mxu0 %v1929_v9  ;;  %1511 = vmatpush1.bf16.msra.mxu1 %v1931_v11  ;;  %v1996_v9 = vcombine.high %v359_v4, %v363_v5  ;;  %v367_v11 = vld [vmem:[%s2137_s19 + $0x608] sm:$0xff] }
  0x53   : > { %1439 = vmatprep.subr.bf16.mxu0 %v1938_v12  ;;  %1521 = vmatprep.subr.bf16.mxu1 %v1940_v13  ;;  %v1993_v12 = vcombine.low %v358_v2, %v362_v3  ;;  %v1995_v13 = vcombine.low %v359_v4, %v363_v5  ;;  %v2004_v17 = vcombine.high %v367_v11, %v367_v11  ;;  %v224_v5 = vld [vmem:[%s2137_s19 + $0x190] sm:$0xff] }
  0x54   : > { %v2003_v18 = vcombine.low %v367_v11, %v367_v11 }
  0x55   : > { %1431 = vmatmul.mubr.bf16.vlgmr.msra.gmra.mrb[0].mxu0 %v2214_v16  ;;  %1513 = vmatmul.mubr.bf16.vlgmr.msra.gmra.mrb[0].mxu1 %v2214_v16 }
  0x56   : > { %1440 = vmatpush1.bf16.msra.mxu0 %v1937_v20  ;;  %1522 = vmatpush1.bf16.msra.mxu1 %v1939_v21  ;;  %v176_v20 = vld [vmem:[%s2137_s19 + $0x10] sm:$0xff]  ;;  %v1381_v26 = vsel %vm1373_vm1, %v2003_v18, 0 }
  0x57   : > { %1441 = vmatprep.subr.bf16.mxu0 %v1946_v22  ;;  %1523 = vmatprep.subr.bf16.mxu1 %v1948_v23  ;;  %v180_v21 = vld [vmem:[%s2137_s19 + $0x30] sm:$0xff]  ;;  %v177_v22 = vld [vmem:[%s2137_s19 + $0x18] sm:$0xff] }
  0x58   : > { %2010 = vmatprep.mubr.msk.bf16.mxu0 %vm1369_vm0, %v2227_v25  ;;  %2012 = vmatprep.mubr.msk.bf16.mxu1 %vm1369_vm0, %v2227_v25  ;;  %v181_v23 = vld [vmem:[%s2137_s19 + $0x38] sm:$0xff]  ;;  %v1814_v0 = vcombine.high %v176_v20, %v180_v21  ;;  %v1813_v33 = vcombine.low %v176_v20, %v180_v21 }
  0x59   : > { %v1816_v27 = vcombine.high %v177_v22, %v181_v23  ;;  %v1815_v34 = vcombine.low %v177_v22, %v181_v23  ;;  %v240_v23 = vld [vmem:[%s2137_s19 + $0x210] sm:$0xff] }
  0x5a   : > { %1442 = vmatpush1.bf16.msra.mxu0 %v1945_v28  ;;  %1524 = vmatpush1.bf16.msra.mxu1 %v1947_v29  ;;  %v184_v28 = vld [vmem:[%s2137_s19 + $0x50] sm:$0xff] }
  0x5b   : > { %1443 = vmatprep.subr.bf16.mxu0 %v1954_v30  ;;  %1525 = vmatprep.subr.bf16.mxu1 %v1956_v31  ;;  %v188_v29 = vld [vmem:[%s2137_s19 + $0x70] sm:$0xff]  ;;  %v2271_v30 = vcombine.low %v2221_v19, %v2221_v19  ;;  %v185_v31 = vld [vmem:[%s2137_s19 + $0x58] sm:$0xff] }
  0x5c   : > { %v1822_v35 = vcombine.high %v184_v28, %v188_v29  ;;  %v193_v19 = vld [vmem:[%s2137_s19 + $0x98] sm:$0xff]  ;;  %v1821_v40 = vcombine.low %v184_v28, %v188_v29  ;;  %v1823_v41 = vcombine.low %v185_v31, %v189_v32 }
  0x5e   : > { %1444 = vmatpush1.bf16.msra.mxu0 %v1953_v36  ;;  %1526 = vmatpush1.bf16.msra.mxu1 %v1955_v37  ;;  %v1824_v36 = vcombine.high %v185_v31, %v189_v32  ;;  %v192_v37 = vld [vmem:[%s2137_s19 + $0x90] sm:$0xff] }
  0x5f   : > { %1445 = vmatprep.subr.bf16.mxu0 %v1962_v38  ;;  %1527 = vmatprep.subr.bf16.mxu1 %v1964_v39  ;;  %v196_v38 = vld [vmem:[%s2137_s19 + $0xb0] sm:$0xff]  ;;  %v197_v39 = vld [vmem:[%s2137_s19 + $0xb8] sm:$0xff] }
  0x60   : > { %v1830_v42 = vcombine.high %v192_v37, %v196_v38  ;;  %v1832_v43 = vcombine.high %v193_v19, %v197_v39  ;;  %v1829_v48 = vcombine.low %v192_v37, %v196_v38  ;;  %v1831_v49 = vcombine.low %v193_v19, %v197_v39  ;;  %v248_v32 = vld [vmem:[%s2137_s19 + $0x250] sm:$0xff] }
  0x61   : > { %v256_v39 = vld [vmem:[%s2137_s19 + $0x290] sm:$0xff] }
  0x62   : > { %1446 = vmatpush1.bf16.msra.mxu0 %v1961_v44  ;;  %1528 = vmatpush1.bf16.msra.mxu1 %v1963_v45  ;;  %v200_v44 = vld [vmem:[%s2137_s19 + $0xd0] sm:$0xff] }
  0x63   : > { %1447 = vmatprep.subr.bf16.mxu0 %v1970_v46  ;;  %1529 = vmatprep.subr.bf16.mxu1 %v1972_v47  ;;  %v204_v45 = vld [vmem:[%s2137_s19 + $0xf0] sm:$0xff]  ;;  %v201_v46 = vld [vmem:[%s2137_s19 + $0xd8] sm:$0xff] }
  0x64   : > { %v205_v47 = vld [vmem:[%s2137_s19 + $0xf8] sm:$0xff]  ;;  %v1838_v50 = vcombine.high %v200_v44, %v204_v45  ;;  %v1837_v56 = vcombine.low %v200_v44, %v204_v45 }
  0x65   : > { %v1840_v51 = vcombine.high %v201_v46, %v205_v47 }
  0x66   : > { %1448 = vmatpush1.bf16.msra.mxu0 %v1969_v52  ;;  %1530 = vmatpush1.bf16.msra.mxu1 %v1971_v53  ;;  %v208_v52 = vld [vmem:[%s2137_s19 + $0x110] sm:$0xff] }
  0x67   : > { %1449 = vmatprep.subr.bf16.mxu0 %v1978_v54  ;;  %1531 = vmatprep.subr.bf16.mxu1 %v1980_v55  ;;  %v212_v53 = vld [vmem:[%s2137_s19 + $0x130] sm:$0xff]  ;;  %v209_v54 = vld [vmem:[%s2137_s19 + $0x118] sm:$0xff] }
  0x68   : > { %v213_v55 = vld [vmem:[%s2137_s19 + $0x138] sm:$0xff]  ;;  %v1846_v57 = vcombine.high %v208_v52, %v212_v53 }
  0x69   : > { %v1848_v58 = vcombine.high %v209_v54, %v213_v55  ;;  %v1847_v2 = vcombine.low %v209_v54, %v213_v55  ;;  %v272_v55 = vld [vmem:[%s2137_s19 + $0x310] sm:$0xff] }
  0x6a   : > { %1450 = vmatpush1.bf16.msra.mxu0 %v1977_v60  ;;  %1532 = vmatpush1.bf16.msra.mxu1 %v1979_v61  ;;  %v220_v60 = vld [vmem:[%s2137_s19 + $0x170] sm:$0xff]  ;;  %v217_v61 = vld [vmem:[%s2137_s19 + $0x158] sm:$0xff] }
  0x6b   : > { %1451 = vmatprep.subr.bf16.mxu0 %v1986_v62  ;;  %1533 = vmatprep.subr.bf16.mxu1 %v1988_v63  ;;  %v221_v62 = vld [vmem:[%s2137_s19 + $0x178] sm:$0xff]  ;;  %v1845_v63 = vcombine.low %v208_v52, %v212_v53  ;;  %v1854_v3 = vcombine.high %v216_v59, %v220_v60 }
  0x6c   : > { %v1856_v4 = vcombine.high %v217_v61, %v221_v62  ;;  %v1855_v10 = vcombine.low %v217_v61, %v221_v62  ;;  %v280_v62 = vld [vmem:[%s2137_s19 + $0x350] sm:$0xff] }
  0x6e   : > { %1452 = vmatpush1.bf16.msra.mxu0 %v1985_v6  ;;  %1534 = vmatpush1.bf16.msra.mxu1 %v1987_v7  ;;  %v228_v6 = vld [vmem:[%s2137_s19 + $0x1b0] sm:$0xff]  ;;  %v225_v7 = vld [vmem:[%s2137_s19 + $0x198] sm:$0xff] }
  0x6f   : > { %1453 = vmatprep.subr.bf16.mxu0 %v1994_v8  ;;  %1535 = vmatprep.subr.bf16.mxu1 %v1996_v9  ;;  %v229_v8 = vld [vmem:[%s2137_s19 + $0x1b8] sm:$0xff]  ;;  %v1853_v9 = vcombine.low %v216_v59, %v220_v60  ;;  %v1862_v11 = vcombine.high %v224_v5, %v228_v6  ;;  %v1861_v18 = vcombine.low %v224_v5, %v228_v6 }
  0x70   : > { %v1863_v20 = vcombine.low %v225_v7, %v229_v8 }
  0x72   : > { %1454 = vmatpush1.bf16.msra.mxu0 %v1993_v12  ;;  %1536 = vmatpush1.bf16.msra.mxu1 %v1995_v13  ;;  %v1864_v12 = vcombine.high %v225_v7, %v229_v8  ;;  %v232_v13 = vld [vmem:[%s2137_s19 + $0x1d0] sm:$0xff] }
  0x73   : > { %2009 = vmatprep.subr.msk.bf16.mxu0 %vm1373_vm1, %v2002_v14  ;;  %2011 = vmatprep.subr.msk.bf16.mxu1 %vm1373_vm1, %v2004_v17  ;;  %v236_v14 = vld [vmem:[%s2137_s19 + $0x1f0] sm:$0xff]  ;;  %v237_v17 = vld [vmem:[%s2137_s19 + $0x1f8] sm:$0xff] }
  0x74   : > { %v1870_v21 = vcombine.high %v232_v13, %v236_v14  ;;  %v1872_v22 = vcombine.high %v233_v15, %v237_v17  ;;  %v1871_v28 = vcombine.low %v233_v15, %v237_v17  ;;  %v288_v8 = vld [vmem:[%s2137_s19 + $0x390] sm:$0xff] }
  0x75   : > { %v296_v17 = vld [vmem:[%s2137_s19 + $0x3d0] sm:$0xff] }
  0x76   : > { %1456 = vmatpush1.bf16.msra.mxu0 %v1375_v24  ;;  %1538 = vmatpush1.bf16.msra.mxu1 %v1381_v26  ;;  %v244_v24 = vld [vmem:[%s2137_s19 + $0x230] sm:$0xff]  ;;  %v245_v26 = vld [vmem:[%s2137_s19 + $0x238] sm:$0xff] }
  0x77   : > { %1562 = vmatprep.subr.bf16.mxu0 %v1814_v0  ;;  %1644 = vmatprep.subr.bf16.mxu1 %v1816_v27  ;;  %v241_v0 = vld [vmem:[%s2137_s19 + $0x218] sm:$0xff]  ;;  %v1869_v27 = vcombine.low %v232_v13, %v236_v14  ;;  %v1878_v29 = vcombine.high %v240_v23, %v244_v24 }
  0x78   : > { %v1880_v31 = vcombine.high %v241_v0, %v245_v26  ;;  %v1879_v37 = vcombine.low %v241_v0, %v245_v26  ;;  %v304_v26 = vld [vmem:[%s2137_s19 + $0x410] sm:$0xff] }
  0x79   : > { %1472 = vmatmul.mubr.bf16.vlgmr.msra.gmra.mrb[0].mxu0 %v2271_v30  ;;  %1554 = vmatmul.mubr.bf16.vlgmr.msra.gmra.mrb[0].mxu1 %v2271_v30 }
  0x7a   : > { %1563 = vmatpush1.bf16.msra.mxu0 %v1813_v33  ;;  %1645 = vmatpush1.bf16.msra.mxu1 %v1815_v34  ;;  %v252_v33 = vld [vmem:[%s2137_s19 + $0x270] sm:$0xff]  ;;  %v249_v34 = vld [vmem:[%s2137_s19 + $0x258] sm:$0xff] }
  0x7b   : > { %1564 = vmatprep.subr.bf16.mxu0 %v1822_v35  ;;  %1646 = vmatprep.subr.bf16.mxu1 %v1824_v36  ;;  %v253_v35 = vld [vmem:[%s2137_s19 + $0x278] sm:$0xff]  ;;  %v1877_v36 = vcombine.low %v240_v23, %v244_v24  ;;  %v1886_v38 = vcombine.high %v248_v32, %v252_v33 }
  0x7c   : > { %1594 = vmatprep.mubr.bf16.mxu0 %v2127_v1  ;;  %1676 = vmatprep.mubr.bf16.mxu1 %v2127_v1  ;;  %v1839_v1 = vcombine.low %v201_v46, %v205_v47  ;;  %v1888_v19 = vcombine.high %v249_v34, %v253_v35  ;;  %v1887_v44 = vcombine.low %v249_v34, %v253_v35  ;;  %v264_v47 = vld [vmem:[%s2137_s19 + $0x2d0] sm:$0xff] }
  0x7d   : > { %v312_v35 = vld [vmem:[%s2137_s19 + $0x450] sm:$0xff] }
  0x7e   : > { %1565 = vmatpush1.bf16.msra.mxu0 %v1821_v40  ;;  %1647 = vmatpush1.bf16.msra.mxu1 %v1823_v41  ;;  %v260_v40 = vld [vmem:[%s2137_s19 + $0x2b0] sm:$0xff]  ;;  %v257_v41 = vld [vmem:[%s2137_s19 + $0x298] sm:$0xff] }
  0x7f   : > { %1566 = vmatprep.subr.bf16.mxu0 %v1830_v42  ;;  %1648 = vmatprep.subr.bf16.mxu1 %v1832_v43  ;;  %v261_v42 = vld [vmem:[%s2137_s19 + $0x2b8] sm:$0xff]  ;;  %v1885_v43 = vcombine.low %v248_v32, %v252_v33  ;;  %v1894_v45 = vcombine.high %v256_v39, %v260_v40 }
  0x80   : > { %v1896_v46 = vcombine.high %v257_v41, %v261_v42  ;;  %v1895_v52 = vcombine.low %v257_v41, %v261_v42  ;;  %v320_v42 = vld [vmem:[%s2137_s19 + $0x490] sm:$0xff] }
  0x82   : > { %1567 = vmatpush1.bf16.msra.mxu0 %v1829_v48  ;;  %1649 = vmatpush1.bf16.msra.mxu1 %v1831_v49  ;;  %v268_v48 = vld [vmem:[%s2137_s19 + $0x2f0] sm:$0xff]  ;;  %v265_v49 = vld [vmem:[%s2137_s19 + $0x2d8] sm:$0xff] }
  0x83   : > { %1568 = vmatprep.subr.bf16.mxu0 %v1838_v50  ;;  %1650 = vmatprep.subr.bf16.mxu1 %v1840_v51  ;;  %v269_v50 = vld [vmem:[%s2137_s19 + $0x2f8] sm:$0xff]  ;;  %v1893_v51 = vcombine.low %v256_v39, %v260_v40  ;;  %v1902_v53 = vcombine.high %v264_v47, %v268_v48 }
  0x84   : > { %v1904_v54 = vcombine.high %v265_v49, %v269_v50  ;;  %v1903_v59 = vcombine.low %v265_v49, %v269_v50  ;;  %v328_v50 = vld [vmem:[%s2137_s19 + $0x4d0] sm:$0xff] }
  0x86   : > { %1569 = vmatpush1.bf16.msra.mxu0 %v1837_v56  ;;  %1651 = vmatpush1.bf16.msra.mxu1 %v1839_v1  ;;  %v276_v56 = vld [vmem:[%s2137_s19 + $0x330] sm:$0xff]  ;;  %v273_v1 = vld [vmem:[%s2137_s19 + $0x318] sm:$0xff] }
  0x87   : > { %1570 = vmatprep.subr.bf16.mxu0 %v1846_v57  ;;  %1652 = vmatprep.subr.bf16.mxu1 %v1848_v58  ;;  %v277_v57 = vld [vmem:[%s2137_s19 + $0x338] sm:$0xff]  ;;  %v1901_v58 = vcombine.low %v264_v47, %v268_v48  ;;  %v1910_v60 = vcombine.high %v272_v55, %v276_v56 }
  0x88   : > { %v1912_v61 = vcombine.high %v273_v1, %v277_v57  ;;  %v1911_v5 = vcombine.low %v273_v1, %v277_v57  ;;  %v336_v1 = vld [vmem:[%s2137_s19 + $0x510] sm:$0xff] }
  0x89   : > { %v340_v57 = vld [vmem:[%s2137_s19 + $0x530] sm:$0xff] }
  0x8a   : > { %1571 = vmatpush1.bf16.msra.mxu0 %v1845_v63  ;;  %1653 = vmatpush1.bf16.msra.mxu1 %v1847_v2  ;;  %v284_v63 = vld [vmem:[%s2137_s19 + $0x370] sm:$0xff]  ;;  %v281_v2 = vld [vmem:[%s2137_s19 + $0x358] sm:$0xff] }
  0x8b   : > { %1572 = vmatprep.subr.bf16.mxu0 %v1854_v3  ;;  %1654 = vmatprep.subr.bf16.mxu1 %v1856_v4  ;;  %v285_v3 = vld [vmem:[%s2137_s19 + $0x378] sm:$0xff]  ;;  %v1909_v4 = vcombine.low %v272_v55, %v276_v56  ;;  %v1918_v6 = vcombine.high %v280_v62, %v284_v63 }
  0x8c   : > { %v1920_v7 = vcombine.high %v281_v2, %v285_v3  ;;  %v1919_v13 = vcombine.low %v281_v2, %v285_v3  ;;  %v348_v2 = vld [vmem:[%s2137_s19 + $0x570] sm:$0xff]  ;;  %v345_v3 = vld [vmem:[%s2137_s19 + $0x558] sm:$0xff] }
  0x8e   : > { %1573 = vmatpush1.bf16.msra.mxu0 %v1853_v9  ;;  %1655 = vmatpush1.bf16.msra.mxu1 %v1855_v10  ;;  %v292_v9 = vld [vmem:[%s2137_s19 + $0x3b0] sm:$0xff]  ;;  %v289_v10 = vld [vmem:[%s2137_s19 + $0x398] sm:$0xff] }
  0x8f   : > { %1574 = vmatprep.subr.bf16.mxu0 %v1862_v11  ;;  %1656 = vmatprep.subr.bf16.mxu1 %v1864_v12  ;;  %v293_v11 = vld [vmem:[%s2137_s19 + $0x3b8] sm:$0xff]  ;;  %v1917_v12 = vcombine.low %v280_v62, %v284_v63  ;;  %v1926_v14 = vcombine.high %v288_v8, %v292_v9  ;;  %v344_v63 = vld [vmem:[%s2137_s19 + $0x550] sm:$0xff] }
  0x90   : > { %v1928_v15 = vcombine.high %v289_v10, %v293_v11  ;;  %v1927_v23 = vcombine.low %v289_v10, %v293_v11  ;;  %v356_v10 = vld [vmem:[%s2137_s19 + $0x5b0] sm:$0xff]  ;;  %v353_v11 = vld [vmem:[%s2137_s19 + $0x598] sm:$0xff] }
  0x92   : > { %1575 = vmatpush1.bf16.msra.mxu0 %v1861_v18  ;;  %1657 = vmatpush1.bf16.msra.mxu1 %v1863_v20  ;;  %v300_v18 = vld [vmem:[%s2137_s19 + $0x3f0] sm:$0xff]  ;;  %v297_v20 = vld [vmem:[%s2137_s19 + $0x3d8] sm:$0xff] }
  0x93   : > { %1576 = vmatprep.subr.bf16.mxu0 %v1870_v21  ;;  %1658 = vmatprep.subr.bf16.mxu1 %v1872_v22  ;;  %v301_v21 = vld [vmem:[%s2137_s19 + $0x3f8] sm:$0xff]  ;;  %v1925_v22 = vcombine.low %v288_v8, %v292_v9  ;;  %v1934_v24 = vcombine.high %v296_v17, %v300_v18  ;;  %v352_v9 = vld [vmem:[%s2137_s19 + $0x590] sm:$0xff] }
  0x94   : > { %v1936_v0 = vcombine.high %v297_v20, %v301_v21  ;;  %v1935_v32 = vcombine.low %v297_v20, %v301_v21  ;;  %v364_v20 = vld [vmem:[%s2137_s19 + $0x5f0] sm:$0xff]  ;;  %v361_v21 = vld [vmem:[%s2137_s19 + $0x5d8] sm:$0xff] }
  0x96   : > { %1577 = vmatpush1.bf16.msra.mxu0 %v1869_v27  ;;  %1659 = vmatpush1.bf16.msra.mxu1 %v1871_v28  ;;  %v308_v27 = vld [vmem:[%s2137_s19 + $0x430] sm:$0xff]  ;;  %v305_v28 = vld [vmem:[%s2137_s19 + $0x418] sm:$0xff] }
  0x97   : > { %1578 = vmatprep.subr.bf16.mxu0 %v1878_v29  ;;  %1660 = vmatprep.subr.bf16.mxu1 %v1880_v31  ;;  %v309_v29 = vld [vmem:[%s2137_s19 + $0x438] sm:$0xff]  ;;  %v1933_v31 = vcombine.low %v296_v17, %v300_v18  ;;  %v1942_v33 = vcombine.high %v304_v26, %v308_v27  ;;  %v360_v18 = vld [vmem:[%s2137_s19 + $0x5d0] sm:$0xff] }
  0x98   : > { %v1944_v34 = vcombine.high %v305_v28, %v309_v29  ;;  %v1943_v39 = vcombine.low %v305_v28, %v309_v29  ;;  %v369_v28 = vld [vmem:[%s2137_s19 + $0x618] sm:$0xff]  ;;  %v1997_v29 = vcombine.low %v360_v18, %v364_v20 }
  0x9a   : > { %1579 = vmatpush1.bf16.msra.mxu0 %v1877_v36  ;;  %1661 = vmatpush1.bf16.msra.mxu1 %v1879_v37  ;;  %v316_v36 = vld [vmem:[%s2137_s19 + $0x470] sm:$0xff]  ;;  %v313_v37 = vld [vmem:[%s2137_s19 + $0x458] sm:$0xff] }
  0x9b   : > { %1580 = vmatprep.subr.bf16.mxu0 %v1886_v38  ;;  %1662 = vmatprep.subr.bf16.mxu1 %v1888_v19  ;;  %v317_v38 = vld [vmem:[%s2137_s19 + $0x478] sm:$0xff]  ;;  %v1941_v19 = vcombine.low %v304_v26, %v308_v27  ;;  %v1950_v40 = vcombine.high %v312_v35, %v316_v36  ;;  %v368_v27 = vld [vmem:[%s2137_s19 + $0x610] sm:$0xff] }
  0x9c   : > { %v1952_v41 = vcombine.high %v313_v37, %v317_v38  ;;  %v1951_v47 = vcombine.low %v313_v37, %v317_v38 }
  0x9e   : > { %1581 = vmatpush1.bf16.msra.mxu0 %v1885_v43  ;;  %1663 = vmatpush1.bf16.msra.mxu1 %v1887_v44  ;;  %v324_v43 = vld [vmem:[%s2137_s19 + $0x4b0] sm:$0xff]  ;;  %v321_v44 = vld [vmem:[%s2137_s19 + $0x498] sm:$0xff] }
  0x9f   : > { %1582 = vmatprep.subr.bf16.mxu0 %v1894_v45  ;;  %1664 = vmatprep.subr.bf16.mxu1 %v1896_v46  ;;  %v325_v45 = vld [vmem:[%s2137_s19 + $0x4b8] sm:$0xff]  ;;  %v1949_v46 = vcombine.low %v312_v35, %v316_v36  ;;  %v1958_v48 = vcombine.high %v320_v42, %v324_v43  ;;  %v2007_v35 = vcombine.low %v369_v28, %v369_v28 }
  0xa0   : > { %v1960_v49 = vcombine.high %v321_v44, %v325_v45 }
  0xa1   : > { %v1393_v37 = vsel %vm1373_vm1, %v2007_v35, 0 }
  0xa2   : > { %1583 = vmatpush1.bf16.msra.mxu0 %v1893_v51  ;;  %1665 = vmatpush1.bf16.msra.mxu1 %v1895_v52  ;;  %v332_v51 = vld [vmem:[%s2137_s19 + $0x4f0] sm:$0xff]  ;;  %v329_v52 = vld [vmem:[%s2137_s19 + $0x4d8] sm:$0xff] }
  0xa3   : > { %1584 = vmatprep.subr.bf16.mxu0 %v1902_v53  ;;  %1666 = vmatprep.subr.bf16.mxu1 %v1904_v54  ;;  %v333_v53 = vld [vmem:[%s2137_s19 + $0x4f8] sm:$0xff]  ;;  %v1959_v54 = vcombine.low %v321_v44, %v325_v45  ;;  %v1966_v55 = vcombine.high %v328_v50, %v332_v51 }
  0xa4   : > { %v1968_v56 = vcombine.high %v329_v52, %v333_v53 }
  0xa6   : > { %1585 = vmatpush1.bf16.msra.mxu0 %v1901_v58  ;;  %1667 = vmatpush1.bf16.msra.mxu1 %v1903_v59  ;;  %v337_v58 = vld [vmem:[%s2137_s19 + $0x518] sm:$0xff] }
  0xa7   : > { %1586 = vmatprep.subr.bf16.mxu0 %v1910_v60  ;;  %1668 = vmatprep.subr.bf16.mxu1 %v1912_v61  ;;  %v341_v59 = vld [vmem:[%s2137_s19 + $0x538] sm:$0xff]  ;;  %v1965_v60 = vcombine.low %v328_v50, %v332_v51  ;;  %v1974_v61 = vcombine.high %v336_v1, %v340_v57 }
  0xa8   : > { %v1976_v62 = vcombine.high %v337_v58, %v341_v59 }
  0xaa   : > { %1587 = vmatpush1.bf16.msra.mxu0 %v1909_v4  ;;  %1669 = vmatpush1.bf16.msra.mxu1 %v1911_v5  ;;  %v349_v4 = vld [vmem:[%s2137_s19 + $0x578] sm:$0xff]  ;;  %v1973_v5 = vcombine.low %v336_v1, %v340_v57 }
  0xab   : > { %1588 = vmatprep.subr.bf16.mxu0 %v1918_v6  ;;  %1670 = vmatprep.subr.bf16.mxu1 %v1920_v7  ;;  %v1975_v6 = vcombine.low %v337_v58, %v341_v59  ;;  %v1982_v7 = vcombine.high %v344_v63, %v348_v2  ;;  %v1984_v8 = vcombine.high %v345_v3, %v349_v4 }
  0xae   : > { %1589 = vmatpush1.bf16.msra.mxu0 %v1917_v12  ;;  %1671 = vmatpush1.bf16.msra.mxu1 %v1919_v13  ;;  %v357_v12 = vld [vmem:[%s2137_s19 + $0x5b8] sm:$0xff]  ;;  %v1981_v13 = vcombine.low %v344_v63, %v348_v2 }
  0xaf   : > { %1590 = vmatprep.subr.bf16.mxu0 %v1926_v14  ;;  %1672 = vmatprep.subr.bf16.mxu1 %v1928_v15  ;;  %v1983_v14 = vcombine.low %v345_v3, %v349_v4  ;;  %v1990_v15 = vcombine.high %v352_v9, %v356_v10  ;;  %v1992_v17 = vcombine.high %v353_v11, %v357_v12 }
  0xb2   : > { %1591 = vmatpush1.bf16.msra.mxu0 %v1925_v22  ;;  %1673 = vmatpush1.bf16.msra.mxu1 %v1927_v23  ;;  %v365_v22 = vld [vmem:[%s2137_s19 + $0x5f8] sm:$0xff]  ;;  %v1989_v23 = vcombine.low %v352_v9, %v356_v10 }
  0xb3   : > { %1592 = vmatprep.subr.bf16.mxu0 %v1934_v24  ;;  %1674 = vmatprep.subr.bf16.mxu1 %v1936_v0  ;;  %v1991_v24 = vcombine.low %v353_v11, %v357_v12  ;;  %v1998_v0 = vcombine.high %v360_v18, %v364_v20  ;;  %v2000_v26 = vcombine.high %v361_v21, %v365_v22 }
  0xb4   : > { %v374_v38 = vpop.permute.xlu0 %373 }
  0xb6   : > { %1593 = vmatpush1.bf16.msra.mxu0 %v1933_v31  ;;  %1675 = vmatpush1.bf16.msra.mxu1 %v1935_v32  ;;  %v1999_v31 = vcombine.low %v361_v21, %v365_v22  ;;  %v2006_v32 = vcombine.high %v368_v27, %v368_v27 }
  0xb7   : > { %1603 = vmatprep.subr.bf16.mxu0 %v1942_v33  ;;  %1685 = vmatprep.subr.bf16.mxu1 %v1944_v34  ;;  %v2005_v33 = vcombine.low %v368_v27, %v368_v27  ;;  %v2008_v34 = vcombine.high %v369_v28, %v369_v28 }
  0xb9   : > { %1595 = vmatmul.mubr.bf16.vlgmr.msra.gmra.mrb[4].mxu0 %v2214_v16  ;;  %1677 = vmatmul.mubr.bf16.vlgmr.msra.gmra.mrb[4].mxu1 %v2214_v16  ;;  %v1957_v16 = vcombine.low %v320_v42, %v324_v43  ;;  %v1387_v36 = vsel %vm1373_vm1, %v2005_v33, 0 }
  0xba   : > { %1604 = vmatpush1.bf16.msra.mxu0 %v1941_v19  ;;  %1686 = vmatpush1.bf16.msra.mxu1 %v1943_v39 }
  0xbb   : > { %1605 = vmatprep.subr.bf16.mxu0 %v1950_v40  ;;  %1687 = vmatprep.subr.bf16.mxu1 %v1952_v41 }
  0xbc   : > { %2014 = vmatprep.mubr.msk.bf16.mxu0 %vm1369_vm0, %v2227_v25  ;;  %2016 = vmatprep.mubr.msk.bf16.mxu1 %vm1369_vm0, %v2227_v25  ;;  %v1967_v25 = vcombine.low %v329_v52, %v333_v53 }
  0xbe   : > { %1606 = vmatpush1.bf16.msra.mxu0 %v1949_v46  ;;  %1688 = vmatpush1.bf16.msra.mxu1 %v1951_v47 }
  0xbf   : > { %1607 = vmatprep.subr.bf16.mxu0 %v1958_v48  ;;  %1689 = vmatprep.subr.bf16.mxu1 %v1960_v49 }
  0xc2   : > { %1608 = vmatpush1.bf16.msra.mxu0 %v1957_v16  ;;  %1690 = vmatpush1.bf16.msra.mxu1 %v1959_v54 }
  0xc3   : > { %1609 = vmatprep.subr.bf16.mxu0 %v1966_v55  ;;  %1691 = vmatprep.subr.bf16.mxu1 %v1968_v56 }
  0xc6   : > { %1610 = vmatpush1.bf16.msra.mxu0 %v1965_v60  ;;  %1692 = vmatpush1.bf16.msra.mxu1 %v1967_v25 }
  0xc7   : > { %1611 = vmatprep.subr.bf16.mxu0 %v1974_v61  ;;  %1693 = vmatprep.subr.bf16.mxu1 %v1976_v62 }
  0xca   : > { %1612 = vmatpush1.bf16.msra.mxu0 %v1973_v5  ;;  %1694 = vmatpush1.bf16.msra.mxu1 %v1975_v6 }
  0xcb   : > { %1613 = vmatprep.subr.bf16.mxu0 %v1982_v7  ;;  %1695 = vmatprep.subr.bf16.mxu1 %v1984_v8 }
  0xce   : > { %1614 = vmatpush1.bf16.msra.mxu0 %v1981_v13  ;;  %1696 = vmatpush1.bf16.msra.mxu1 %v1983_v14 }
  0xcf   : > { %1615 = vmatprep.subr.bf16.mxu0 %v1990_v15  ;;  %1697 = vmatprep.subr.bf16.mxu1 %v1992_v17 }
  0xd2   : > { %1616 = vmatpush1.bf16.msra.mxu0 %v1989_v23  ;;  %1698 = vmatpush1.bf16.msra.mxu1 %v1991_v24 }
  0xd3   : > { %1617 = vmatprep.subr.bf16.mxu0 %v1998_v0  ;;  %1699 = vmatprep.subr.bf16.mxu1 %v2000_v26 }
  0xd6   : > { %1618 = vmatpush1.bf16.msra.mxu0 %v1997_v29  ;;  %1700 = vmatpush1.bf16.msra.mxu1 %v1999_v31 }
  0xd7   : > { %2013 = vmatprep.subr.msk.bf16.mxu0 %vm1373_vm1, %v2006_v32  ;;  %2015 = vmatprep.subr.msk.bf16.mxu1 %vm1373_vm1, %v2008_v34 }
  0xda   : > { %1620 = vmatpush1.bf16.msra.mxu0 %v1387_v36  ;;  %1702 = vmatpush1.bf16.msra.mxu1 %v1393_v37 }
  0xdd   : > { %1636 = vmatmul.mubr.bf16.vlgmr.msra.gmra.mrb[4].mxu0 %v2271_v30  ;;  %1718 = vmatmul.mubr.bf16.vlgmr.msra.gmra.mrb[4].mxu1 %v2271_v30 }
 0x14c   : > { %v1473_v19 = vpop.f32.mrb[0].mxu0  ;;  %v1555_v40 = vpop.f32.mrb[0].mxu1 }
 0x14d   : > { %v2020_v39 = vadd.f32 %v1473_v19, %v374_v38  ;;  %v1475_v41 = vpop.f32.mrb[1].mxu0  ;;  %v2022_v42 = vadd.f32 %v1555_v40, %v374_v38  ;;  %v1557_v44 = vpop.f32.mrb[1].mxu1 }
 0x14e   : > { %v2021_v43 = vadd.f32 %v1475_v41, %v374_v38  ;;  %v1477_v45 = vpop.f32.mrb[2].mxu0  ;;  %v2023_v46 = vadd.f32 %v1557_v44, %v374_v38  ;;  %v1559_v47 = vpop.f32.mrb[2].mxu1 }
 0x14f   : > { %2067 = vtanh.f32 %v2020_v39  ;;  %v1478_v48 = vpop.f32.mrb[3].mxu0  ;;  %v1560_v49 = vpop.f32.mrb[3].mxu1 }
 0x150   : > { %2069 = vtanh.f32 %v2022_v42 }
 0x151   : > { %2071 = vtanh.f32 %v2021_v43 }
 0x152   : > { %2073 = vtanh.f32 %v2023_v46 }
 0x159   : > { %v2068_v30 = vpop.eup %2067 }
 0x15a   : > { %v2070_v50 = vpop.eup %2069  ;;  %1734 = vst [vmem:[%s2385_s27] sm:$0xff] %v2068_v30 }
 0x15b   : > { %v2072_v51 = vpop.eup %2071  ;;  %1736 = vst [vmem:[%s2385_s27 + $0x10] sm:$0xff] %v2070_v50 }
 0x15c   : > { %v2074_v52 = vpop.eup %2073  ;;  %1735 = vst [vmem:[%s2385_s27 + $0x8] sm:$0xff] %v2072_v51 }
 0x15d   : > { %1737 = vst [vmem:[%s2385_s27 + $0x18] sm:$0xff] %v2074_v52 }
 0x1b0   : > { %v1637_v53 = vpop.f32.mrb[4].mxu0  ;;  %v1719_v54 = vpop.f32.mrb[4].mxu1 }
 0x1b1   : > { %v2024_v16 = vadd.f32 %v1637_v53, %v374_v38  ;;  %v1639_v55 = vpop.f32.mrb[5].mxu0  ;;  %v2026_v56 = vadd.f32 %v1719_v54, %v374_v38  ;;  %v1721_v57 = vpop.f32.mrb[5].mxu1 }
 0x1b2   : > { %v2025_v1 = vadd.f32 %v1639_v55, %v374_v38  ;;  %v1641_v58 = vpop.f32.mrb[6].mxu0  ;;  %v2027_v59 = vadd.f32 %v1721_v57, %v374_v38  ;;  %v1723_v60 = vpop.f32.mrb[6].mxu1 }
 0x1b3   : > { %2075 = vtanh.f32 %v2024_v16  ;;  %v1642_v25 = vpop.f32.mrb[7].mxu0  ;;  %v1724_v61 = vpop.f32.mrb[7].mxu1 }
 0x1b4   : > { %2077 = vtanh.f32 %v2026_v56 }
 0x1b5   : > { %2079 = vtanh.f32 %v2025_v1 }
 0x1b6   : > { %2081 = vtanh.f32 %v2027_v59 }
 0x1bd   : > { %v2076_v62 = vpop.eup %2075 }
 0x1be   : > { %v2078_v63 = vpop.eup %2077  ;;  %1738 = vst [vmem:[%s2385_s27 + $0x20] sm:$0xff] %v2076_v62 }
 0x1bf   : > { %v2080_v2 = vpop.eup %2079  ;;  %1740 = vst [vmem:[%s2385_s27 + $0x30] sm:$0xff] %v2078_v63 }
 0x1c0   : > { %v2082_v3 = vpop.eup %2081  ;;  %1739 = vst [vmem:[%s2385_s27 + $0x28] sm:$0xff] %v2080_v2 }
 0x1c1   : > { %1741 = vst [vmem:[%s2385_s27 + $0x38] sm:$0xff] %v2082_v3 }
 0x1c2 PF: > { %s13_s12 = sadd.s32 1, %s2089_s12  }
 0x1c3   : > { %p10_p4 = scmp.ge.s32.totalorder %s13_s12, 4  }
 0x1c5   :  { %12 = sbr.rel (!%p10_p4) target bundleno = 1 (0x1), region = 62 }

</bundles_post_ra>
